<compile_context>
chip_gen: v6e
topology: v6e:2x2x1
jax: 0.10.0
libtpu: 0.0.40
codegen_flags: <defaults>
</compile_context>

<pallas_src>
import numpy as np
import jax
import jax.numpy as jnp
from jax.experimental import pallas as pl
from jax.experimental.pallas import tpu as pltpu


def _pointer_network_kernel(
    q_ref, p_ref, consts_ref, attn_w_ref, gru_w_ref, gru_b_ref, out_ref,
):
    f32 = jnp.float32
    Bt, Lq, H = q_ref.shape
    _, Lp, _ = p_ref.shape
    A = attn_w_ref.shape[-1]          # padded attention width (128)

    q3 = q_ref[...].astype(f32)       # [Bt, Lq, H]
    p3 = p_ref[...].astype(f32)       # [Bt, Lp, H]

    consts = consts_ref[...]          # (3, A)
    qbq = consts[0:1, :]              # V_q @ W_q  (precomputed, padded)
    vsq = consts[1:2, :]              # question-pool score vector (row)
    vsp = consts[2:3, :]              # passage-pool  score vector (row)

    wkq = attn_w_ref[0]               # (H, A)  question pooling key proj
    wkp = attn_w_ref[1]               # (H, A)  passage  pooling key proj
    wqp = attn_w_ref[2]               # (H, A)  passage  pooling query proj

    # ---------- question pooling: learned query V_q attends over question ----
    kq = jnp.dot(q3.reshape(Bt * Lq, H), wkq,
                 preferred_element_type=f32).reshape(Bt, Lq, A)
    e = jnp.tanh(kq + qbq)                                 # (1,A) broadcast
    s = jnp.sum(e * vsq, axis=-1)                          # [Bt, Lq] VPU+XLU
    s = s - jnp.max(s, axis=-1, keepdims=True)
    w = jnp.exp(s)
    alpha = w * pl.reciprocal(jnp.sum(w, axis=-1, keepdims=True))
    h0 = jnp.sum(alpha[:, :, None] * q3, axis=1)           # [Bt, H]

    # ---------- passage key projection: query-independent, computed ONCE -----
    kp = jnp.dot(p3.reshape(Bt * Lp, H), wkp,
                 preferred_element_type=f32).reshape(Bt, Lp, A)

    def passage_attend(h):                                 # h: [Bt, H]
        qp = jnp.dot(h, wqp, preferred_element_type=f32)   # [Bt, A]
        e2 = jnp.tanh(kp + qp[:, None, :])
        s2 = jnp.sum(e2 * vsp, axis=-1)                    # [Bt, Lp]
        s2 = s2 - jnp.max(s2, axis=-1, keepdims=True)
        w2 = jnp.exp(s2)
        a2 = w2 * pl.reciprocal(jnp.sum(w2, axis=-1, keepdims=True))
        c = jnp.sum(a2[:, :, None] * p3, axis=1)           # [Bt, H]
        return c, a2

    c1, a_begin = passage_attend(h0)

    # ---------- GRUCell step, single fused MXU push --------------------------
    # g = [c1, h0] @ W_fused + b_fused, columns:
    #   [0:H)   -> gi_r + gh_r   [H:2H) -> gi_z + gh_z
    #   [2H:3H) -> gi_n          [3H:4H)-> gh_n
    ch = jnp.concatenate([c1, h0], axis=-1)                # [Bt, 2H]
    g = jnp.dot(ch, gru_w_ref[...],
                preferred_element_type=f32) + gru_b_ref[...]   # [Bt, 4H]
    r = jax.nn.sigmoid(g[:, 0:H])
    z = jax.nn.sigmoid(g[:, H:2 * H])
    n = jnp.tanh(g[:, 2 * H:3 * H] + r * g[:, 3 * H:4 * H])
    h1 = (1.0 - z) * n + z * h0                            # [Bt, H]

    _, a_end = passage_attend(h1)

    # One merged output slab (2, Bt, Lp): begin in row 0, end in row 1.
    out_ref[0, :, :] = a_begin.astype(out_ref.dtype)
    out_ref[1, :, :] = a_end.astype(out_ref.dtype)


# --------------------- one-time parameter packing (cache this) ---------------
def prepare_packed_params(params, *, a_pad=128):
    H, A = params["wkq"].shape
    assert a_pad >= A
    pad = a_pad - A

    def pad_cols(x):
        return jnp.pad(x.astype(jnp.float32), ((0, 0), (0, pad)))

    # (3, A_pad): [V_q@W_q ; v_score_question ; v_score_passage]
    qbq = pad_cols(params["V_q"].astype(jnp.float32)
                   @ params["wqq"].astype(jnp.float32))          # (1, A_pad)
    vsq = pad_cols(params["vsq"].reshape(1, A))
    vsp = pad_cols(params["vsp"].reshape(1, A))
    consts = jnp.concatenate([qbq, vsq, vsp], axis=0)            # (3, A_pad)

    # (3, H, A_pad): [wkq ; wkp ; wqp]
    attn_w = jnp.stack([pad_cols(params["wkq"]),
                        pad_cols(params["wkp"]),
                        pad_cols(params["wqp"])], axis=0)

    # Fused GRU weight (2H, 4H) and bias (1, 4H); PyTorch gate order r, z, n.
    w_ih = params["w_ih"].astype(jnp.float32)                    # (H, 3H)
    w_hh = params["w_hh"].astype(jnp.float32)                    # (H, 3H)
    zero = jnp.zeros((H, H), jnp.float32)
    top = jnp.concatenate([w_ih[:, 0:2 * H], w_ih[:, 2 * H:3 * H], zero], axis=1)
    bot = jnp.concatenate([w_hh[:, 0:2 * H], zero, w_hh[:, 2 * H:3 * H]], axis=1)
    gru_w = jnp.concatenate([top, bot], axis=0)                  # (2H, 4H)

    b_ih = params["b_ih"].astype(jnp.float32).reshape(1, 3 * H)
    b_hh = params["b_hh"].astype(jnp.float32).reshape(1, 3 * H)
    gru_b = jnp.concatenate([b_ih[:, 0:2 * H] + b_hh[:, 0:2 * H],
                             b_ih[:, 2 * H:3 * H],
                             b_hh[:, 2 * H:3 * H]], axis=1)      # (1, 4H)

    return {"consts": consts, "attn_w": attn_w,
            "gru_w": gru_w, "gru_b": gru_b}


def _default_batch_tile(B):
    """One program per TensorCore: grid=1 on v5e/v6e (1 TC), grid=2 on v7x."""
    try:
        kind = jax.devices()[0].device_kind.lower()
    except Exception:
        kind = ""
    two_tc = ("v7" in kind) or ("7x" in kind)
    if two_tc and B % 2 == 0 and ((B // 2) % 8 == 0 or (B // 2) == B):
        return B // 2
    return B


def pointer_network_forward(question, passage, packed, *, batch_tile=None):
    B, Lq, H = question.shape
    _, Lp, _ = passage.shape
    A_pad = packed["attn_w"].shape[-1]

    if batch_tile is None:
        batch_tile = _default_batch_tile(B)
    Bt = batch_tile
    assert B % Bt == 0, "batch must be divisible by the batch tile"

    def full_spec(shape):
        n = len(shape)
        return pl.BlockSpec(shape, lambda b, _n=n: (0,) * _n)

    in_specs = [
        pl.BlockSpec((Bt, Lq, H), lambda b: (b, 0, 0)),   # question tile
        pl.BlockSpec((Bt, Lp, H), lambda b: (b, 0, 0)),   # passage  tile
        full_spec((3, A_pad)),                            # packed (1,A) consts
        full_spec((3, H, A_pad)),                         # packed attn weights
        full_spec((2 * H, 4 * H)),                        # fused GRU weight
        full_spec((1, 4 * H)),                            # fused GRU bias
    ]
    # Single merged output: (2, B, Lp), row 0 = begin, row 1 = end.
    # TODO(synk): if Lp grows, pad Lp to a multiple of 128 for unmasked stores.
    out_specs = pl.BlockSpec((2, Bt, Lp), lambda b: (0, b, 0))
    out_shape = jax.ShapeDtypeStruct((2, B, Lp), jnp.float32)

    out = pl.pallas_call(
        _pointer_network_kernel,
        grid_spec=pltpu.PrefetchScalarGridSpec(
            num_scalar_prefetch=0,
            grid=(B // Bt,),
            in_specs=in_specs,
            out_specs=out_specs,
        ),
        out_shape=out_shape,
        compiler_params=pltpu.CompilerParams(
            dimension_semantics=("parallel",)),
    )(question, passage, packed["consts"], packed["attn_w"],
      packed["gru_w"], packed["gru_b"])

    # [2, B, Lp] -> ([B, 1, Lp], [B, 1, Lp])
    return out[0][:, None, :], out[1][:, None, :]


# ----------------------------- pure-JAX reference ----------------------------
def reference_forward(question, passage, params):
    def attend(key, query_vec, wk, wq, vs):
        kq = jnp.einsum("blh,ha->bla", key, wk)
        qb = query_vec @ wq                                      # [B or 1, A]
        e = jnp.tanh(kq + qb[:, None, :])
        s = jnp.squeeze(jnp.einsum("bla,ao->blo", e, vs), -1)    # [B, L]
        a = jax.nn.softmax(s, axis=-1)
        pooled = jnp.einsum("bl,blh->bh", a, key)
        return pooled, a

    H = question.shape[-1]
    h0, _ = attend(question, params["V_q"], params["wkq"], params["wqq"], params["vsq"])
    c1, a_begin = attend(passage, h0, params["wkp"], params["wqp"], params["vsp"])
    gi = c1 @ params["w_ih"] + params["b_ih"][0]
    gh = h0 @ params["w_hh"] + params["b_hh"][0]
    r = jax.nn.sigmoid(gi[:, 0:H] + gh[:, 0:H])
    z = jax.nn.sigmoid(gi[:, H:2 * H] + gh[:, H:2 * H])
    n = jnp.tanh(gi[:, 2 * H:3 * H] + r * gh[:, 2 * H:3 * H])
    h1 = (1.0 - z) * n + z * h0
    _, a_end = attend(passage, h1, params["wkp"], params["wqp"], params["vsp"])
    return a_begin[:, None, :], a_end[:, None, :]


# ----------------------------- deterministic params --------------------------
def init_params(key, H, A):
    ks = jax.random.split(key, 11)

    def xavier(k, shape):
        bound = (6.0 / (shape[0] + shape[1])) ** 0.5
        return jax.random.uniform(k, shape, jnp.float32, -bound, bound)

    gru_bound = 1.0 / (H ** 0.5)

    def gru_init(k, shape):
        return jax.random.uniform(k, shape, jnp.float32, -gru_bound, gru_bound)

    return {
        "V_q": xavier(ks[0], (1, H)),          # nn.Parameter (1,1,H) squeezed
        "wkq": xavier(ks[1], (H, A)),          # question pooling key linear
        "wqq": xavier(ks[2], (H, A)),          # question pooling query linear
        "vsq": xavier(ks[3], (A, 1)),          # question pooling score vector
        "wkp": xavier(ks[4], (H, A)),          # passage pooling key linear
        "wqp": xavier(ks[5], (H, A)),          # passage pooling query linear
        "vsp": xavier(ks[6], (A, 1)),          # passage pooling score vector
        "w_ih": gru_init(ks[7], (H, 3 * H)),   # GRUCell weight_ih^T
        "w_hh": gru_init(ks[8], (H, 3 * H)),   # GRUCell weight_hh^T
        "b_ih": gru_init(ks[9], (1, 3 * H)),
        "b_hh": gru_init(ks[10], (1, 3 * H)),
    }


if __name__ == "__main__":
    # question_size = passage_size = hidden = 32, attn_size = 75
    B, Lq, Lp, H, A = 16, 8, 16, 32, 75
    key = jax.random.PRNGKey(0)
    k_q, k_p, k_params = jax.random.split(key, 3)
    question = jax.random.normal(k_q, (B, Lq, H), jnp.float32)
    passage = jax.random.normal(k_p, (B, Lp, H), jnp.float32)
    params = init_params(k_params, H, A)

    # One-time param packing (padding to A=128, GRU fusion, V_q@W_q precompute).
    packed = prepare_packed_params(params, a_pad=128)
    jax.block_until_ready(packed)

    ans_begin, ans_end = pointer_network_forward(question, passage, packed)
    jax.block_until_ready((ans_begin, ans_end))

    ref_begin, ref_end = reference_forward(question, passage, params)
    assert ans_begin.shape == (B, 1, Lp) and ans_end.shape == (B, 1, Lp)
    np.testing.assert_allclose(np.asarray(ans_begin), np.asarray(ref_begin),
                               rtol=2e-5, atol=2e-5)
    np.testing.assert_allclose(np.asarray(ans_end), np.asarray(ref_end),
                               rtol=2e-5, atol=2e-5)
    print("KERNEL_OK")
</pallas_src>

<mosaic_0001>
module attributes {stable_mosaic.version = 11 : i64} {
  func.func @_pointer_network_kernel(%arg0: i32, %arg1: memref<16x8x32xf32, #tpu.memory_space<vmem>>, %arg2: memref<16x16x32xf32, #tpu.memory_space<vmem>>, %arg3: memref<3x128xf32, #tpu.memory_space<vmem>>, %arg4: memref<3x32x128xf32, #tpu.memory_space<vmem>>, %arg5: memref<64x128xf32, #tpu.memory_space<vmem>>, %arg6: memref<1x128xf32, #tpu.memory_space<vmem>>, %arg7: memref<2x16x16xf32, #tpu.memory_space<vmem>>) attributes {dimension_semantics = [#tpu.dimension_semantics<parallel>], iteration_bounds = array<i64: 1>, scalar_prefetch = 0 : i64, scratch_operands = 0 : i64, tpu.core_type = #tpu.core_type<tc>, window_params = [{transform_indices = @transform_0, window_bounds = array<i64: 16, 8, 32>}, {transform_indices = @transform_1, window_bounds = array<i64: 16, 16, 32>}, {pipeline_mode = #tpu.pipeline_mode<synchronous>, transform_indices = @transform_2, window_bounds = array<i64: 3, 128>}, {pipeline_mode = #tpu.pipeline_mode<synchronous>, transform_indices = @transform_3, window_bounds = array<i64: 3, 32, 128>}, {pipeline_mode = #tpu.pipeline_mode<synchronous>, transform_indices = @transform_4, window_bounds = array<i64: 64, 128>}, {pipeline_mode = #tpu.pipeline_mode<synchronous>, transform_indices = @transform_5, window_bounds = array<i64: 1, 128>}, {transform_indices = @transform_6, window_bounds = array<i64: 2, 16, 16>}]} {
    %c0 = arith.constant 0 : index
    %c0_0 = arith.constant 0 : index
    %c0_1 = arith.constant 0 : index
    %0 = vector.load %arg1[%c0, %c0_0, %c0_1] : memref<16x8x32xf32, #tpu.memory_space<vmem>>, vector<16x8x32xf32>
    %c0_2 = arith.constant 0 : index
    %c0_3 = arith.constant 0 : index
    %c0_4 = arith.constant 0 : index
    %1 = vector.load %arg2[%c0_2, %c0_3, %c0_4] : memref<16x16x32xf32, #tpu.memory_space<vmem>>, vector<16x16x32xf32>
    %c0_5 = arith.constant 0 : index
    %c0_6 = arith.constant 0 : index
    %2 = vector.load %arg3[%c0_5, %c0_6] : memref<3x128xf32, #tpu.memory_space<vmem>>, vector<3x128xf32>
    %3 = vector.extract_strided_slice %2 {offsets = [0, 0], sizes = [1, 128], strides = [1, 1]} : vector<3x128xf32> to vector<1x128xf32>
    %4 = vector.extract_strided_slice %2 {offsets = [1, 0], sizes = [1, 128], strides = [1, 1]} : vector<3x128xf32> to vector<1x128xf32>
    %5 = vector.extract_strided_slice %2 {offsets = [2, 0], sizes = [1, 128], strides = [1, 1]} : vector<3x128xf32> to vector<1x128xf32>
    %c0_7 = arith.constant 0 : index
    %c0_8 = arith.constant 0 : index
    %c0_9 = arith.constant 0 : index
    %6 = vector.load %arg4[%c0_7, %c0_8, %c0_9] : memref<3x32x128xf32, #tpu.memory_space<vmem>>, vector<1x32x128xf32>
    %7 = vector.shape_cast %6 : vector<1x32x128xf32> to vector<32x128xf32>
    %c1 = arith.constant 1 : index
    %c0_10 = arith.constant 0 : index
    %c0_11 = arith.constant 0 : index
    %8 = vector.load %arg4[%c1, %c0_10, %c0_11] : memref<3x32x128xf32, #tpu.memory_space<vmem>>, vector<1x32x128xf32>
    %9 = vector.shape_cast %8 : vector<1x32x128xf32> to vector<32x128xf32>
    %c2 = arith.constant 2 : index
    %c0_12 = arith.constant 0 : index
    %c0_13 = arith.constant 0 : index
    %10 = vector.load %arg4[%c2, %c0_12, %c0_13] : memref<3x32x128xf32, #tpu.memory_space<vmem>>, vector<1x32x128xf32>
    %11 = vector.shape_cast %10 : vector<1x32x128xf32> to vector<32x128xf32>
    %12 = vector.shape_cast %0 : vector<16x8x32xf32> to vector<128x32xf32>
    %cst = arith.constant dense<0.000000e+00> : vector<128x128xf32>
    %13 = tpu.matmul %12, %7, %cst {dimension_numbers = #tpu.dot_dimension_numbers<[1], [0], [0], [1], [0, 0, 1, 1], [], []>} : vector<128x32xf32>, vector<32x128xf32>, vector<128x128xf32> -> vector<128x128xf32>
    %14 = vector.shape_cast %13 : vector<128x128xf32> to vector<16x8x128xf32>
    %15 = vector.shape_cast %3 : vector<1x128xf32> to vector<1x1x128xf32>
    %16 = vector.broadcast %15 : vector<1x1x128xf32> to vector<16x8x128xf32>
    %17 = arith.addf %14, %16 : vector<16x8x128xf32>
    %18 = math.tanh %17 : vector<16x8x128xf32>
    %19 = vector.shape_cast %4 : vector<1x128xf32> to vector<1x1x128xf32>
    %20 = vector.broadcast %19 : vector<1x1x128xf32> to vector<16x8x128xf32>
    %21 = arith.mulf %18, %20 : vector<16x8x128xf32>
    %cst_14 = arith.constant dense<0.000000e+00> : vector<16x8xf32>
    %22 = vector.multi_reduction <add>, %21, %cst_14 [2] : vector<16x8x128xf32> to vector<16x8xf32>
    %cst_15 = arith.constant dense<0xFF800000> : vector<16xf32>
    %23 = vector.multi_reduction <maximumf>, %22, %cst_15 [1] : vector<16x8xf32> to vector<16xf32>
    %24 = vector.shape_cast %23 : vector<16xf32> to vector<16x1xf32>
    %25 = vector.broadcast %24 : vector<16x1xf32> to vector<16x8xf32>
    %26 = arith.subf %22, %25 : vector<16x8xf32>
    %27 = math.exp %26 : vector<16x8xf32>
    %cst_16 = arith.constant dense<0.000000e+00> : vector<16xf32>
    %28 = vector.multi_reduction <add>, %27, %cst_16 [1] : vector<16x8xf32> to vector<16xf32>
    %29 = vector.shape_cast %28 : vector<16xf32> to vector<16x1xf32>
    %30 = tpu.reciprocal %29 : vector<16x1xf32> -> vector<16x1xf32>
    %31 = vector.broadcast %30 : vector<16x1xf32> to vector<16x8xf32>
    %32 = arith.mulf %27, %31 : vector<16x8xf32>
    %33 = vector.shape_cast %32 : vector<16x8xf32> to vector<16x8x1xf32>
    %34 = vector.broadcast %33 : vector<16x8x1xf32> to vector<16x8x32xf32>
    %35 = arith.mulf %34, %0 : vector<16x8x32xf32>
    %cst_17 = arith.constant dense<0.000000e+00> : vector<16x32xf32>
    %36 = vector.multi_reduction <add>, %35, %cst_17 [1] : vector<16x8x32xf32> to vector<16x32xf32>
    %37 = vector.shape_cast %1 : vector<16x16x32xf32> to vector<256x32xf32>
    %cst_18 = arith.constant dense<0.000000e+00> : vector<256x128xf32>
    %38 = tpu.matmul %37, %9, %cst_18 {dimension_numbers = #tpu.dot_dimension_numbers<[1], [0], [0], [1], [0, 0, 1, 1], [], []>} : vector<256x32xf32>, vector<32x128xf32>, vector<256x128xf32> -> vector<256x128xf32>
    %39 = vector.shape_cast %38 : vector<256x128xf32> to vector<16x16x128xf32>
    %cst_19 = arith.constant dense<0.000000e+00> : vector<16x128xf32>
    %40 = tpu.matmul %36, %11, %cst_19 {dimension_numbers = #tpu.dot_dimension_numbers<[1], [0], [0], [1], [0, 0, 1, 1], [], []>} : vector<16x32xf32>, vector<32x128xf32>, vector<16x128xf32> -> vector<16x128xf32>
    %41 = vector.shape_cast %40 : vector<16x128xf32> to vector<16x1x128xf32>
    %42 = vector.broadcast %41 : vector<16x1x128xf32> to vector<16x16x128xf32>
    %43 = arith.addf %39, %42 : vector<16x16x128xf32>
    %44 = math.tanh %43 : vector<16x16x128xf32>
    %45 = vector.shape_cast %5 : vector<1x128xf32> to vector<1x1x128xf32>
    %46 = vector.broadcast %45 : vector<1x1x128xf32> to vector<16x16x128xf32>
    %47 = arith.mulf %44, %46 : vector<16x16x128xf32>
    %cst_20 = arith.constant dense<0.000000e+00> : vector<16x16xf32>
    %48 = vector.multi_reduction <add>, %47, %cst_20 [2] : vector<16x16x128xf32> to vector<16x16xf32>
    %cst_21 = arith.constant dense<0xFF800000> : vector<16xf32>
    %49 = vector.multi_reduction <maximumf>, %48, %cst_21 [1] : vector<16x16xf32> to vector<16xf32>
    %50 = vector.shape_cast %49 : vector<16xf32> to vector<16x1xf32>
    %51 = vector.broadcast %50 : vector<16x1xf32> to vector<16x16xf32>
    %52 = arith.subf %48, %51 : vector<16x16xf32>
    %53 = math.exp %52 : vector<16x16xf32>
    %cst_22 = arith.constant dense<0.000000e+00> : vector<16xf32>
    %54 = vector.multi_reduction <add>, %53, %cst_22 [1] : vector<16x16xf32> to vector<16xf32>
    %55 = vector.shape_cast %54 : vector<16xf32> to vector<16x1xf32>
    %56 = tpu.reciprocal %55 : vector<16x1xf32> -> vector<16x1xf32>
    %57 = vector.broadcast %56 : vector<16x1xf32> to vector<16x16xf32>
    %58 = arith.mulf %53, %57 : vector<16x16xf32>
    %59 = vector.shape_cast %58 : vector<16x16xf32> to vector<16x16x1xf32>
    %60 = vector.broadcast %59 : vector<16x16x1xf32> to vector<16x16x32xf32>
    %61 = arith.mulf %60, %1 : vector<16x16x32xf32>
    %cst_23 = arith.constant dense<0.000000e+00> : vector<16x32xf32>
    %62 = vector.multi_reduction <add>, %61, %cst_23 [1] : vector<16x16x32xf32> to vector<16x32xf32>
    %63 = tpu.concatenate %62, %36 in 1 : vector<16x32xf32>, vector<16x32xf32> -> vector<16x64xf32>
    %c0_24 = arith.constant 0 : index
    %c0_25 = arith.constant 0 : index
    %64 = vector.load %arg5[%c0_24, %c0_25] : memref<64x128xf32, #tpu.memory_space<vmem>>, vector<64x128xf32>
    %cst_26 = arith.constant dense<0.000000e+00> : vector<16x128xf32>
    %65 = tpu.matmul %63, %64, %cst_26 {dimension_numbers = #tpu.dot_dimension_numbers<[1], [0], [0], [1], [0, 0, 1, 1], [], []>} : vector<16x64xf32>, vector<64x128xf32>, vector<16x128xf32> -> vector<16x128xf32>
    %c0_27 = arith.constant 0 : index
    %c0_28 = arith.constant 0 : index
    %66 = vector.load %arg6[%c0_27, %c0_28] : memref<1x128xf32, #tpu.memory_space<vmem>>, vector<1x128xf32>
    %67 = vector.broadcast %66 : vector<1x128xf32> to vector<16x128xf32>
    %68 = arith.addf %65, %67 : vector<16x128xf32>
    %69 = vector.extract_strided_slice %68 {offsets = [0, 0], sizes = [16, 32], strides = [1, 1]} : vector<16x128xf32> to vector<16x32xf32>
    %70 = arith.negf %69 : vector<16x32xf32>
    %71 = math.exp %70 : vector<16x32xf32>
    %cst_29 = arith.constant 1.000000e+00 : f32
    %72 = vector.broadcast %cst_29 : f32 to vector<16x32xf32>
    %73 = arith.addf %72, %71 : vector<16x32xf32>
    %74 = arith.divf %72, %73 : vector<16x32xf32>
    %75 = vector.extract_strided_slice %68 {offsets = [0, 32], sizes = [16, 32], strides = [1, 1]} : vector<16x128xf32> to vector<16x32xf32>
    %76 = arith.negf %75 : vector<16x32xf32>
    %77 = math.exp %76 : vector<16x32xf32>
    %cst_30 = arith.constant 1.000000e+00 : f32
    %78 = vector.broadcast %cst_30 : f32 to vector<16x32xf32>
    %79 = arith.addf %78, %77 : vector<16x32xf32>
    %80 = arith.divf %78, %79 : vector<16x32xf32>
    %81 = vector.extract_strided_slice %68 {offsets = [0, 64], sizes = [16, 32], strides = [1, 1]} : vector<16x128xf32> to vector<16x32xf32>
    %82 = vector.extract_strided_slice %68 {offsets = [0, 96], sizes = [16, 32], strides = [1, 1]} : vector<16x128xf32> to vector<16x32xf32>
    %83 = arith.mulf %74, %82 : vector<16x32xf32>
    %84 = arith.addf %81, %83 : vector<16x32xf32>
    %85 = math.tanh %84 : vector<16x32xf32>
    %cst_31 = arith.constant 1.000000e+00 : f32
    %86 = vector.broadcast %cst_31 : f32 to vector<16x32xf32>
    %87 = arith.subf %86, %80 : vector<16x32xf32>
    %88 = arith.mulf %87, %85 : vector<16x32xf32>
    %89 = arith.mulf %80, %36 : vector<16x32xf32>
    %90 = arith.addf %88, %89 : vector<16x32xf32>
    %cst_32 = arith.constant dense<0.000000e+00> : vector<16x128xf32>
    %91 = tpu.matmul %90, %11, %cst_32 {dimension_numbers = #tpu.dot_dimension_numbers<[1], [0], [0], [1], [0, 0, 1, 1], [], []>} : vector<16x32xf32>, vector<32x128xf32>, vector<16x128xf32> -> vector<16x128xf32>
    %92 = vector.shape_cast %91 : vector<16x128xf32> to vector<16x1x128xf32>
    %93 = vector.broadcast %92 : vector<16x1x128xf32> to vector<16x16x128xf32>
    %94 = arith.addf %39, %93 : vector<16x16x128xf32>
    %95 = math.tanh %94 : vector<16x16x128xf32>
    %96 = vector.shape_cast %5 : vector<1x128xf32> to vector<1x1x128xf32>
    %97 = vector.broadcast %96 : vector<1x1x128xf32> to vector<16x16x128xf32>
    %98 = arith.mulf %95, %97 : vector<16x16x128xf32>
    %cst_33 = arith.constant dense<0.000000e+00> : vector<16x16xf32>
    %99 = vector.multi_reduction <add>, %98, %cst_33 [2] : vector<16x16x128xf32> to vector<16x16xf32>
    %cst_34 = arith.constant dense<0xFF800000> : vector<16xf32>
    %100 = vector.multi_reduction <maximumf>, %99, %cst_34 [1] : vector<16x16xf32> to vector<16xf32>
    %101 = vector.shape_cast %100 : vector<16xf32> to vector<16x1xf32>
    %102 = vector.broadcast %101 : vector<16x1xf32> to vector<16x16xf32>
    %103 = arith.subf %99, %102 : vector<16x16xf32>
    %104 = math.exp %103 : vector<16x16xf32>
    %cst_35 = arith.constant dense<0.000000e+00> : vector<16xf32>
    %105 = vector.multi_reduction <add>, %104, %cst_35 [1] : vector<16x16xf32> to vector<16xf32>
    %106 = vector.shape_cast %105 : vector<16xf32> to vector<16x1xf32>
    %107 = tpu.reciprocal %106 : vector<16x1xf32> -> vector<16x1xf32>
    %108 = vector.broadcast %107 : vector<16x1xf32> to vector<16x16xf32>
    %109 = arith.mulf %104, %108 : vector<16x16xf32>
    %c0_36 = arith.constant 0 : index
    %c0_37 = arith.constant 0 : index
    %c0_38 = arith.constant 0 : index
    %110 = vector.load %arg7[%c0_36, %c0_37, %c0_38] : memref<2x16x16xf32, #tpu.memory_space<vmem>>, vector<1x16x16xf32>
    %111 = vector.shape_cast %110 : vector<1x16x16xf32> to vector<16x16xf32>
    %112 = vector.shape_cast %58 : vector<16x16xf32> to vector<1x16x16xf32>
    tpu.vector_store %arg7[%c0_36, %c0_37, %c0_38], %112 {strides = array<i32>} : memref<2x16x16xf32, #tpu.memory_space<vmem>>, vector<1x16x16xf32>,
    %c1_39 = arith.constant 1 : index
    %c0_40 = arith.constant 0 : index
    %c0_41 = arith.constant 0 : index
    %113 = vector.load %arg7[%c1_39, %c0_40, %c0_41] : memref<2x16x16xf32, #tpu.memory_space<vmem>>, vector<1x16x16xf32>
    %114 = vector.shape_cast %113 : vector<1x16x16xf32> to vector<16x16xf32>
    %115 = vector.shape_cast %109 : vector<16x16xf32> to vector<1x16x16xf32>
    tpu.vector_store %arg7[%c1_39, %c0_40, %c0_41], %115 {strides = array<i32>} : memref<2x16x16xf32, #tpu.memory_space<vmem>>, vector<1x16x16xf32>,
    return
  }
  func.func @transform_0(%arg0: i32) -> (i32, i32, i32) {
    %c0_i32 = arith.constant 0 : i32
    %c0_i32_0 = arith.constant 0 : i32
    %c0_i32_1 = arith.constant 0 : i32
    return %arg0, %c0_i32, %c0_i32_0 : i32, i32, i32
  }
  func.func @transform_1(%arg0: i32) -> (i32, i32, i32) {
    %c0_i32 = arith.constant 0 : i32
    %c0_i32_0 = arith.constant 0 : i32
    %c0_i32_1 = arith.constant 0 : i32
    return %arg0, %c0_i32, %c0_i32_0 : i32, i32, i32
  }
  func.func @transform_2(%arg0: i32) -> (i32, i32) {
    %c0_i32 = arith.constant 0 : i32
    %c0_i32_0 = arith.constant 0 : i32
    %c0_i32_1 = arith.constant 0 : i32
    return %c0_i32, %c0_i32_0 : i32, i32
  }
  func.func @transform_3(%arg0: i32) -> (i32, i32, i32) {
    %c0_i32 = arith.constant 0 : i32
    %c0_i32_0 = arith.constant 0 : i32
    %c0_i32_1 = arith.constant 0 : i32
    %c0_i32_2 = arith.constant 0 : i32
    return %c0_i32, %c0_i32_0, %c0_i32_1 : i32, i32, i32
  }
  func.func @transform_4(%arg0: i32) -> (i32, i32) {
    %c0_i32 = arith.constant 0 : i32
    %c0_i32_0 = arith.constant 0 : i32
    %c0_i32_1 = arith.constant 0 : i32
    return %c0_i32, %c0_i32_0 : i32, i32
  }
  func.func @transform_5(%arg0: i32) -> (i32, i32) {
    %c0_i32 = arith.constant 0 : i32
    %c0_i32_0 = arith.constant 0 : i32
    %c0_i32_1 = arith.constant 0 : i32
    return %c0_i32, %c0_i32_0 : i32, i32
  }
  func.func @transform_6(%arg0: i32) -> (i32, i32, i32) {
    %c0_i32 = arith.constant 0 : i32
    %c0_i32_0 = arith.constant 0 : i32
    %c0_i32_1 = arith.constant 0 : i32
    return %c0_i32, %arg0, %c0_i32_0 : i32, i32, i32
  }
}

</mosaic_0001>

<bundles_post_ra>
// kernel: tpu_custom_call.1
= control target key start
LH: loop header
LB: loop body
LE: loop exit
PB: predicated region body
PF: predicated region fallthrough
CT: control target
= control target key end

     0   :  { %11 = vsyncpa [#allocation3], 0  ;;  %s7737_s0 = inlined_call_operand.hbm [shape: f32[16,8,32], index: 0, kind: input, shape index: {}]   ;;  %s7738_s1 = inlined_call_operand.hbm [shape: f32[16,16,32], index: 1, kind: input, shape index: {}]   ;;  %s7739_s2 = inlined_call_operand.hbm [shape: f32[3,128], index: 2, kind: input, shape index: {}]   ;;  %s7740_s3 = inlined_call_operand.hbm [shape: f32[3,32,128], index: 3, kind: input, shape index: {}]   ;;  %s7741_s4 = inlined_call_operand.hbm [shape: f32[64,128], index: 4, kind: input, shape index: {}]   ;;  %s7742_s5 = inlined_call_operand.vmem [shape: f32[1,128], index: 5, kind: input, shape index: {}]   ;;  %s7743_s6 = inlined_call_operand.hbm [shape: f32[2,16,16], index: 6, kind: output, shape index: {}]  }
   0x1   :  { %12 = vsyncpa [#allocation6], 0 }
   0x2   :  { %13 = vsyncpa [#allocation9], 0 }
   0x3   :  { %14 = vsyncpa [#allocation4], 0  ;;  %s5701_s21 = smov [#allocation5]   ;;  %s5702_s23 = smov [#allocation8]  }
   0x4   :  { %s32_s22 = sshll.u32 %s5701_s21, 4  ;;  %s54_s24 = sshll.u32 %s5702_s23, 4  ;;  %s33_s22 = int_to_ptr.vmem [resolvable:$true] %s32_s22  ;;  %s55_s24 = int_to_ptr.vmem [resolvable:$true] %s54_s24 }
   0x5   :  { %s5581_s25 = scalar_lea.vmem %s33_s22, 4096  ;;  %p5586_p1 = scmp.lt.s32.totalorder %s33_s22, %s33_s22 }
   0x6   :  { %p5582_p0 = scmp.ne.s32.totalorder %s33_s22, %s5581_s25  ;;  %p5587_p2 = scmp.lt.s32.totalorder %s5581_s25, %s5581_s25 }
   0x8   :  { %p5588_p3 = por %p5587_p2, %p5586_p1 }
   0xa   :  { %p5589_p4 = pnand %p5588_p3, %p5582_p0 }
   0xc   :  { %5592 = shalt.err (!%p5589_p4)
}
   0xd   :  { %s5703_s26 = smov 128   ;;  %s5704_s27 = smov 8  }
   0xe   :  { %38 = dma.hbm_to_vmem [thread:$0]  %s7738_s1, 4096, %s33_s22, [#allocation6], %s5703_s26, %s5703_s26, %s5704_s27  }
   0xf   :  { %s5601_s30 = scalar_lea.vmem %s55_s24, 1536  ;;  %p5606_p6 = scmp.lt.s32.totalorder %s55_s24, %s55_s24 }
  0x10   :  { %p5602_p5 = scmp.ne.s32.totalorder %s55_s24, %s5601_s30  ;;  %p5607_p7 = scmp.lt.s32.totalorder %s5601_s30, %s5601_s30 }
  0x12   :  { %p5608_p8 = por %p5607_p7, %p5606_p6 }
  0x14   :  { %p5609_p9 = pnand %p5608_p8, %p5602_p5 }
  0x16   :  { %5612 = shalt.err (!%p5609_p9)
}
  0x17   :  { %60 = dma.hbm_to_vmem [thread:$0]  %s7740_s3, 1536, %s55_s24, [#allocation9], %s5703_s26, %s5703_s26, %s5704_s27  }
  0x18   :  { %s5705_s9 = smov [#allocation2]   ;;  %s5706_s11 = smov [#allocation7]  }
  0x19   :  { %s20_s10 = sshll.u32 %s5705_s9, 4  ;;  %s45_s12 = sshll.u32 %s5706_s11, 4  ;;  %s21_s10 = int_to_ptr.vmem [resolvable:$true] %s20_s10  ;;  %s46_s12 = int_to_ptr.vmem [resolvable:$true] %s45_s12 }
  0x1a   :  { %s5621_s1 = scalar_lea.vmem %s21_s10, 2048  ;;  %p5626_p11 = scmp.lt.s32.totalorder %s21_s10, %s21_s10 }
  0x1b   :  { %p5622_p10 = scmp.ne.s32.totalorder %s21_s10, %s5621_s1  ;;  %p5627_p12 = scmp.lt.s32.totalorder %s5621_s1, %s5621_s1 }
  0x1d   :  { %p5628_p13 = por %p5627_p12, %p5626_p11 }
  0x1f   :  { %p5629_p0 = pnand %p5628_p13, %p5622_p10 }
  0x21   :  { %5632 = shalt.err (!%p5629_p0)
}
  0x22   :  { %26 = dma.hbm_to_vmem [thread:$0]  %s7737_s0, 2048, %s21_s10, [#allocation3], %s5703_s26, %s5703_s26, %s5704_s27  }
  0x23   :  { %s5641_s3 = scalar_lea.vmem %s46_s12, 64  ;;  %p5646_p2 = scmp.lt.s32.totalorder %s46_s12, %s46_s12 }
  0x24   :  { %p5642_p1 = scmp.ne.s32.totalorder %s46_s12, %s5641_s3  ;;  %p5647_p3 = scmp.lt.s32.totalorder %s5641_s3, %s5641_s3 }
  0x26   :  { %p5648_p4 = por %p5647_p3, %p5646_p2 }
  0x28   :  { %p5649_p5 = pnand %p5648_p4, %p5642_p1 }
  0x2a   :  { %5652 = shalt.err (!%p5649_p5)
}
  0x2b   :  { %48 = dma.hbm_to_vmem [thread:$0]  %s7739_s2, 64, %s46_s12, [#allocation6]  }
  0x2c   :  { %s5707_s17 = smov [#allocation10]  }
  0x2d   :  { %s66_s18 = sshll.u32 %s5707_s17, 4  ;;  %s67_s18 = int_to_ptr.vmem [resolvable:$true] %s66_s18 }
  0x2e   :  { %s5661_s19 = scalar_lea.vmem %s67_s18, 1024  ;;  %p5666_p7 = scmp.lt.s32.totalorder %s67_s18, %s67_s18 }
  0x2f   :  { %p5662_p6 = scmp.ne.s32.totalorder %s67_s18, %s5661_s19  ;;  %p5667_p8 = scmp.lt.s32.totalorder %s5661_s19, %s5661_s19 }
  0x31   :  { %p5668_p9 = por %p5667_p8, %p5666_p7 }
  0x33   :  { %p5669_p10 = pnand %p5668_p9, %p5662_p6 }
  0x35   :  { %5672 = shalt.err (!%p5669_p10)
}
  0x36   :  { %72 = dma.hbm_to_vmem [thread:$0]  %s7741_s4, 1024, %s67_s18, [#allocation9], %s5703_s26, %s5703_s26, %s5704_s27  }
  0x37   :  { %5693 = dma.done.wait [#allocation3], 2048  }
  0x38   :  { %5694 = vsyncadd [#allocation3], 4294965248 }
  0x39   :  { %5695 = dma.done.wait [#allocation6], 4160  }
  0x3a   :  { %5696 = vsyncadd [#allocation6], 4294963136 }
  0x3b   :  { %5697 = dma.done.wait [#allocation9], 2560  }
  0x3c   :  { %5698 = vsyncadd [#allocation9], 4294964736  ;;  %vm153_vm0 = vcmask 261120   ;;  %v142_v0 = vld [vmem:[#allocation8 + $0x18] sm:$0xff]  ;;  %v141_v1 = vld [vmem:[#allocation8 + $0x10] sm:$0xff]  ;;  %v347_v20 = vlaneseq  ;;  %vm517_vm1 = vcmask 1041409  }
  0x3d   :  { %5039 = vmatprep.subr.mxu0 %v142_v0  ;;  %v5776_v2 = vld [vmem:[#allocation2] sm:$0xff]  ;;  %v140_v3 = vld [vmem:[#allocation8 + $0x8] sm:$0xff]  ;;  %v5788_v7 = vld [vmem:[#allocation2 + $0x18] sm:$0xff]  ;;  %vm519_vm2 = vcmask 1042434   ;;  %vm521_vm3 = vcmask 1043459   ;;  %vm523_vm4 = vcmask 1044484  }
  0x3e   :  { %5040 = vmatpush3.msra.mxu0 %v142_v0  ;;  %5047 = vmatprep.mubr.msk.f32.mxu0 %vm153_vm0, %v5776_v2  ;;  %v139_v4 = vld [vmem:[#allocation8] sm:$0xff]  ;;  %v5782_v6 = vld [vmem:[#allocation2 + $0x10] sm:$0xff]  ;;  %v97_v11 = vld [vmem:[#allocation2 + $0x38] sm:$0xff]  ;;  %v5814_v21 = vshrl.u32 %v347_v20, 7  ;;  %vm525_vm5 = vcmask 1045509   ;;  %vm527_vm6 = vcmask 1046534  }
  0x3f   :  { %5041 = vmatprep.subr.mxu0 %v141_v1  ;;  %v5780_v5 = vld [vmem:[#allocation2 + $0x8] sm:$0xff]  ;;  %v5790_v8 = vld [vmem:[#allocation2 + $0x20] sm:$0xff]  ;;  %v5798_v10 = vld [vmem:[#allocation2 + $0x30] sm:$0xff]  ;;  %vm529_vm7 = vcmask 1047559   ;;  %vm540_vm8 = vcmask 64512   ;;  %vm1950_vm9 = vcmask 130112  }
  0x40   :  { %5042 = vmatpush3.msra.mxu0 %v141_v1  ;;  %v5796_v9 = vld [vmem:[#allocation2 + $0x28] sm:$0xff]  ;;  %v98_v12 = vld [vmem:[#allocation2 + $0x40] sm:$0xff]  ;;  %v100_v14 = vld [vmem:[#allocation2 + $0x50] sm:$0xff]  ;;  %v5817_v22 = vsub.s32 0, %v5814_v21  ;;  %v5828_v35 = vsub.s32 1, %v5814_v21  ;;  %vm2103_vm10 = vcmask 130048  }
  0x41   :  { %5043 = vmatprep.subr.mxu0 %v140_v3  ;;  %v99_v13 = vld [vmem:[#allocation2 + $0x48] sm:$0xff]  ;;  %v101_v15 = vld [vmem:[#allocation2 + $0x58] sm:$0xff]  ;;  %v102_v16 = vld [vmem:[#allocation2 + $0x60] sm:$0xff]  ;;  %s5710_s2 = smov 32   ;;  %vm3089_vm11 = vcmask 523264   ;;  %s5712_s22 = smov 96  }
  0x42   :  { %5044 = vmatpush3.msra.mxu0 %v140_v3  ;;  %v103_v17 = vld [vmem:[#allocation2 + $0x68] sm:$0xff]  ;;  %v104_v18 = vld [vmem:[#allocation2 + $0x70] sm:$0xff]  ;;  %v105_v19 = vld [vmem:[#allocation2 + $0x78] sm:$0xff]  ;;  %s5713_s23 = smov [#allocation11]  }
  0x43   :  { %5045 = vmatprep.subr.mxu0 %v139_v4  ;;  %v138_v23 = vld [vmem:[#allocation7] sm:$0x7]  ;;  %s4890_s24 = sshll.u32 %s5713_s23, 4  ;;  %s4891_s24 = int_to_ptr.vmem [resolvable:$true] %s4890_s24 }
  0x44   :  { %5046 = vmatpush3.msra.mxu0 %v139_v4  ;;  %v5820_v24 = vrot.slane %v138_v23, %v5817_v22  ;;  %v5832_v39 = vrot.slane %v138_v23, %v5828_v35  ;;  %s5673_s25 = scalar_lea.vmem %s4891_s24, 512  ;;  %p5678_p12 = scmp.lt.s32.totalorder %s4891_s24, %s4891_s24 }
  0x45   :  { %5048 = vmatmul.mubr.msk.f32.vlgmr.msra.gmra.mxu0 %vm153_vm0, %v5780_v5  ;;  %p5674_p11 = scmp.ne.s32.totalorder %s4891_s24, %s5673_s25  ;;  %p5679_p13 = scmp.lt.s32.totalorder %s5673_s25, %s5673_s25 }
  0x46   :  { %5050 = vmatprep.mubr.msk.f32.mxu0 %vm153_vm0, %v5782_v6 }
  0x47   :  { %p5680_p0 = por %p5679_p13, %p5678_p12 }
  0x49   :  { %5051 = vmatmul.mubr.msk.f32.gmra.mxu0 %vm153_vm0, %v5788_v7  ;;  %p5681_p1 = pnand %p5680_p0, %p5674_p11 }
  0x4a   :  { %5053 = vmatprep.mubr.msk.f32.mxu0 %vm153_vm0, %v5790_v8 }
  0x4d   :  { %5054 = vmatmul.mubr.msk.f32.gmra.mxu0 %vm153_vm0, %v5796_v9 }
  0x4e   :  { %5056 = vmatprep.mubr.msk.f32.mxu0 %vm153_vm0, %v5798_v10 }
  0x51   :  { %5057 = vmatmul.mubr.msk.f32.gmra.mxu0 %vm153_vm0, %v97_v11 }
  0x52   :  { %5059 = vmatprep.mubr.msk.f32.mxu0 %vm153_vm0, %v98_v12 }
  0x55   :  { %5060 = vmatmul.mubr.msk.f32.gmra.mxu0 %vm153_vm0, %v99_v13 }
  0x56   :  { %5062 = vmatprep.mubr.msk.f32.mxu0 %vm153_vm0, %v100_v14 }
  0x59   :  { %5063 = vmatmul.mubr.msk.f32.gmra.mxu0 %vm153_vm0, %v101_v15 }
  0x5a   :  { %5065 = vmatprep.mubr.msk.f32.mxu0 %vm153_vm0, %v102_v16 }
  0x5d   :  { %5066 = vmatmul.mubr.msk.f32.gmra.mxu0 %vm153_vm0, %v103_v17 }
  0x5e   :  { %5068 = vmatprep.mubr.msk.f32.mxu0 %vm153_vm0, %v104_v18 }
  0x61   :  { %5069 = vmatmul.mubr.msk.f32.gmra.mxu0 %vm153_vm0, %v105_v19 }
 0x105   :  { %v5049_v25 = vpop.f32.mrf.mxu0 }
 0x106   :  { %v352_v26 = vadd.f32 %v5049_v25, %v5820_v24 }
 0x107   :  { %v268_v27 = vpop.f32.mrf.mxu0 }
 0x108   :  { %5183 = vtanh.f32 %v352_v26  ;;  %v351_v28 = vadd.f32 %v5820_v24, %v268_v27 }
 0x109   :  { %v5052_v29 = vpop.f32.mrf.mxu0 }
 0x10a   :  { %5185 = vtanh.f32 %v351_v28  ;;  %v354_v30 = vadd.f32 %v5052_v29, %v5820_v24 }
 0x10b   :  { %v278_v31 = vpop.f32.mrf.mxu0 }
 0x10c   :  { %5187 = vtanh.f32 %v354_v30  ;;  %v353_v32 = vadd.f32 %v5820_v24, %v278_v31 }
 0x10d   :  { %v5055_v33 = vpop.f32.mrf.mxu0 }
 0x10e   :  { %5189 = vtanh.f32 %v353_v32  ;;  %v356_v34 = vadd.f32 %v5055_v33, %v5820_v24 }
 0x10f   :  { %v288_v36 = vpop.f32.mrf.mxu0 }
 0x110   :  { %5191 = vtanh.f32 %v356_v34  ;;  %v355_v38 = vadd.f32 %v5820_v24, %v288_v36 }
 0x111   :  { %v5058_v37 = vpop.f32.mrf.mxu0 }
 0x112   :  { %5193 = vtanh.f32 %v355_v38  ;;  %v358_v59 = vadd.f32 %v5058_v37, %v5820_v24 }
 0x113   :  { %v298_v40 = vpop.f32.mrf.mxu0 }
 0x114   :  { %v357_v43 = vadd.f32 %v5820_v24, %v298_v40 }
 0x115   :  { %v5184_v41 = vpop.eup %5183  ;;  %v5061_v42 = vpop.f32.mrf.mxu0 }
 0x116   :  { %v360_v44 = vadd.f32 %v5061_v42, %v5820_v24  ;;  %v388_v45 = vmul.f32 %v5184_v41, %v5832_v39  ;;  %v5867_v42 = vand.u32 127, %v347_v20 }
 0x117   :  { %v5186_v46 = vpop.eup %5185  ;;  %v308_v47 = vpop.f32.mrf.mxu0 }
 0x118   :  { %5195 = vtanh.f32 %v360_v44  ;;  %405 = vadd.xlane.f32.xlu0 %v388_v45  ;;  %v359_v49 = vadd.f32 %v5820_v24, %v308_v47  ;;  %v387_v52 = vmul.f32 %v5186_v46, %v5832_v39  ;;  %v5875_v45 = vsub.s32 %v5867_v42, %v5814_v21 }
 0x119   :  { %v5188_v48 = vpop.eup %5187  ;;  %v5064_v50 = vpop.f32.mrf.mxu0  ;;  %5197 = vtanh.f32 %v357_v43 }
 0x11a   :  { %v362_v51 = vadd.f32 %v5064_v50, %v5820_v24  ;;  %v390_v53 = vmul.f32 %v5188_v48, %v5832_v39 }
 0x11b   :  { %v5190_v54 = vpop.eup %5189  ;;  %v318_v55 = vpop.f32.mrf.mxu0 }
 0x11c   :  { %5199 = vtanh.f32 %v362_v51  ;;  %403 = vadd.xlane.f32.xlu0 %v387_v52  ;;  %409 = vadd.xlane.f32.xlu1 %v390_v53  ;;  %v361_v56 = vadd.f32 %v5820_v24, %v318_v55  ;;  %v389_v60 = vmul.f32 %v5190_v54, %v5832_v39 }
 0x11d   :  { %v5192_v57 = vpop.eup %5191  ;;  %5201 = vtanh.f32 %v359_v49  ;;  %v5067_v58 = vpop.f32.mrf.mxu0 }
 0x11e   :  { %5203 = vtanh.f32 %v361_v56  ;;  %v364_v61 = vadd.f32 %v5067_v58, %v5820_v24  ;;  %v392_v63 = vmul.f32 %v5192_v57, %v5832_v39 }
 0x11f   :  { %v328_v62 = vpop.f32.mrf.mxu0  ;;  %v5194_v4 = vpop.eup %5193 }
 0x120   :  { %407 = vadd.xlane.f32.xlu1 %v389_v60  ;;  %5205 = vtanh.f32 %v364_v61  ;;  %v363_v0 = vadd.f32 %v5820_v24, %v328_v62  ;;  %v391_v14 = vmul.f32 %v5194_v4, %v5832_v39 }
 0x121   :  { %v5070_v1 = vpop.f32.mrf.mxu0  ;;  %5207 = vtanh.f32 %v358_v59 }
 0x122   :  { %v366_v3 = vadd.f32 %v5070_v1, %v5820_v24  ;;  %5209 = vtanh.f32 %v363_v0 }
 0x123   :  { %v338_v11 = vpop.f32.mrf.mxu0 }
 0x124   :  { %413 = vadd.xlane.f32.xlu1 %v392_v63  ;;  %5211 = vtanh.f32 %v366_v3  ;;  %v365_v12 = vadd.f32 %v5820_v24, %v338_v11 }
 0x125   :  { %v5196_v13 = vpop.eup %5195 }
 0x126   :  { %v396_v15 = vmul.f32 %v5196_v13, %v5832_v39  ;;  %v5198_v16 = vpop.eup %5197  ;;  %5213 = vtanh.f32 %v365_v12 }
 0x127   :  { %v393_v19 = vmul.f32 %v5198_v16, %v5832_v39 }
 0x128   :  { %411 = vadd.xlane.f32.xlu1 %v391_v14  ;;  %421 = vadd.xlane.f32.xlu0 %v396_v15 }
 0x129   :  { %v5200_v17 = vpop.eup %5199 }
 0x12a   :  { %v5202_v18 = vpop.eup %5201  ;;  %v398_v23 = vmul.f32 %v5200_v17, %v5832_v39 }
 0x12b   :  { %v5204_v25 = vpop.eup %5203  ;;  %v395_v27 = vmul.f32 %v5202_v18, %v5832_v39 }
 0x12c   :  { %415 = vadd.xlane.f32.xlu1 %v393_v19  ;;  %425 = vadd.xlane.f32.xlu0 %v398_v23  ;;  %v397_v24 = vmul.f32 %v5204_v25, %v5832_v39 }
 0x12d   :  { %v5206_v26 = vpop.eup %5205 }
 0x12e   :  { %v5208_v28 = vpop.eup %5207  ;;  %v400_v30 = vmul.f32 %v5206_v26, %v5832_v39 }
 0x12f   :  { %v5210_v29 = vpop.eup %5209  ;;  %v394_v32 = vmul.f32 %v5208_v28, %v5832_v39 }
 0x130   :  { %419 = vadd.xlane.f32.xlu1 %v395_v27  ;;  %423 = vadd.xlane.f32.xlu0 %v397_v24  ;;  %v399_v33 = vmul.f32 %v5210_v29, %v5832_v39 }
 0x131   :  { %v5212_v31 = vpop.eup %5211 }
 0x132   :  { %v402_v34 = vmul.f32 %v5212_v31, %v5832_v39 }
 0x133   :  { %v5214_v36 = vpop.eup %5213 }
 0x134   :  { %417 = vadd.xlane.f32.xlu1 %v394_v32  ;;  %429 = vadd.xlane.f32.xlu0 %v400_v30  ;;  %v401_v37 = vmul.f32 %v5214_v36, %v5832_v39  ;;  %v5945_v36 = vsub.s32 5, %v5814_v21 }
 0x138   :  { %427 = vadd.xlane.f32.xlu0 %v399_v33  ;;  %433 = vadd.xlane.f32.xlu1 %v402_v34  ;;  %v5708_v33 = vmov 0   ;;  %v5942_v34 = vsub.s32 2, %v5814_v21 }
 0x139   :  { %5182 = vset.pattern.permute.xlu1 %v5708_v33  ;;  %5181 = vset.pattern.permute.xlu0 %v5708_v33 }
 0x13c   :  { %431 = vadd.xlane.f32.xlu0 %v401_v37  ;;  %v5948_v37 = vsub.s32 3, %v5814_v21 }
 0x1a1   :  { %v5862_v40 = vpop.xlane.xlu0 %405 }
 0x1a2   :  { %v460_v48 = vrot.slane %v5862_v40, %v5875_v45 }
 0x1a5   :  { %v5860_v38 = vpop.xlane.xlu1 %409  ;;  %v5869_v43 = vpop.xlane.xlu0 %403 }
 0x1a6   :  { %v456_v47 = vrot.slane %v5869_v43, %v5875_v45  ;;  %v468_v54 = vrot.slane %v5860_v38, %v5875_v45 }
 0x1a8   :  { %v518_v51 = vsel %vm517_vm1, %v460_v48, %v456_v47  ;;  %v5951_v47 = vsub.s32 6, %v5814_v21 }
 0x1a9   :  { %v5864_v41 = vpop.xlane.xlu1 %407 }
 0x1aa   :  { %v464_v20 = vrot.slane %v5864_v41, %v5875_v45 }
 0x1ac   :  { %v520_v52 = vsel %vm519_vm2, %v464_v20, %v518_v51 }
 0x1ad   :  { %v5871_v44 = vpop.xlane.xlu1 %413  ;;  %v522_v57 = vsel %vm521_vm3, %v468_v54, %v520_v52 }
 0x1ae   :  { %v476_v62 = vrot.slane %v5871_v44, %v5875_v45 }
 0x1b1   :  { %v5877_v39 = vpop.xlane.xlu1 %411  ;;  %v5879_v46 = vpop.xlane.xlu0 %421 }
 0x1b2   :  { %v472_v53 = vrot.slane %v5877_v39, %v5875_v45  ;;  %v492_v60 = vrot.slane %v5879_v46, %v5875_v45 }
 0x1b4   :  { %v524_v59 = vsel %vm523_vm4, %v472_v53, %v522_v57  ;;  %v5957_v53 = vsub.s32 4, %v5814_v21 }
 0x1b5   :  { %v5887_v49 = vpop.xlane.xlu1 %415  ;;  %v5889_v50 = vpop.xlane.xlu0 %425  ;;  %v526_v11 = vsel %vm525_vm5, %v476_v62, %v524_v59 }
 0x1b6   :  { %v480_v61 = vrot.slane %v5887_v49, %v5875_v45  ;;  %v500_v12 = vrot.slane %v5889_v50, %v5875_v45 }
 0x1b8   :  { %v528_v13 = vsel %vm527_vm6, %v480_v61, %v526_v11  ;;  %v5965_v61 = vsub.s32 7, %v5814_v21 }
 0x1b9   :  { %v5897_v55 = vpop.xlane.xlu1 %419  ;;  %v5899_v56 = vpop.xlane.xlu0 %423 }
 0x1ba   :  { %v488_v58 = vrot.slane %v5897_v55, %v5875_v45  ;;  %v496_v63 = vrot.slane %v5899_v56, %v5875_v45  ;;  %7811 = vst [vmem:[#allocation16_spill] sm:$0xff] %v5965_v61 }
 0x1bc   :  { %v531_v0 = vsel %vm517_vm1, %v492_v60, %v488_v58 }
 0x1bd   :  { %v418_v1 = vpop.xlane.xlu1 %417  ;;  %v5914_v3 = vpop.xlane.xlu0 %429  ;;  %v532_v14 = vsel %vm519_vm2, %v496_v63, %v531_v0 }
 0x1be   :  { %v484_v4 = vrot.slane %v418_v1, %v5875_v45  ;;  %v508_v23 = vrot.slane %v5914_v3, %v5875_v45  ;;  %v533_v25 = vsel %vm521_vm3, %v500_v12, %v532_v14 }
 0x1c0   :  { %v530_v15 = vsel %vm529_vm7, %v484_v4, %v528_v13 }
 0x1c1   :  { %v5923_v16 = vpop.xlane.xlu0 %427  ;;  %v541_v17 = vsel %vm540_vm8, %v530_v15, -inf  ;;  %v434_v19 = vpop.xlane.xlu1 %433 }
 0x1c2   :  { %v504_v18 = vrot.slane %v5923_v16, %v5875_v45  ;;  %542 = vmax.xlane.f32.xlu0 %v541_v17  ;;  %v516_v27 = vrot.slane %v434_v19, %v5875_v45 }
 0x1c4   :  { %v534_v24 = vsel %vm523_vm4, %v504_v18, %v533_v25 }
 0x1c5   :  { %v5932_v26 = vpop.xlane.xlu0 %431  ;;  %v535_v29 = vsel %vm525_vm5, %v508_v23, %v534_v24 }
 0x1c6   :  { %v512_v28 = vrot.slane %v5932_v26, %v5875_v45 }
 0x1c8   :  { %v536_v30 = vsel %vm527_vm6, %v512_v28, %v535_v29 }
 0x1c9   :  { %v537_v31 = vsel %vm529_vm7, %v516_v27, %v536_v30 }
 0x1ca   :  { %v544_v32 = vsel %vm540_vm8, %v537_v31, -inf }
 0x1cb   :  { %545 = vmax.xlane.f32.xlu1 %v544_v32 }
 0x24b   :  { %v543_v20 = vpop.xlane.xlu0 %542 }
 0x24c   :  { %v552_v48 = vrot.slane %v543_v20, %v5817_v22  ;;  %v556_v51 = vrot.slane %v543_v20, %v5828_v35  ;;  %v560_v52 = vrot.slane %v543_v20, %v5942_v34  ;;  %v572_v54 = vrot.slane %v543_v20, %v5945_v36 }
 0x24d   :  { %v564_v57 = vrot.slane %v543_v20, %v5948_v37  ;;  %v576_v62 = vrot.slane %v543_v20, %v5951_v47  ;;  %v568_v11 = vrot.slane %v543_v20, %v5957_v53 }
 0x24e   :  { %v629_v58 = vsub.f32 %v5869_v43, %v552_v48  ;;  %v630_v59 = vsub.f32 %v5862_v40, %v556_v51  ;;  %v631_v60 = vsub.f32 %v5864_v41, %v560_v52  ;;  %v634_v63 = vsub.f32 %v5871_v44, %v572_v54 }
 0x24f   :  { %v632_v12 = vsub.f32 %v5860_v38, %v564_v57  ;;  %v580_v43 = vrot.slane %v543_v20, %v5965_v61  ;;  %v635_v40 = vsub.f32 %v5887_v49, %v576_v62  ;;  %v633_v15 = vsub.f32 %v5877_v39, %v568_v11 }
 0x250   :  { %v645_v0 = vmul.f32 1.442695, %v629_v58  ;;  %v647_v4 = vmul.f32 1.442695, %v630_v59  ;;  %v649_v13 = vmul.f32 1.442695, %v631_v60 }
 0x251   :  { %v655_v41 = vmul.f32 1.442695, %v634_v63  ;;  %v651_v17 = vmul.f32 1.442695, %v632_v12  ;;  %v636_v18 = vsub.f32 %v418_v1, %v580_v43  ;;  %v657_v23 = vmul.f32 1.442695, %v635_v40 }
 0x252   :  { %5215 = vpow2.f32 %v645_v0  ;;  %v653_v25 = vmul.f32 1.442695, %v633_v15 }
 0x253   :  { %5217 = vpow2.f32 %v647_v4  ;;  %v659_v49 = vmul.f32 1.442695, %v636_v18 }
 0x254   :  { %v546_v14 = vpop.xlane.xlu1 %545  ;;  %5219 = vpow2.f32 %v649_v13 }
 0x255   :  { %v584_v44 = vrot.slane %v546_v14, %v5817_v22  ;;  %5221 = vpow2.f32 %v655_v41  ;;  %v612_v38 = vrot.slane %v546_v14, %v5965_v61  ;;  %v588_v27 = vrot.slane %v546_v14, %v5828_v35 }
 0x256   :  { %5223 = vpow2.f32 %v651_v17  ;;  %v592_v1 = vrot.slane %v546_v14, %v5942_v34  ;;  %v600_v51 = vrot.slane %v546_v14, %v5957_v53  ;;  %v604_v58 = vrot.slane %v546_v14, %v5945_v36 }
 0x257   :  { %v637_v24 = vsub.f32 %v5897_v55, %v584_v44  ;;  %5225 = vpow2.f32 %v657_v23  ;;  %v644_v28 = vsub.f32 %v434_v19, %v612_v38  ;;  %v638_v30 = vsub.f32 %v5879_v46, %v588_v27 }
 0x258   :  { %5227 = vpow2.f32 %v653_v25  ;;  %v596_v19 = vrot.slane %v546_v14, %v5948_v37  ;;  %v639_v33 = vsub.f32 %v5899_v56, %v592_v1  ;;  %v641_v59 = vsub.f32 %v5923_v16, %v600_v51 }
 0x259   :  { %v661_v39 = vmul.f32 1.442695, %v637_v24  ;;  %5229 = vpow2.f32 %v659_v49  ;;  %v675_v31 = vmul.f32 1.442695, %v644_v28  ;;  %v663_v20 = vmul.f32 1.442695, %v638_v30 }
 0x25a   :  { %v640_v52 = vsub.f32 %v5889_v50, %v596_v19  ;;  %v665_v54 = vmul.f32 1.442695, %v639_v33  ;;  %v608_v63 = vrot.slane %v546_v14, %v5951_v47  ;;  %v642_v0 = vsub.f32 %v5914_v3, %v604_v58 }
 0x25b   :  { %5231 = vpow2.f32 %v661_v39  ;;  %v669_v4 = vmul.f32 1.442695, %v641_v59 }
 0x25c   :  { %5233 = vpow2.f32 %v675_v31  ;;  %v667_v60 = vmul.f32 1.442695, %v640_v52  ;;  %v643_v16 = vsub.f32 %v5932_v26, %v608_v63  ;;  %v671_v12 = vmul.f32 1.442695, %v642_v0 }
 0x25d   :  { %5235 = vpow2.f32 %v663_v20 }
 0x25e   :  { %5237 = vpow2.f32 %v665_v54  ;;  %v673_v43 = vmul.f32 1.442695, %v643_v16 }
 0x25f   :  { %v5978_v29 = vpop.eup %5215  ;;  %5239 = vpow2.f32 %v667_v60 }
 0x260   :  { %v5982_v32 = vpop.eup %5217  ;;  %694 = vperm.xlu0 %5181, %v5978_v29   ;;  %5241 = vpow2.f32 %v669_v4 }
 0x261   :  { %697 = vperm.xlu1 %5182, %v5982_v32   ;;  %v5986_v55 = vpop.eup %5219  ;;  %5243 = vpow2.f32 %v671_v12 }
 0x262   :  { %v5990_v48 = vpop.eup %5221  ;;  %5245 = vpow2.f32 %v673_v43 }
 0x263   :  { %v5994_v46 = vpop.eup %5223 }
 0x264   :  { %709 = vperm.xlu0 %5181, %v5990_v48   ;;  %v5998_v57 = vpop.eup %5225 }
 0x265   :  { %700 = vperm.xlu1 %5182, %v5986_v55   ;;  %v6002_v56 = vpop.eup %5227 }
 0x266   :  { %v6006_v62 = vpop.eup %5229 }
 0x268   :  { %712 = vperm.xlu0 %5181, %v5998_v57   ;;  %v6010_v50 = vpop.eup %5231 }
 0x269   :  { %703 = vperm.xlu1 %5182, %v5994_v46   ;;  %v6014_v11 = vpop.eup %5233 }
 0x26a   :  { %v6019_v13 = vpop.eup %5235 }
 0x26b   :  { %v6022_v40 = vpop.eup %5237 }
 0x26c   :  { %715 = vperm.xlu0 %5181, %v6006_v62   ;;  %v6025_v3 = vpop.eup %5239 }
 0x26d   :  { %706 = vperm.xlu1 %5182, %v6002_v56   ;;  %v6028_v41 = vpop.eup %5241 }
 0x26e   :  { %v6031_v26 = vpop.eup %5243 }
 0x26f   :  { %v6034_v14 = vpop.eup %5245 }
 0x270   :  { %739 = vperm.xlu0 %5181, %v6014_v11  }
 0x271   :  { %718 = vperm.xlu1 %5182, %v6010_v50  }
 0x275   :  { %721 = vperm.xlu1 %5182, %v6019_v13  }
 0x279   :  { %724 = vperm.xlu1 %5182, %v6022_v40  }
 0x27d   :  { %727 = vperm.xlu1 %5182, %v6025_v3  }
 0x281   :  { %730 = vperm.xlu1 %5182, %v6028_v41  }
 0x285   :  { %733 = vperm.xlu1 %5182, %v6031_v26  }
 0x289   :  { %736 = vperm.xlu1 %5182, %v6034_v14  }
 0x2db   :  { %v695_v15 = vpop.permute.xlu0 %694 }
 0x2dc   :  { %v698_v17 = vpop.permute.xlu1 %697  ;;  %v744_v38 = vrot.slane %v695_v15, %v5875_v45 }
 0x2dd   :  { %v748_v23 = vrot.slane %v698_v17, %v5875_v45 }
 0x2df   :  { %v710_v18 = vpop.permute.xlu0 %709  ;;  %v805_v28 = vsel %vm517_vm1, %v748_v23, %v744_v38 }
 0x2e0   :  { %v701_v44 = vpop.permute.xlu1 %700  ;;  %v764_v19 = vrot.slane %v710_v18, %v5875_v45 }
 0x2e1   :  { %v752_v49 = vrot.slane %v701_v44, %v5875_v45 }
 0x2e3   :  { %v713_v24 = vpop.permute.xlu0 %712  ;;  %v806_v1 = vsel %vm519_vm2, %v752_v49, %v805_v28 }
 0x2e4   :  { %v704_v25 = vpop.permute.xlu1 %703  ;;  %v768_v20 = vrot.slane %v713_v24, %v5875_v45 }
 0x2e5   :  { %v756_v27 = vrot.slane %v704_v25, %v5875_v45 }
 0x2e7   :  { %v716_v31 = vpop.permute.xlu0 %715  ;;  %v807_v33 = vsel %vm521_vm3, %v756_v27, %v806_v1 }
 0x2e8   :  { %v707_v39 = vpop.permute.xlu1 %706  ;;  %v772_v52 = vrot.slane %v716_v31, %v5875_v45 }
 0x2e9   :  { %v760_v30 = vrot.slane %v707_v39, %v5875_v45 }
 0x2eb   :  { %v808_v51 = vsel %vm523_vm4, %v760_v30, %v807_v33  ;;  %v740_v24 = vpop.permute.xlu0 %739 }
 0x2ec   :  { %v719_v54 = vpop.permute.xlu1 %718  ;;  %v809_v58 = vsel %vm525_vm5, %v764_v19, %v808_v51  ;;  %v804_v30 = vrot.slane %v740_v24, %v5875_v45 }
 0x2ed   :  { %v810_v59 = vsel %vm527_vm6, %v768_v20, %v809_v58  ;;  %v776_v17 = vrot.slane %v719_v54, %v5875_v45 }
 0x2ee   :  { %v811_v60 = vsel %vm529_vm7, %v772_v52, %v810_v59 }
 0x2ef   :  { %v821_v63 = vsel %vm540_vm8, %v811_v60, 0.0 }
 0x2f0   :  { %v722_v0 = vpop.permute.xlu1 %721  ;;  %822 = vadd.xlane.f32.xlu1 %v821_v63 }
 0x2f1   :  { %v780_v43 = vrot.slane %v722_v0, %v5875_v45 }
 0x2f3   :  { %v812_v38 = vsel %vm517_vm1, %v780_v43, %v776_v17  ;;  %v146_v17 = vld [vmem:[#allocation8 + $0x30] sm:$0xff] }
 0x2f4   :  { %v725_v4 = vpop.permute.xlu1 %724 }
 0x2f5   :  { %v784_v15 = vrot.slane %v725_v4, %v5875_v45 }
 0x2f7   :  { %v813_v49 = vsel %vm519_vm2, %v784_v15, %v812_v38  ;;  %v107_v38 = vld [vmem:[#allocation5 + $0x8] sm:$0xff] }
 0x2f8   :  { %v728_v16 = vpop.permute.xlu1 %727 }
 0x2f9   :  { %v788_v44 = vrot.slane %v728_v16, %v5875_v45 }
 0x2fb   :  { %v814_v27 = vsel %vm521_vm3, %v788_v44, %v813_v49 }
 0x2fc   :  { %v731_v12 = vpop.permute.xlu1 %730 }
 0x2fd   :  { %v792_v23 = vrot.slane %v731_v12, %v5875_v45 }
 0x2ff   :  { %v815_v39 = vsel %vm523_vm4, %v792_v23, %v814_v27  ;;  %v106_v23 = vld [vmem:[#allocation5] sm:$0xff] }
 0x300   :  { %v734_v18 = vpop.permute.xlu1 %733  ;;  %5079 = vmatprep.mubr.msk.f32.mxu1 %vm153_vm0, %v106_v23  ;;  %v110_v27 = vld [vmem:[#allocation5 + $0x20] sm:$0xff]  ;;  %v129_v23 = vld [vmem:[#allocation5 + $0xb8] sm:$0xff] }
 0x301   :  { %v796_v25 = vrot.slane %v734_v18, %v5875_v45 }
 0x303   :  { %v816_v31 = vsel %vm525_vm5, %v796_v25, %v815_v39  ;;  %v109_v25 = vld [vmem:[#allocation5 + $0x18] sm:$0xff] }
 0x304   :  { %v737_v28 = vpop.permute.xlu1 %736 }
 0x305   :  { %v800_v1 = vrot.slane %v737_v28, %v5875_v45  ;;  %v111_v28 = vld [vmem:[#allocation5 + $0x28] sm:$0xff] }
 0x307   :  { %v817_v19 = vsel %vm527_vm6, %v800_v1, %v816_v31 }
 0x308   :  { %v818_v33 = vsel %vm529_vm7, %v804_v30, %v817_v19  ;;  %v112_v19 = vld [vmem:[#allocation5 + $0x30] sm:$0xff] }
 0x309   :  { %v824_v20 = vsel %vm540_vm8, %v818_v33, 0.0  ;;  %v113_v33 = vld [vmem:[#allocation5 + $0x38] sm:$0xff] }
 0x30a   :  { %825 = vadd.xlane.f32.xlu0 %v824_v20 }
 0x379   :  { %v823_v51 = vpop.xlane.xlu1 %822 }
 0x37a   :  { %5247 = vrcp.f32 %v823_v51 }
 0x387   :  { %v5248_v52 = vpop.eup %5247 }
 0x388   :  { %v838_v54 = vrot.slane %v5248_v52, %v5828_v35  ;;  %v834_v58 = vrot.slane %v5248_v52, %v5817_v22  ;;  %v842_v63 = vrot.slane %v5248_v52, %v5942_v34  ;;  %v846_v0 = vrot.slane %v5248_v52, %v5948_v37 }
 0x389   :  { %v850_v12 = vrot.slane %v5248_v52, %v5957_v53  ;;  %v862_v31 = vrot.slane %v5248_v52, %v5965_v61 }
 0x38a   :  { %v912_v59 = vmul.f32 %v5982_v32, %v838_v54  ;;  %v911_v60 = vmul.f32 %v5978_v29, %v834_v58  ;;  %v913_v4 = vmul.f32 %v5986_v55, %v842_v63  ;;  %v914_v16 = vmul.f32 %v5994_v46, %v846_v0  ;;  %v147_v29 = vld [vmem:[#allocation8 + $0x38] sm:$0xff]  ;;  %v145_v46 = vld [vmem:[#allocation8 + $0x28] sm:$0xff] }
 0x38b   :  { %v915_v43 = vmul.f32 %v6002_v56, %v850_v12  ;;  %v854_v32 = vrot.slane %v5248_v52, %v5945_v36  ;;  %5071 = vmatprep.subr.mxu1 %v147_v29  ;;  %v858_v55 = vrot.slane %v5248_v52, %v5951_v47  ;;  %v144_v56 = vld [vmem:[#allocation8 + $0x20] sm:$0xff]  ;;  %v918_v51 = vmul.f32 %v6006_v62, %v862_v31  ;;  %v116_v62 = vld [vmem:[#allocation5 + $0x50] sm:$0xff]  ;;  %v152_v12 = vld [vmem:[#allocation8 + $0x58] sm:$0xff] }
 0x38c   :  { %934 = vperm.xlu1 %5182, %v912_v59   ;;  %929 = vperm.xlu0 %5181, %v911_v60   ;;  %v114_v52 = vld [vmem:[#allocation5 + $0x40] sm:$0xff]  ;;  %v115_v54 = vld [vmem:[#allocation5 + $0x48] sm:$0xff]  ;;  %v117_v60 = vld [vmem:[#allocation5 + $0x58] sm:$0xff] }
 0x38d   :  { %5072 = vmatpush3.msra.mxu1 %v147_v29  ;;  %v916_v44 = vmul.f32 %v5990_v48, %v854_v32  ;;  %v917_v18 = vmul.f32 %v5998_v57, %v858_v55  ;;  %v108_v48 = vld [vmem:[#allocation5 + $0x10] sm:$0xff]  ;;  %5127 = vmatprep.subr.mxu0 %v152_v12  ;;  %v126_v55 = vld [vmem:[#allocation5 + $0xa0] sm:$0xff] }
 0x38e   :  { %5073 = vmatprep.subr.mxu1 %v146_v17  ;;  %5128 = vmatpush3.msra.mxu0 %v152_v12  ;;  %v151_v29 = vld [vmem:[#allocation8 + $0x50] sm:$0xff] }
 0x38f   :  { %5074 = vmatpush3.msra.mxu1 %v146_v17  ;;  %5129 = vmatprep.subr.mxu0 %v151_v29  ;;  %v124_v17 = vld [vmem:[#allocation5 + $0x90] sm:$0xff] }
 0x390   :  { %939 = vperm.xlu1 %5182, %v913_v4   ;;  %944 = vperm.xlu0 %5181, %v914_v16  }
 0x391   :  { %5075 = vmatprep.subr.mxu1 %v145_v46  ;;  %5130 = vmatpush3.msra.mxu0 %v151_v29 }
 0x392   :  { %5076 = vmatpush3.msra.mxu1 %v145_v46  ;;  %v127_v46 = vld [vmem:[#allocation5 + $0xa8] sm:$0xff] }
 0x393   :  { %v826_v15 = vpop.xlane.xlu0 %825  ;;  %5077 = vmatprep.subr.mxu1 %v144_v56 }
 0x394   :  { %5249 = vrcp.f32 %v826_v15  ;;  %949 = vperm.xlu0 %5181, %v915_v43   ;;  %5078 = vmatpush3.msra.mxu1 %v144_v56  ;;  %v120_v43 = vld [vmem:[#allocation5 + $0x70] sm:$0xff]  ;;  %v122_v15 = vld [vmem:[#allocation5 + $0x80] sm:$0xff] }
 0x395   :  { %5080 = vmatmul.mubr.msk.f32.vlgmr.msra.gmra.mxu1 %vm153_vm0, %v107_v38  ;;  %v149_v56 = vld [vmem:[#allocation8 + $0x40] sm:$0xff] }
 0x396   :  { %5082 = vmatprep.mubr.msk.f32.mxu1 %vm153_vm0, %v108_v48  ;;  %v130_v38 = vld [vmem:[#allocation5 + $0xc0] sm:$0xff]  ;;  %v131_v48 = vld [vmem:[#allocation5 + $0xc8] sm:$0xff] }
 0x398   :  { %954 = vperm.xlu0 %5181, %v916_v44   ;;  %v125_v44 = vld [vmem:[#allocation5 + $0x98] sm:$0xff] }
 0x399   :  { %5083 = vmatmul.mubr.msk.f32.gmra.mxu1 %vm153_vm0, %v109_v25  ;;  %v132_v25 = vld [vmem:[#allocation5 + $0xd0] sm:$0xff] }
 0x39a   :  { %5085 = vmatprep.mubr.msk.f32.mxu1 %vm153_vm0, %v110_v27  ;;  %v136_v27 = vld [vmem:[#allocation5 + $0xf0] sm:$0xff] }
 0x39c   :  { %959 = vperm.xlu0 %5181, %v917_v18   ;;  %v128_v18 = vld [vmem:[#allocation5 + $0xb0] sm:$0xff] }
 0x39d   :  { %5086 = vmatmul.mubr.msk.f32.gmra.mxu1 %vm153_vm0, %v111_v28  ;;  %v137_v28 = vld [vmem:[#allocation5 + $0xf8] sm:$0xff] }
 0x39e   :  { %5088 = vmatprep.mubr.msk.f32.mxu1 %vm153_vm0, %v112_v19 }
 0x3a1   :  { %v5250_v24 = vpop.eup %5249  ;;  %5089 = vmatmul.mubr.msk.f32.gmra.mxu1 %vm153_vm0, %v113_v33 }
 0x3a2   :  { %v870_v49 = vrot.slane %v5250_v24, %v5828_v35  ;;  %v866_v57 = vrot.slane %v5250_v24, %v5817_v22  ;;  %v874_v30 = vrot.slane %v5250_v24, %v5942_v34  ;;  %5091 = vmatprep.mubr.msk.f32.mxu1 %vm153_vm0, %v114_v52  ;;  %v886_v0 = vrot.slane %v5250_v24, %v5945_v36 }
 0x3a3   :  { %v890_v16 = vrot.slane %v5250_v24, %v5951_v47 }
 0x3a4   :  { %v920_v39 = vmul.f32 %v6019_v13, %v870_v49  ;;  %v919_v1 = vmul.f32 %v6010_v50, %v866_v57  ;;  %v921_v20 = vmul.f32 %v6022_v40, %v874_v30  ;;  %v878_v13 = vrot.slane %v5250_v24, %v5948_v37  ;;  %v134_v49 = vld [vmem:[#allocation5 + $0xe0] sm:$0xff]  ;;  %v135_v57 = vld [vmem:[#allocation5 + $0xe8] sm:$0xff] }
 0x3a5   :  { %v894_v50 = vrot.slane %v5250_v24, %v5965_v61  ;;  %v882_v40 = vrot.slane %v5250_v24, %v5957_v53  ;;  %5092 = vmatmul.mubr.msk.f32.gmra.mxu1 %vm153_vm0, %v115_v54  ;;  %v924_v4 = vmul.f32 %v6031_v26, %v886_v0  ;;  %v925_v32 = vmul.f32 %v6034_v14, %v890_v16  ;;  %v123_v26 = vld [vmem:[#allocation5 + $0x88] sm:$0xff]  ;;  %v133_v24 = vld [vmem:[#allocation5 + $0xd8] sm:$0xff] }
 0x3a6   :  { %974 = vperm.xlu1 %5182, %v920_v39   ;;  %969 = vperm.xlu0 %5181, %v919_v1   ;;  %v922_v58 = vmul.f32 %v6025_v3, %v878_v13  ;;  %v118_v3 = vld [vmem:[#allocation5 + $0x60] sm:$0xff]  ;;  %v150_v14 = vld [vmem:[#allocation8 + $0x48] sm:$0xff] }
 0x3a7   :  { %v926_v59 = vmul.f32 %v6014_v11, %v894_v50  ;;  %5094 = vmatprep.mubr.msk.f32.mxu1 %vm153_vm0, %v116_v62  ;;  %v923_v63 = vmul.f32 %v6028_v41, %v882_v40  ;;  %v119_v11 = vld [vmem:[#allocation5 + $0x68] sm:$0xff]  ;;  %v121_v41 = vld [vmem:[#allocation5 + $0x78] sm:$0xff]  ;;  %5131 = vmatprep.subr.mxu0 %v150_v14 }
 0x3a8   :  { %5132 = vmatpush3.msra.mxu0 %v150_v14 }
 0x3a9   :  { %5095 = vmatmul.mubr.msk.f32.gmra.mxu1 %vm153_vm0, %v117_v60  ;;  %5133 = vmatprep.subr.mxu0 %v149_v56 }
 0x3aa   :  { %979 = vperm.xlu1 %5182, %v921_v20   ;;  %964 = vperm.xlu0 %5181, %v918_v51  }
 0x3ab   :  { %5097 = vmatprep.mubr.msk.f32.mxu1 %vm153_vm0, %v118_v3  ;;  %5134 = vmatpush3.msra.mxu0 %v149_v56 }
 0x3ad   :  { %5098 = vmatmul.mubr.msk.f32.gmra.mxu1 %vm153_vm0, %v119_v11 }
 0x3ae   :  { %984 = vperm.xlu1 %5182, %v922_v58   ;;  %1004 = vperm.xlu0 %5181, %v926_v59  }
 0x3af   :  { %5100 = vmatprep.mubr.msk.f32.mxu1 %vm153_vm0, %v120_v43 }
 0x3b1   :  { %5101 = vmatmul.mubr.msk.f32.gmra.mxu1 %vm153_vm0, %v121_v41 }
 0x3b2   :  { %989 = vperm.xlu1 %5182, %v923_v63   ;;  %5103 = vmatprep.mubr.msk.f32.mxu1 %vm153_vm0, %v122_v15 }
 0x3b5   :  { %5104 = vmatmul.mubr.msk.f32.gmra.mxu1 %vm153_vm0, %v123_v26 }
 0x3b6   :  { %994 = vperm.xlu1 %5182, %v924_v4   ;;  %5106 = vmatprep.mubr.msk.f32.mxu1 %vm153_vm0, %v124_v17 }
 0x3b9   :  { %5107 = vmatmul.mubr.msk.f32.gmra.mxu1 %vm153_vm0, %v125_v44 }
 0x3ba   :  { %999 = vperm.xlu1 %5182, %v925_v32   ;;  %5109 = vmatprep.mubr.msk.f32.mxu1 %vm153_vm0, %v126_v55 }
 0x3bd   :  { %5110 = vmatmul.mubr.msk.f32.gmra.mxu1 %vm153_vm0, %v127_v46 }
 0x3be   :  { %5112 = vmatprep.mubr.msk.f32.mxu1 %vm153_vm0, %v128_v18 }
 0x3c1   :  { %5113 = vmatmul.mubr.msk.f32.gmra.mxu1 %vm153_vm0, %v129_v23 }
 0x3c2   :  { %5115 = vmatprep.mubr.msk.f32.mxu1 %vm153_vm0, %v130_v38 }
 0x3c5   :  { %5116 = vmatmul.mubr.msk.f32.gmra.mxu1 %vm153_vm0, %v131_v48 }
 0x3c6   :  { %5118 = vmatprep.mubr.msk.f32.mxu1 %vm153_vm0, %v132_v25 }
 0x3c9   :  { %5119 = vmatmul.mubr.msk.f32.gmra.mxu1 %vm153_vm0, %v133_v24  ;;  %v5527_v24 = vld [vmem:[#allocation2 + $0x48] sm:$0xff] }
 0x3ca   :  { %5121 = vmatprep.mubr.msk.f32.mxu1 %vm153_vm0, %v134_v49 }
 0x3cd   :  { %5122 = vmatmul.mubr.msk.f32.gmra.mxu1 %vm153_vm0, %v135_v57  ;;  %v5528_v57 = vld [vmem:[#allocation2 + $0x40] sm:$0xff] }
 0x3ce   :  { %5124 = vmatprep.mubr.msk.f32.mxu1 %vm153_vm0, %v136_v27 }
 0x3d1   :  { %5125 = vmatmul.mubr.msk.f32.gmra.mxu1 %vm153_vm0, %v137_v28 }
 0x407   :  { %v935_v39 = vpop.permute.xlu1 %934  ;;  %v930_v1 = vpop.permute.xlu0 %929 }
 0x408   :  { %v1008_v30 = vmul.f32 %v935_v39, %v5780_v5  ;;  %v1007_v31 = vmul.f32 %v930_v1, %v5776_v2 }
 0x40a   :  { %v1030_v51 = vsel %vm153_vm0, %v1008_v30, 0.0  ;;  %v1023_v13 = vsel %vm153_vm0, %v1007_v31, 0.0 }
 0x40b   :  { %v940_v19 = vpop.permute.xlu1 %939  ;;  %v945_v33 = vpop.permute.xlu0 %944  ;;  %v1031_v54 = vrot.slane %v1030_v51, 4  ;;  %v1024_v59 = vrot.slane %v1023_v13, 4 }
 0x40c   :  { %v1009_v20 = vmul.f32 %v940_v19, %v5782_v6  ;;  %v1010_v52 = vmul.f32 %v945_v33, %v5788_v7 }
 0x40d   :  { %v1032_v6 = vadd.f32 %v1031_v54, %v1030_v51  ;;  %v1025_v63 = vadd.f32 %v1024_v59, %v1023_v13 }
 0x40e   :  { %v1037_v58 = vsel %vm153_vm0, %v1009_v20, 0.0  ;;  %v1044_v2 = vsel %vm153_vm0, %v1010_v52, 0.0  ;;  %v5529_v52 = vld [vmem:[#allocation2 + $0x50] sm:$0xff] }
 0x40f   :  { %v950_v50 = vpop.permute.xlu0 %949  ;;  %v1038_v62 = vrot.slane %v1037_v58, 4  ;;  %v1045_v3 = vrot.slane %v1044_v2, 4  ;;  %v1033_v12 = vrot.slane %v1032_v6, 2 }
 0x410   :  { %v1011_v40 = vmul.f32 %v950_v50, %v5790_v8  ;;  %v1026_v8 = vrot.slane %v1025_v63, 2 }
 0x411   :  { %v1039_v4 = vadd.f32 %v1038_v62, %v1037_v58  ;;  %v1046_v15 = vadd.f32 %v1045_v3, %v1044_v2  ;;  %v1034_v29 = vadd.f32 %v1033_v12, %v1032_v6  ;;  %v5530_v58 = vld [vmem:[#allocation2 + $0x38] sm:$0xff] }
 0x412   :  { %v1051_v0 = vsel %vm153_vm0, %v1011_v40, 0.0  ;;  %v1027_v44 = vadd.f32 %v1026_v8, %v1025_v63 }
 0x413   :  { %v955_v5 = vpop.permute.xlu0 %954  ;;  %v1052_v43 = vrot.slane %v1051_v0, 4  ;;  %v1047_v14 = vrot.slane %v1046_v15, 2  ;;  %v1035_v18 = vrot.slane %v1034_v29, 1 }
 0x414   :  { %v1012_v60 = vmul.f32 %v955_v5, %v5796_v9  ;;  %v1040_v9 = vrot.slane %v1039_v4, 2  ;;  %v1028_v48 = vrot.slane %v1027_v44, 1 }
 0x415   :  { %v1053_v17 = vadd.f32 %v1052_v43, %v1051_v0  ;;  %v1048_v28 = vadd.f32 %v1047_v14, %v1046_v15  ;;  %v1036_v31 = vadd.f32 %v1035_v18, %v1034_v29  ;;  %v5531_v43 = vld [vmem:[#allocation2 + $0x58] sm:$0xff] }
 0x416   :  { %v1058_v11 = vsel %vm153_vm0, %v1012_v60, 0.0  ;;  %v1041_v56 = vadd.f32 %v1040_v9, %v1039_v4  ;;  %v1029_v13 = vadd.f32 %v1028_v48, %v1027_v44  ;;  %v5533_v48 = vld [vmem:[#allocation2 + $0x60] sm:$0xff] }
 0x417   :  { %v960_v7 = vpop.permute.xlu0 %959  ;;  %v1059_v41 = vrot.slane %v1058_v11, 4  ;;  %v1054_v23 = vrot.slane %v1053_v17, 2  ;;  %v1049_v40 = vrot.slane %v1048_v28, 1 }
 0x418   :  { %v1013_v16 = vmul.f32 %v960_v7, %v5798_v10  ;;  %v1042_v1 = vrot.slane %v1041_v56, 1 }
 0x419   :  { %v1060_v55 = vadd.f32 %v1059_v41, %v1058_v11  ;;  %v1055_v19 = vadd.f32 %v1054_v23, %v1053_v17  ;;  %v5532_v41 = vld [vmem:[#allocation2 + $0x78] sm:$0xff]  ;;  %v1050_v15 = vadd.f32 %v1049_v40, %v1048_v28 }
 0x41a   :  { %v1065_v32 = vsel %vm153_vm0, %v1013_v16, 0.0  ;;  %v1043_v2 = vadd.f32 %v1042_v1, %v1041_v56  ;;  %v1472_v16 = vsel %vm517_vm1, %v1036_v31, %v1029_v13 }
 0x41b   :  { %v1066_v26 = vrot.slane %v1065_v32, 4  ;;  %v1061_v25 = vrot.slane %v1060_v55, 2  ;;  %v1056_v0 = vrot.slane %v1055_v19, 1 }
 0x41c   :  { %v1473_v17 = vsel %vm519_vm2, %v1043_v2, %v1472_v16 }
 0x41d   :  { %v1067_v46 = vadd.f32 %v1066_v26, %v1065_v32  ;;  %v1062_v50 = vadd.f32 %v1061_v25, %v1060_v55  ;;  %v1057_v14 = vadd.f32 %v1056_v0, %v1055_v19 }
 0x41f   :  { %v1068_v39 = vrot.slane %v1067_v46, 2  ;;  %v1063_v12 = vrot.slane %v1062_v50, 1 }
 0x421   :  { %v975_v38 = vpop.permute.xlu1 %974  ;;  %v970_v10 = vpop.permute.xlu0 %969  ;;  %v1069_v5 = vadd.f32 %v1068_v39, %v1067_v46 }
 0x422   :  { %v1016_v49 = vmul.f32 %v5527_v24, %v975_v38  ;;  %v1015_v27 = vmul.f32 %v5528_v57, %v970_v10  ;;  %v1064_v38 = vadd.f32 %v1063_v12, %v1062_v50  ;;  %v5534_v50 = vld [vmem:[#allocation2 + $0x68] sm:$0xff] }
 0x423   :  { %v1070_v26 = vrot.slane %v1069_v5, 1 }
 0x424   :  { %v1086_v30 = vsel %vm153_vm0, %v1016_v49, 0.0  ;;  %v1079_v33 = vsel %vm153_vm0, %v1015_v27, 0.0  ;;  %v1474_v27 = vsel %vm521_vm3, %v1050_v15, %v1473_v17 }
 0x425   :  { %v980_v20 = vpop.permute.xlu1 %979  ;;  %v965_v51 = vpop.permute.xlu0 %964  ;;  %v1087_v62 = vrot.slane %v1086_v30, 4  ;;  %v1080_v60 = vrot.slane %v1079_v33, 4  ;;  %v1071_v24 = vadd.f32 %v1070_v26, %v1069_v5 }
 0x426   :  { %v1017_v54 = vmul.f32 %v5529_v52, %v980_v20  ;;  %v1014_v59 = vmul.f32 %v5530_v58, %v965_v51  ;;  %v1475_v51 = vsel %vm523_vm4, %v1057_v14, %v1474_v27 }
 0x427   :  { %v1088_v9 = vadd.f32 %v1087_v62, %v1086_v30  ;;  %v1081_v44 = vadd.f32 %v1080_v60, %v1079_v33 }
 0x428   :  { %v1093_v6 = vsel %vm153_vm0, %v1017_v54, 0.0  ;;  %v1072_v63 = vsel %vm153_vm0, %v1014_v59, 0.0  ;;  %v1476_v54 = vsel %vm525_vm5, %v1064_v38, %v1475_v51 }
 0x429   :  { %v1094_v3 = vrot.slane %v1093_v6, 4  ;;  %v1073_v11 = vrot.slane %v1072_v63, 4  ;;  %v985_v7 = vpop.permute.xlu1 %984  ;;  %v1005_v4 = vpop.permute.xlu0 %1004  ;;  %v1089_v49 = vrot.slane %v1088_v9, 2  ;;  %v1082_v28 = vrot.slane %v1081_v44, 2 }
 0x42a   :  { %v1018_v8 = vmul.f32 %v5531_v43, %v985_v7  ;;  %v1022_v32 = vmul.f32 %v5532_v41, %v1005_v4  ;;  %v1477_v40 = vsel %vm527_vm6, %v1071_v24, %v1476_v54  ;;  %v5535_v4 = vld [vmem:[#allocation2 + $0x70] sm:$0xff] }
 0x42b   :  { %v1074_v29 = vadd.f32 %v1073_v11, %v1072_v63  ;;  %v1095_v46 = vadd.f32 %v1094_v3, %v1093_v6  ;;  %v1090_v5 = vadd.f32 %v1089_v49, %v1088_v9  ;;  %v1083_v62 = vadd.f32 %v1082_v28, %v1081_v44 }
 0x42c   :  { %v1100_v55 = vsel %vm153_vm0, %v1018_v8, 0.0  ;;  %v1128_v18 = vsel %vm153_vm0, %v1022_v32, 0.0 }
 0x42d   :  { %v1075_v56 = vrot.slane %v1074_v29, 2  ;;  %v990_v23 = vpop.permute.xlu1 %989  ;;  %v1101_v10 = vrot.slane %v1100_v55, 4  ;;  %v1129_v1 = vrot.slane %v1128_v18, 4  ;;  %v1096_v31 = vrot.slane %v1095_v46, 2 }
 0x42e   :  { %v1019_v25 = vmul.f32 %v5533_v48, %v990_v23  ;;  %v1091_v8 = vrot.slane %v1090_v5, 1  ;;  %v1084_v41 = vrot.slane %v1083_v62, 1 }
 0x42f   :  { %v1076_v57 = vadd.f32 %v1075_v56, %v1074_v29  ;;  %v1102_v39 = vadd.f32 %v1101_v10, %v1100_v55  ;;  %v1130_v2 = vadd.f32 %v1129_v1, %v1128_v18  ;;  %v1097_v6 = vadd.f32 %v1096_v31, %v1095_v46 }
 0x430   :  { %v1107_v30 = vsel %vm153_vm0, %v1019_v25, 0.0  ;;  %v1092_v46 = vadd.f32 %v1091_v8, %v1090_v5  ;;  %v1085_v56 = vadd.f32 %v1084_v41, %v1083_v62 }
 0x431   :  { %v1077_v19 = vrot.slane %v1076_v57, 1  ;;  %v1108_v33 = vrot.slane %v1107_v30, 4  ;;  %v995_v20 = vpop.permute.xlu1 %994  ;;  %v1103_v13 = vrot.slane %v1102_v39, 2  ;;  %v1131_v32 = vrot.slane %v1130_v2, 2 }
 0x432   :  { %v1020_v52 = vmul.f32 %v5534_v50, %v995_v20  ;;  %v1098_v26 = vrot.slane %v1097_v6, 1  ;;  %v1479_v49 = vsel %vm517_vm1, %v1092_v46, %v1085_v56 }
 0x433   :  { %v1109_v58 = vadd.f32 %v1108_v33, %v1107_v30  ;;  %v1078_v59 = vadd.f32 %v1077_v19, %v1076_v57  ;;  %v1104_v7 = vadd.f32 %v1103_v13, %v1102_v39  ;;  %v1132_v18 = vadd.f32 %v1131_v32, %v1130_v2 }
 0x434   :  { %v1114_v60 = vsel %vm153_vm0, %v1020_v52, 0.0  ;;  %v1099_v23 = vadd.f32 %v1098_v26, %v1097_v6 }
 0x435   :  { %v1110_v63 = vrot.slane %v1109_v58, 2  ;;  %v1115_v0 = vrot.slane %v1114_v60, 4  ;;  %v1000_v3 = vpop.permute.xlu1 %999  ;;  %v6162_v11 = vsel %vm529_vm7, %v1078_v59, %v1477_v40  ;;  %v1105_v17 = vrot.slane %v1104_v7, 1 }
 0x436   :  { %7812 = vst [vmem:[#allocation17_spill] sm:$0xff] %v6162_v11  ;;  %v1021_v16 = vmul.f32 %v5535_v4, %v1000_v3  ;;  %5135 = vmatprep.mubr.msk.f32.mxu0 %vm153_vm0, %v6162_v11  ;;  %v1133_v57 = vrot.slane %v1132_v18, 1  ;;  %v1480_v28 = vsel %vm519_vm2, %v1099_v23, %v1479_v49  ;;  %v5709_v4 = vmov 1966171168  }
 0x437   :  { %v1111_v12 = vadd.f32 %v1110_v63, %v1109_v58  ;;  %v1116_v43 = vadd.f32 %v1115_v0, %v1114_v60  ;;  %v1106_v48 = vadd.f32 %v1105_v17, %v1104_v7 }
 0x438   :  { %v1121_v15 = vsel %vm153_vm0, %v1021_v16, 0.0  ;;  %v1134_v19 = vadd.f32 %v1133_v57, %v1132_v18  ;;  %v1569_v16 = vunpack.c.l.s4 %v5709_v4 }
 0x439   :  { %v1117_v9 = vrot.slane %v1116_v43, 2  ;;  %v1122_v29 = vrot.slane %v1121_v15, 4  ;;  %v1112_v44 = vrot.slane %v1111_v12, 1  ;;  %v1481_v1 = vsel %vm521_vm3, %v1106_v48, %v1480_v28 }
 0x43b   :  { %v1118_v55 = vadd.f32 %v1117_v9, %v1116_v43  ;;  %v1123_v14 = vadd.f32 %v1122_v29, %v1121_v15  ;;  %v1113_v25 = vadd.f32 %v1112_v44, %v1111_v12  ;;  %v1570_v43 = vunpack.c.0.s8 %v1569_v16 }
 0x43d   :  { %v1119_v38 = vrot.slane %v1118_v55, 1  ;;  %v1124_v10 = vrot.slane %v1123_v14, 2  ;;  %v1482_v30 = vsel %vm523_vm4, %v1113_v25, %v1481_v1  ;;  %v6215_v41 = vsub.s32 %v1570_v43, %v5814_v21 }
 0x43f   :  { %v1125_v24 = vadd.f32 %v1124_v10, %v1123_v14  ;;  %v1120_v27 = vadd.f32 %v1119_v38, %v1118_v55  ;;  %7832 = vst [vmem:[#allocation37_spill] sm:$0xff] %v6215_v41 }
 0x441   :  { %v1126_v39 = vrot.slane %v1125_v24, 1  ;;  %v1483_v33 = vsel %vm525_vm5, %v1120_v27, %v1482_v30  ;;  %v5536_v30 = vld [vmem:[#allocation7] sm:$0x7] }
 0x443   :  { %v1127_v31 = vadd.f32 %v1126_v39, %v1125_v24 }
 0x445   :  { %v1484_v20 = vsel %vm527_vm6, %v1127_v31, %v1483_v33  ;;  %v6247_v31 = vrot.slane %v5536_v30, %v5942_v34 }
 0x446   :  { %v6174_v51 = vsel %vm529_vm7, %v1134_v19, %v1484_v20 }
 0x447   :  { %7813 = vst [vmem:[#allocation18_spill] sm:$0xff] %v6174_v51  ;;  %5136 = vmatmul.mubr.msk.f32.vlgmr.msra.gmra.mxu0 %vm153_vm0, %v6174_v51  ;;  %7838 = vst [vmem:[#allocation43_spill] sm:$0xff] %v6247_v31 }
 0x455   :  { %v6178_v13 = vpop.f32.mrf.mxu1 }
 0x456   :  { %7814 = vst [vmem:[#allocation19_spill] sm:$0xff] %v6178_v13 }
 0x457   :  { %v6180_v50 = vpop.f32.mrf.mxu1 }
 0x458   :  { %7815 = vst [vmem:[#allocation20_spill] sm:$0xff] %v6180_v50 }
 0x459   :  { %v6182_v52 = vpop.f32.mrf.mxu1 }
 0x45a   :  { %7816 = vst [vmem:[#allocation21_spill] sm:$0xff] %v6182_v52 }
 0x45b   :  { %v6184_v54 = vpop.f32.mrf.mxu1 }
 0x45c   :  { %7817 = vst [vmem:[#allocation22_spill] sm:$0xff] %v6184_v54 }
 0x45d   :  { %v6186_v58 = vpop.f32.mrf.mxu1 }
 0x45e   :  { %7818 = vst [vmem:[#allocation23_spill] sm:$0xff] %v6186_v58 }
 0x45f   :  { %v6188_v59 = vpop.f32.mrf.mxu1 }
 0x460   :  { %7819 = vst [vmem:[#allocation24_spill] sm:$0xff] %v6188_v59 }
 0x461   :  { %v6190_v40 = vpop.f32.mrf.mxu1 }
 0x462   :  { %7820 = vst [vmem:[#allocation25_spill] sm:$0xff] %v6190_v40 }
 0x463   :  { %v6192_v5 = vpop.f32.mrf.mxu1 }
 0x464   :  { %7821 = vst [vmem:[#allocation26_spill] sm:$0xff] %v6192_v5 }
 0x465   :  { %v6194_v62 = vpop.f32.mrf.mxu1 }
 0x466   :  { %7822 = vst [vmem:[#allocation27_spill] sm:$0xff] %v6194_v62 }
 0x467   :  { %v6196_v2 = vpop.f32.mrf.mxu1 }
 0x468   :  { %7823 = vst [vmem:[#allocation28_spill] sm:$0xff] %v6196_v2 }
 0x469   :  { %v6198_v60 = vpop.f32.mrf.mxu1 }
 0x46a   :  { %7824 = vst [vmem:[#allocation29_spill] sm:$0xff] %v6198_v60 }
 0x46b   :  { %v6200_v6 = vpop.f32.mrf.mxu1 }
 0x46c   :  { %7825 = vst [vmem:[#allocation30_spill] sm:$0xff] %v6200_v6 }
 0x46d   :  { %v6202_v63 = vpop.f32.mrf.mxu1 }
 0x46e   :  { %7826 = vst [vmem:[#allocation31_spill] sm:$0xff] %v6202_v63 }
 0x46f   :  { %v6204_v0 = vpop.f32.mrf.mxu1 }
 0x470   :  { %7827 = vst [vmem:[#allocation32_spill] sm:$0xff] %v6204_v0 }
 0x471   :  { %v6206_v3 = vpop.f32.mrf.mxu1 }
 0x472   :  { %7828 = vst [vmem:[#allocation33_spill] sm:$0xff] %v6206_v3 }
 0x473   :  { %v6208_v7 = vpop.f32.mrf.mxu1 }
 0x474   :  { %7829 = vst [vmem:[#allocation34_spill] sm:$0xff] %v6208_v7 }
 0x475   :  { %v6210_v12 = vpop.f32.mrf.mxu1 }
 0x476   :  { %7830 = vst [vmem:[#allocation35_spill] sm:$0xff] %v6210_v12 }
 0x477   :  { %v6212_v8 = vpop.f32.mrf.mxu1 }
 0x478   :  { %7831 = vst [vmem:[#allocation36_spill] sm:$0xff] %v6212_v8 }
 0x479   :  { %v6217_v32 = vpop.f32.mrf.mxu1 }
 0x47a   :  { %7833 = vst [vmem:[#allocation38_spill] sm:$0xff] %v6217_v32 }
 0x47b   :  { %v6221_v17 = vpop.f32.mrf.mxu1 }
 0x47c   :  { %7834 = vst [vmem:[#allocation39_spill] sm:$0xff] %v6221_v17 }
 0x47d   :  { %v6225_v14 = vpop.f32.mrf.mxu1 }
 0x47e   :  { %7835 = vst [vmem:[#allocation40_spill] sm:$0xff] %v6225_v14 }
 0x47f   :  { %v6230_v10 = vpop.f32.mrf.mxu1 }
 0x480   :  { %7836 = vst [vmem:[#allocation41_spill] sm:$0xff] %v6230_v10 }
 0x481   :  { %v6237_v49 = vpop.f32.mrf.mxu1 }
 0x482   :  { %7837 = vst [vmem:[#allocation42_spill] sm:$0xff] %v6237_v49 }
 0x483   :  { %v6249_v19 = vpop.f32.mrf.mxu1 }
 0x484   :  { %7839 = vst [vmem:[#allocation44_spill] sm:$0xff] %v6249_v19 }
 0x507   :  { %v5137_v15 = vpop.f32.mrf.mxu0 }
 0x508   :  { %v1623_v26 = vrot.slane %v5137_v15, %v6215_v41  ;;  %v1616_v38 = vcombine.high %v5137_v15, %v5137_v15 }
 0x509   :  { %v1556_v29 = vpop.f32.mrf.mxu0 }
 0x50a   :  { %v1639_v9 = vrot.slane %v1623_v26, %v6215_v41  ;;  %v1574_v55 = vrot.slane %v1556_v29, %v6215_v41  ;;  %v1631_v46 = vcombine.high %v1623_v26, %v1623_v26  ;;  %v1630_v24 = vrot.slane %v1616_v38, %v6215_v41 }
 0x50b   :  { %v1567_v26 = vcombine.high %v1556_v29, %v1556_v29 }
 0x50c   :  { %v1700_v44 = vrot.slane %v1639_v9, %v5817_v22  ;;  %v1590_v23 = vrot.slane %v1574_v55, %v6215_v41  ;;  %v6233_v48 = vrot.slane %v1631_v46, %v6215_v41  ;;  %v1661_v57 = vcombine.high %v1639_v9, %v1639_v9 }
 0x50d   :  { %v6243_v39 = vrot.slane %v1630_v24, %v6215_v41  ;;  %v1582_v4 = vcombine.high %v1574_v55, %v1574_v55  ;;  %v6266_v29 = vrot.slane %v1567_v26, %v6215_v41 }
 0x50e   :  { %v1761_v56 = vadd.f32 %v1700_v44, %v6212_v8  ;;  %v1762_v18 = vadd.f32 %v6210_v12, %v1700_v44  ;;  %v1668_v25 = vrot.slane %v1590_v23, %v5817_v22  ;;  %v1704_v27 = vrot.slane %v6233_v48, %v5817_v22  ;;  %v6256_v44 = vpop.f32.mrf.mxu1 }
 0x50f   :  { %v1708_v33 = vrot.slane %v1661_v57, %v5817_v22  ;;  %v1716_v15 = vrot.slane %v6243_v39, %v5817_v22  ;;  %7840 = vst [vmem:[#allocation45_spill] sm:$0xff] %v6256_v44  ;;  %v6276_v30 = vrot.slane %v6266_v29, %v6215_v41 }
 0x510   :  { %5251 = vtanh.f32 %v1761_v56  ;;  %v1745_v28 = vadd.f32 %v1668_v25, %v6180_v50  ;;  %v1746_v1 = vadd.f32 %v6178_v13, %v1668_v25  ;;  %v1764_v20 = vadd.f32 %v6217_v32, %v1704_v27  ;;  %v6268_v25 = vpop.f32.mrf.mxu1 }
 0x511   :  { %5253 = vtanh.f32 %v1762_v18  ;;  %v1763_v16 = vadd.f32 %v1704_v27, %v6221_v17  ;;  %v1766_v46 = vadd.f32 %v6225_v14, %v1708_v33  ;;  %v6260_v56 = vrot.slane %v1582_v4, %v6215_v41  ;;  %7841 = vst [vmem:[#allocation46_spill] sm:$0xff] %v6268_v25 }
 0x512   :  { %5255 = vtanh.f32 %v1745_v28  ;;  %v1765_v18 = vadd.f32 %v1708_v33, %v6230_v10  ;;  %v1770_v57 = vadd.f32 %v6256_v44, %v1716_v15  ;;  %v1612_v27 = vcombine.high %v1590_v23, %v1590_v23 }
 0x513   :  { %5257 = vtanh.f32 %v1746_v1  ;;  %v1672_v28 = vrot.slane %v6260_v56, %v5817_v22  ;;  %v1769_v1 = vadd.f32 %v1716_v15, %v6268_v25  ;;  %v1632_v23 = vcombine.high %v1630_v24, %v1630_v24 }
 0x514   :  { %5259 = vtanh.f32 %v1764_v20  ;;  %v1676_v33 = vrot.slane %v1612_v27, %v5817_v22  ;;  %v1684_v15 = vrot.slane %v6276_v30, %v5817_v22  ;;  %v6293_v27 = vpop.f32.mrf.mxu1 }
 0x515   :  { %5261 = vtanh.f32 %v1763_v16  ;;  %v1748_v20 = vadd.f32 %v6182_v52, %v1672_v28  ;;  %v1747_v4 = vadd.f32 %v1672_v28, %v6184_v54  ;;  %v6290_v24 = vrot.slane %v1632_v23, %v6215_v41  ;;  %7842 = vst [vmem:[#allocation47_spill] sm:$0xff] %v6293_v27 }
 0x516   :  { %5263 = vtanh.f32 %v1766_v46  ;;  %v1754_v28 = vadd.f32 %v6194_v62, %v1684_v15 }
 0x517   :  { %5265 = vtanh.f32 %v1765_v18  ;;  %v1749_v18 = vadd.f32 %v1676_v33, %v6188_v59  ;;  %v1720_v23 = vrot.slane %v6290_v24, %v5817_v22 }
 0x518   :  { %5267 = vtanh.f32 %v1770_v57 }
 0x519   :  { %5269 = vtanh.f32 %v1769_v1 }
 0x51a   :  { %5271 = vtanh.f32 %v1748_v20 }
 0x51b   :  { %5273 = vtanh.f32 %v1747_v4 }
 0x51d   :  { %v5252_v43 = vpop.eup %5251 }
 0x51e   :  { %v5254_v9 = vpop.eup %5253  ;;  %v1829_v55 = vmul.f32 %v5252_v43, %v6247_v31  ;;  %v1663_v43 = vcombine.high %v6233_v48, %v6233_v48 }
 0x51f   :  { %v1830_v38 = vmul.f32 %v5254_v9, %v6247_v31  ;;  %v5256_v16 = vpop.eup %5255  ;;  %v1750_v9 = vadd.f32 %v6186_v58, %v1676_v33  ;;  %v1753_v33 = vadd.f32 %v1684_v15, %v6196_v2 }
 0x520   :  { %1877 = vadd.xlane.f32.xlu0 %v1829_v55  ;;  %v5258_v26 = vpop.eup %5257  ;;  %v1813_v46 = vmul.f32 %v5256_v16, %v6247_v31  ;;  %v1712_v48 = vrot.slane %v1663_v43, %v5817_v22 }
 0x521   :  { %1879 = vadd.xlane.f32.xlu1 %v1830_v38  ;;  %v5260_v55 = vpop.eup %5259  ;;  %v1814_v38 = vmul.f32 %v5258_v26, %v6247_v31  ;;  %5275 = vtanh.f32 %v1750_v9  ;;  %v6302_v26 = vpop.f32.mrf.mxu1  ;;  %v1662_v9 = vcombine.high %v6243_v39, %v6243_v39  ;;  %v1614_v39 = vcombine.high %v6260_v56, %v6260_v56 }
 0x522   :  { %v5262_v57 = vpop.eup %5261  ;;  %v1832_v1 = vmul.f32 %v5260_v55, %v6247_v31  ;;  %5277 = vtanh.f32 %v1749_v18  ;;  %v1768_v43 = vadd.f32 %v6237_v49, %v1712_v48  ;;  %7843 = vst [vmem:[#allocation48_spill] sm:$0xff] %v6302_v26  ;;  %v1767_v55 = vadd.f32 %v1712_v48, %v6249_v19 }
 0x523   :  { %v5264_v20 = vpop.eup %5263  ;;  %v1831_v4 = vmul.f32 %v5262_v57, %v6247_v31  ;;  %5279 = vtanh.f32 %v1754_v28  ;;  %v1772_v57 = vadd.f32 %v6293_v27, %v1720_v23  ;;  %v1583_v28 = vcombine.high %v6266_v29, %v6266_v29 }
 0x524   :  { %1847 = vadd.xlane.f32.xlu0 %v1814_v38  ;;  %v5266_v16 = vpop.eup %5265  ;;  %5281 = vtanh.f32 %v1753_v33  ;;  %v1680_v56 = vrot.slane %v1614_v39, %v5817_v22 }
 0x525   :  { %1845 = vadd.xlane.f32.xlu1 %v1813_v46  ;;  %v1834_v46 = vmul.f32 %v5264_v20, %v6247_v31  ;;  %v5268_v15 = vpop.eup %5267  ;;  %v1833_v18 = vmul.f32 %v5266_v16, %v6247_v31  ;;  %5283 = vtanh.f32 %v1768_v43  ;;  %v1724_v20 = vrot.slane %v1662_v9, %v5817_v22 }
 0x526   :  { %v5270_v38 = vpop.eup %5269  ;;  %v1838_v48 = vmul.f32 %v5268_v15, %v6247_v31  ;;  %5285 = vtanh.f32 %v1767_v55  ;;  %v1611_v29 = vrot.slane %v1583_v28, %v6215_v41  ;;  %v1613_v28 = vcombine.high %v6276_v30, %v6276_v30 }
 0x527   :  { %v5272_v33 = vpop.eup %5271  ;;  %v1837_v16 = vmul.f32 %v5270_v38, %v6247_v31  ;;  %5287 = vtanh.f32 %v1772_v57  ;;  %v1752_v39 = vadd.f32 %v6190_v40, %v1680_v56 }
 0x528   :  { %1881 = vadd.xlane.f32.xlu0 %v1831_v4  ;;  %v1771_v4 = vadd.f32 %v1720_v23, %v6302_v26  ;;  %v1816_v9 = vmul.f32 %v5272_v33, %v6247_v31  ;;  %v1688_v57 = vrot.slane %v1611_v29, %v5817_v22  ;;  %v1692_v30 = vrot.slane %v1613_v28, %v5817_v22 }
 0x529   :  { %1883 = vadd.xlane.f32.xlu1 %v1832_v1  ;;  %v6314_v1 = vpop.f32.mrf.mxu1  ;;  %v1664_v28 = vcombine.high %v6290_v24, %v6290_v24 }
 0x52a   :  { %7844 = vst [vmem:[#allocation49_spill] sm:$0xff] %v6314_v1  ;;  %v1774_v43 = vadd.f32 %v6314_v1, %v1724_v20  ;;  %5289 = vtanh.f32 %v1771_v4  ;;  %v1751_v4 = vadd.f32 %v1680_v56, %v6192_v5 }
 0x52c   :  { %1885 = vadd.xlane.f32.xlu0 %v1833_v18  ;;  %v6323_v18 = vpop.f32.mrf.mxu1  ;;  %5291 = vtanh.f32 %v1774_v43 }
 0x52d   :  { %1887 = vadd.xlane.f32.xlu1 %v1834_v46  ;;  %v5274_v46 = vpop.eup %5273  ;;  %7845 = vst [vmem:[#allocation50_spill] sm:$0xff] %v6323_v18  ;;  %v1773_v23 = vadd.f32 %v1724_v20, %v6323_v18 }
 0x52e   :  { %v5276_v15 = vpop.eup %5275  ;;  %v1815_v55 = vmul.f32 %v5274_v46, %v6247_v31  ;;  %v1615_v46 = vcombine.high %v1611_v29, %v1611_v29  ;;  %v1758_v29 = vadd.f32 %v6202_v63, %v1692_v30 }
 0x52f   :  { %v5278_v38 = vpop.eup %5277  ;;  %5293 = vtanh.f32 %v1773_v23 }
 0x530   :  { %1893 = vadd.xlane.f32.xlu0 %v1837_v16  ;;  %v5280_v33 = vpop.eup %5279  ;;  %v1817_v20 = vmul.f32 %v5278_v38, %v6247_v31  ;;  %5295 = vtanh.f32 %v1752_v39  ;;  %v1696_v38 = vrot.slane %v1615_v46, %v5817_v22  ;;  %v1728_v46 = vrot.slane %v1664_v28, %v5817_v22 }
 0x531   :  { %1895 = vadd.xlane.f32.xlu1 %v1838_v48  ;;  %v1818_v48 = vmul.f32 %v5276_v15, %v6247_v31  ;;  %v5282_v16 = vpop.eup %5281  ;;  %v1755_v15 = vadd.f32 %v1688_v57, %v6200_v6  ;;  %5297 = vtanh.f32 %v1751_v4 }
 0x532   :  { %v5284_v43 = vpop.eup %5283  ;;  %v1821_v56 = vmul.f32 %v5282_v16, %v6247_v31  ;;  %v1760_v16 = vadd.f32 %v6206_v3, %v1696_v38  ;;  %v1945_v3 = vadd.s32 4294967288, %v5867_v42 }
 0x533   :  { %v5286_v23 = vpop.eup %5285  ;;  %v1836_v39 = vmul.f32 %v5284_v43, %v6247_v31 }
 0x534   :  { %1849 = vadd.xlane.f32.xlu0 %v1815_v55  ;;  %v1822_v55 = vmul.f32 %v5280_v33, %v6247_v31  ;;  %v1757_v33 = vadd.f32 %v1692_v30, %v6204_v0  ;;  %v6416_v6 = vsub.s32 %v1945_v3, %v5814_v21 }
 0x535   :  { %1851 = vadd.xlane.f32.xlu1 %v1816_v9  ;;  %v1756_v9 = vadd.f32 %v6198_v60, %v1688_v57  ;;  %v1835_v57 = vmul.f32 %v5286_v23, %v6247_v31 }
 0x537   :  { %5299 = vtanh.f32 %v1756_v9 }
 0x538   :  { %1853 = vadd.xlane.f32.xlu0 %v1817_v20  ;;  %5301 = vtanh.f32 %v1755_v15  ;;  %v6347_v20 = vpop.f32.mrf.mxu1 }
 0x539   :  { %1855 = vadd.xlane.f32.xlu1 %v1818_v48  ;;  %v5288_v48 = vpop.eup %5287  ;;  %7846 = vst [vmem:[#allocation51_spill] sm:$0xff] %v6347_v20  ;;  %5303 = vtanh.f32 %v1758_v29 }
 0x53a   :  { %v5290_v4 = vpop.eup %5289  ;;  %v1840_v24 = vmul.f32 %v5288_v48, %v6247_v31  ;;  %5305 = vtanh.f32 %v1757_v33  ;;  %v6354_v15 = vpop.f32.mrf.mxu1 }
 0x53b   :  { %v5292_v9 = vpop.eup %5291  ;;  %v1839_v30 = vmul.f32 %v5290_v4, %v6247_v31  ;;  %7847 = vst [vmem:[#allocation52_spill] sm:$0xff] %v6354_v15  ;;  %5307 = vtanh.f32 %v1760_v16  ;;  %v1775_v28 = vadd.f32 %v1728_v46, %v6354_v15 }
 0x53c   :  { %1861 = vadd.xlane.f32.xlu0 %v1821_v56  ;;  %v5294_v43 = vpop.eup %5293  ;;  %v1776_v56 = vadd.f32 %v6347_v20, %v1728_v46  ;;  %v1842_v23 = vmul.f32 %v5292_v9, %v6247_v31 }
 0x53d   :  { %1863 = vadd.xlane.f32.xlu1 %v1822_v55  ;;  %v1759_v55 = vadd.f32 %v1696_v38, %v6208_v7  ;;  %v5296_v29 = vpop.eup %5295 }
 0x53e   :  { %v5298_v38 = vpop.eup %5297  ;;  %v1820_v48 = vmul.f32 %v5296_v29, %v6247_v31 }
 0x53f   :  { %5309 = vtanh.f32 %v1759_v55 }
 0x540   :  { %1889 = vadd.xlane.f32.xlu0 %v1835_v57  ;;  %5311 = vtanh.f32 %v1776_v56  ;;  %v1819_v57 = vmul.f32 %v5298_v38, %v6247_v31 }
 0x541   :  { %1891 = vadd.xlane.f32.xlu1 %v1836_v39  ;;  %v1841_v39 = vmul.f32 %v5294_v43, %v6247_v31  ;;  %5313 = vtanh.f32 %v1775_v28 }
 0x544   :  { %1897 = vadd.xlane.f32.xlu0 %v1839_v30  ;;  %v5300_v33 = vpop.eup %5299 }
 0x545   :  { %1899 = vadd.xlane.f32.xlu1 %v1840_v24  ;;  %v5302_v4 = vpop.eup %5301  ;;  %v1824_v16 = vmul.f32 %v5300_v33, %v6247_v31 }
 0x546   :  { %v5304_v24 = vpop.eup %5303  ;;  %v1823_v46 = vmul.f32 %v5302_v4, %v6247_v31 }
 0x547   :  { %v5306_v9 = vpop.eup %5305  ;;  %v1826_v55 = vmul.f32 %v5304_v24, %v6247_v31 }
 0x548   :  { %1901 = vadd.xlane.f32.xlu0 %v1841_v39  ;;  %v5308_v30 = vpop.eup %5307  ;;  %v1825_v43 = vmul.f32 %v5306_v9, %v6247_v31 }
 0x549   :  { %1903 = vadd.xlane.f32.xlu1 %v1842_v23  ;;  %v1828_v23 = vmul.f32 %v5308_v30, %v6247_v31 }
 0x54c   :  { %1857 = vadd.xlane.f32.xlu0 %v1819_v57  ;;  %v5310_v56 = vpop.eup %5309 }
 0x54d   :  { %1859 = vadd.xlane.f32.xlu1 %v1820_v48  ;;  %v5312_v29 = vpop.eup %5311  ;;  %v1827_v28 = vmul.f32 %v5310_v56, %v6247_v31 }
 0x54e   :  { %v5314_v39 = vpop.eup %5313  ;;  %v1844_v38 = vmul.f32 %v5312_v29, %v6247_v31 }
 0x54f   :  { %v1843_v48 = vmul.f32 %v5314_v39, %v6247_v31 }
 0x550   :  { %1865 = vadd.xlane.f32.xlu0 %v1823_v46 }
 0x551   :  { %1867 = vadd.xlane.f32.xlu1 %v1824_v16 }
 0x554   :  { %1869 = vadd.xlane.f32.xlu0 %v1825_v43 }
 0x555   :  { %1871 = vadd.xlane.f32.xlu1 %v1826_v55 }
 0x558   :  { %1873 = vadd.xlane.f32.xlu0 %v1827_v28 }
 0x559   :  { %1875 = vadd.xlane.f32.xlu1 %v1828_v23 }
 0x55c   :  { %1905 = vadd.xlane.f32.xlu0 %v1843_v48 }
 0x55d   :  { %1907 = vadd.xlane.f32.xlu1 %v1844_v38 }
 0x5a9   :  { %v6372_v57 = vpop.xlane.xlu0 %1877 }
 0x5aa   :  { %v6370_v33 = vpop.xlane.xlu1 %1879  ;;  %v2018_v59 = vrot.slane %v6372_v57, %v5875_v45 }
 0x5ab   :  { %v2022_v49 = vrot.slane %v6370_v33, %v6416_v6 }
 0x5ad   :  { %v6376_v16 = vpop.xlane.xlu0 %1847 }
 0x5ae   :  { %v6374_v4 = vpop.xlane.xlu1 %1845  ;;  %v1949_v5 = vrot.slane %v6376_v16, %v6416_v6 }
 0x5af   :  { %v1944_v40 = vrot.slane %v6374_v4, %v5875_v45 }
 0x5b1   :  { %v6380_v46 = vpop.xlane.xlu0 %1881  ;;  %v1951_v58 = vsel %vm1950_vm9, %v1949_v5, %v1944_v40 }
 0x5b2   :  { %v6378_v24 = vpop.xlane.xlu1 %1883  ;;  %v2027_v42 = vrot.slane %v6380_v46, %v5875_v45 }
 0x5b3   :  { %v2031_v1 = vrot.slane %v6378_v24, %v6416_v6 }
 0x5b5   :  { %v6384_v55 = vpop.xlane.xlu0 %1885  ;;  %v2032_v52 = vsel %vm1950_vm9, %v2031_v1, %v2027_v42 }
 0x5b6   :  { %v6382_v9 = vpop.xlane.xlu1 %1887  ;;  %v2036_v25 = vrot.slane %v6384_v55, %v5875_v45 }
 0x5b7   :  { %v2040_v44 = vrot.slane %v6382_v9, %v6416_v6 }
 0x5b9   :  { %v6388_v43 = vpop.xlane.xlu0 %1893 }
 0x5ba   :  { %v6386_v30 = vpop.xlane.xlu1 %1895  ;;  %v2054_v8 = vrot.slane %v6388_v43, %v5875_v45 }
 0x5bd   :  { %v6392_v23 = vpop.xlane.xlu0 %1849 }
 0x5be   :  { %v6390_v56 = vpop.xlane.xlu1 %1851  ;;  %v1955_v3 = vrot.slane %v6392_v23, %v5875_v45 }
 0x5bf   :  { %v1959_v21 = vrot.slane %v6390_v56, %v6416_v6 }
 0x5c1   :  { %v6396_v28 = vpop.xlane.xlu0 %1853  ;;  %v1960_v10 = vsel %vm1950_vm9, %v1959_v21, %v1955_v3  ;;  %v2023_v21 = vsel %vm1950_vm9, %v2022_v49, %v2018_v59 }
 0x5c2   :  { %v6394_v29 = vpop.xlane.xlu1 %1855  ;;  %v1964_v27 = vrot.slane %v6396_v28, %v5875_v45  ;;  %v2087_v3 = vsel %vm517_vm1, %v1960_v10, %v1951_v58  ;;  %v2094_v50 = vsel %vm517_vm1, %v2032_v52, %v2023_v21  ;;  %v2058_v58 = vrot.slane %v6386_v30, %v6416_v6 }
 0x5c3   :  { %v1968_v26 = vrot.slane %v6394_v29, %v6416_v6 }
 0x5c5   :  { %v6400_v38 = vpop.xlane.xlu0 %1861  ;;  %v1969_v14 = vsel %vm1950_vm9, %v1968_v26, %v1964_v27 }
 0x5c6   :  { %v6398_v39 = vpop.xlane.xlu1 %1863  ;;  %v1982_v40 = vrot.slane %v6400_v38, %v5875_v45 }
 0x5c7   :  { %v1986_v17 = vrot.slane %v6398_v39, %v6416_v6 }
 0x5c9   :  { %v6404_v15 = vpop.xlane.xlu0 %1889  ;;  %v1987_v59 = vsel %vm1950_vm9, %v1986_v17, %v1982_v40 }
 0x5ca   :  { %v6402_v48 = vpop.xlane.xlu1 %1891  ;;  %v2045_v1 = vrot.slane %v6404_v15, %v5875_v45 }
 0x5cb   :  { %v2049_v5 = vrot.slane %v6402_v48, %v6416_v6 }
 0x5cd   :  { %v6408_v7 = vpop.xlane.xlu0 %1897  ;;  %v2050_v49 = vsel %vm1950_vm9, %v2049_v5, %v2045_v1 }
 0x5ce   :  { %v6406_v20 = vpop.xlane.xlu1 %1899 }
 0x5cf   :  { %v2067_v52 = vrot.slane %v6406_v20, %v6416_v6 }
 0x5d1   :  { %v6413_v63 = vpop.xlane.xlu0 %1901 }
 0x5d2   :  { %v6411_v0 = vpop.xlane.xlu1 %1903  ;;  %v2072_v17 = vrot.slane %v6413_v63, %v5875_v45 }
 0x5d3   :  { %v2076_v21 = vrot.slane %v6411_v0, %v6416_v6 }
 0x5d5   :  { %v6424_v18 = vpop.xlane.xlu0 %1857 }
 0x5d6   :  { %v6418_v60 = vpop.xlane.xlu1 %1859  ;;  %v1973_v62 = vrot.slane %v6424_v18, %v5875_v45 }
 0x5d7   :  { %v1977_v2 = vrot.slane %v6418_v60, %v6416_v6 }
 0x5d9   :  { %v6449_v54 = vpop.xlane.xlu0 %1865  ;;  %v1978_v42 = vsel %vm1950_vm9, %v1977_v2, %v1973_v62  ;;  %v2041_v62 = vsel %vm1950_vm9, %v2040_v44, %v2036_v25  ;;  %v2088_v2 = vsel %vm519_vm2, %v1969_v14, %v2087_v3  ;;  %v2063_v14 = vrot.slane %v6408_v7, %v5875_v45 }
 0x5da   :  { %v6442_v19 = vpop.xlane.xlu1 %1867  ;;  %v1991_v27 = vrot.slane %v6449_v54, %v5875_v45  ;;  %v2089_v10 = vsel %vm521_vm3, %v1978_v42, %v2088_v2  ;;  %v2095_v42 = vsel %vm519_vm2, %v2041_v62, %v2094_v50  ;;  %v2059_v50 = vsel %vm1950_vm9, %v2058_v58, %v2054_v8 }
 0x5db   :  { %v1995_v31 = vrot.slane %v6442_v19, %v6416_v6  ;;  %v2096_v3 = vsel %vm521_vm3, %v2050_v49, %v2095_v42  ;;  %v2068_v41 = vsel %vm1950_vm9, %v2067_v52, %v2063_v14 }
 0x5dc   :  { %v2097_v14 = vsel %vm523_vm4, %v2059_v50, %v2096_v3 }
 0x5dd   :  { %v6477_v13 = vpop.xlane.xlu0 %1869  ;;  %v1996_v44 = vsel %vm1950_vm9, %v1995_v31, %v1991_v27  ;;  %v2090_v27 = vsel %vm523_vm4, %v1987_v59, %v2089_v10  ;;  %v2077_v10 = vsel %vm1950_vm9, %v2076_v21, %v2072_v17 }
 0x5de   :  { %v6471_v26 = vpop.xlane.xlu1 %1871  ;;  %v2000_v12 = vrot.slane %v6477_v13, %v5875_v45  ;;  %v2091_v2 = vsel %vm525_vm5, %v1996_v44, %v2090_v27  ;;  %v2098_v44 = vsel %vm525_vm5, %v2068_v41, %v2097_v14 }
 0x5df   :  { %v2004_v32 = vrot.slane %v6471_v26, %v6416_v6  ;;  %v2099_v58 = vsel %vm527_vm6, %v2077_v10, %v2098_v44 }
 0x5e1   :  { %v6504_v5 = vpop.xlane.xlu0 %1873  ;;  %v2005_v1 = vsel %vm1950_vm9, %v2004_v32, %v2000_v12 }
 0x5e2   :  { %v6496_v25 = vpop.xlane.xlu1 %1875  ;;  %v2009_v31 = vrot.slane %v6504_v5, %v5875_v45  ;;  %v2092_v12 = vsel %vm527_vm6, %v2005_v1, %v2091_v2 }
 0x5e3   :  { %v2013_v40 = vrot.slane %v6496_v25, %v6416_v6 }
 0x5e5   :  { %v2014_v51 = vsel %vm1950_vm9, %v2013_v40, %v2009_v31  ;;  %v6521_v62 = vpop.xlane.xlu0 %1905 }
 0x5e6   :  { %v6514_v11 = vpop.xlane.xlu1 %1907  ;;  %v2093_v59 = vsel %vm529_vm7, %v2014_v51, %v2092_v12  ;;  %v2081_v49 = vrot.slane %v6521_v62, %v5875_v45 }
 0x5e7   :  { %v2085_v32 = vrot.slane %v6514_v11, %v6416_v6  ;;  %v2104_v52 = vsel %vm2103_vm10, %v2093_v59, -inf }
 0x5e8   :  { %2105 = vmax.xlane.f32.xlu0 %v2104_v52 }
 0x5e9   :  { %v2086_v8 = vsel %vm1950_vm9, %v2085_v32, %v2081_v49 }
 0x5ea   :  { %v2100_v40 = vsel %vm529_vm7, %v2086_v8, %v2099_v58 }
 0x5eb   :  { %v2107_v51 = vsel %vm2103_vm10, %v2100_v40, -inf }
 0x5ec   :  { %2108 = vmax.xlane.f32.xlu1 %v2107_v51 }
 0x671   :  { %v6563_v51 = vpop.xlane.xlu0 %2105 }
 0x675   :  { %v6534_v21 = vpop.xlane.xlu1 %2108 }
 0x676   :  { %v2147_v17 = vrot.slane %v6534_v21, %v5817_v22  ;;  %v2151_v1 = vrot.slane %v6534_v21, %v5828_v35  ;;  %v2155_v31 = vrot.slane %v6534_v21, %v5942_v34  ;;  %v2159_v50 = vrot.slane %v6534_v21, %v5948_v37 }
 0x677   :  { %v2163_v10 = vrot.slane %v6534_v21, %v5957_v53 }
 0x678   :  { %v2208_v42 = vsub.f32 %v6372_v57, %v2147_v17  ;;  %v2209_v41 = vsub.f32 %v6370_v33, %v2147_v17  ;;  %v2210_v27 = vsub.f32 %v6380_v46, %v2151_v1  ;;  %v2211_v2 = vsub.f32 %v6378_v24, %v2151_v1 }
 0x679   :  { %v2212_v32 = vsub.f32 %v6384_v55, %v2155_v31  ;;  %v2213_v57 = vsub.f32 %v6382_v9, %v2155_v31  ;;  %v2214_v46 = vsub.f32 %v6404_v15, %v2159_v50  ;;  %v2215_v24 = vsub.f32 %v6402_v48, %v2159_v50 }
 0x67a   :  { %v2256_v3 = vmul.f32 1.442695, %v2208_v42  ;;  %v2258_v12 = vmul.f32 1.442695, %v2209_v41  ;;  %v2260_v59 = vmul.f32 1.442695, %v2210_v27  ;;  %v2167_v55 = vrot.slane %v6534_v21, %v5945_v36 }
 0x67b   :  { %v2262_v33 = vmul.f32 1.442695, %v2211_v2  ;;  %v2264_v49 = vmul.f32 1.442695, %v2212_v32  ;;  %v2266_v52 = vmul.f32 1.442695, %v2213_v57  ;;  %v2216_v14 = vsub.f32 %v6388_v43, %v2163_v10 }
 0x67c   :  { %5315 = vpow2.f32 %v2256_v3  ;;  %v2268_v9 = vmul.f32 1.442695, %v2214_v46  ;;  %v2217_v44 = vsub.f32 %v6386_v30, %v2163_v10  ;;  %v2270_v8 = vmul.f32 1.442695, %v2215_v24 }
 0x67d   :  { %5317 = vpow2.f32 %v2258_v12  ;;  %v2171_v15 = vrot.slane %v6534_v21, %v5951_v47  ;;  %v2218_v58 = vsub.f32 %v6408_v7, %v2167_v55  ;;  %v2272_v48 = vmul.f32 1.442695, %v2216_v14 }
 0x67e   :  { %5319 = vpow2.f32 %v2260_v59  ;;  %v2219_v17 = vsub.f32 %v6406_v20, %v2167_v55  ;;  %v2274_v43 = vmul.f32 1.442695, %v2217_v44  ;;  %v2115_v30 = vrot.slane %v6563_v51, %v5817_v22 }
 0x67f   :  { %5321 = vpow2.f32 %v2262_v33  ;;  %v2220_v7 = vsub.f32 %v6413_v63, %v2171_v15  ;;  %v2276_v42 = vmul.f32 1.442695, %v2218_v58  ;;  %v2221_v31 = vsub.f32 %v6411_v0, %v2171_v15 }
 0x680   :  { %5323 = vpow2.f32 %v2264_v49  ;;  %v2278_v20 = vmul.f32 1.442695, %v2219_v17  ;;  %v2119_v3 = vrot.slane %v6563_v51, %v5828_v35  ;;  %v2193_v2 = vsub.f32 %v6376_v16, %v2115_v30 }
 0x681   :  { %5325 = vpow2.f32 %v2266_v52  ;;  %v2280_v63 = vmul.f32 1.442695, %v2220_v7  ;;  %v2192_v50 = vsub.f32 %v6374_v4, %v2115_v30  ;;  %v2282_v0 = vmul.f32 1.442695, %v2221_v31 }
 0x682   :  { %5327 = vpow2.f32 %v2268_v9  ;;  %v2123_v59 = vrot.slane %v6563_v51, %v5942_v34  ;;  %v2194_v57 = vsub.f32 %v6392_v23, %v2119_v3  ;;  %v2226_v16 = vmul.f32 1.442695, %v2193_v2 }
 0x683   :  { %5329 = vpow2.f32 %v2270_v8  ;;  %v2195_v10 = vsub.f32 %v6390_v56, %v2119_v3  ;;  %v2224_v4 = vmul.f32 1.442695, %v2192_v50  ;;  %v2127_v49 = vrot.slane %v6563_v51, %v5948_v37 }
 0x684   :  { %5331 = vpow2.f32 %v2272_v48  ;;  %v2196_v24 = vsub.f32 %v6396_v28, %v2123_v59  ;;  %v2228_v23 = vmul.f32 1.442695, %v2194_v57  ;;  %v2197_v55 = vsub.f32 %v6394_v29, %v2123_v59 }
 0x685   :  { %5333 = vpow2.f32 %v2274_v43  ;;  %v2230_v56 = vmul.f32 1.442695, %v2195_v10  ;;  %v2131_v9 = vrot.slane %v6563_v51, %v5957_v53  ;;  %v2198_v44 = vsub.f32 %v6424_v18, %v2127_v49 }
 0x686   :  { %5335 = vpow2.f32 %v2276_v42  ;;  %v2232_v28 = vmul.f32 1.442695, %v2196_v24  ;;  %v2199_v15 = vsub.f32 %v6418_v60, %v2127_v49  ;;  %v2234_v29 = vmul.f32 1.442695, %v2197_v55 }
 0x687   :  { %5337 = vpow2.f32 %v2278_v20  ;;  %v2135_v48 = vrot.slane %v6563_v51, %v5945_v36  ;;  %v2200_v17 = vsub.f32 %v6400_v38, %v2131_v9  ;;  %v2236_v18 = vmul.f32 1.442695, %v2198_v44 }
 0x688   :  { %5339 = vpow2.f32 %v2280_v63  ;;  %v2201_v30 = vsub.f32 %v6398_v39, %v2131_v9  ;;  %v2238_v60 = vmul.f32 1.442695, %v2199_v15  ;;  %v2139_v42 = vrot.slane %v6563_v51, %v5951_v47 }
 0x689   :  { %v6561_v40 = vpop.eup %5315  ;;  %5341 = vpow2.f32 %v2282_v0  ;;  %v2202_v31 = vsub.f32 %v6449_v54, %v2135_v48  ;;  %v2240_v38 = vmul.f32 1.442695, %v2200_v17  ;;  %v2203_v3 = vsub.f32 %v6442_v19, %v2135_v48 }
 0x68a   :  { %v6566_v1 = vpop.eup %5317  ;;  %2369 = vperm.xlu1 %5182, %v6561_v40   ;;  %5343 = vpow2.f32 %v2226_v16  ;;  %v2242_v39 = vmul.f32 1.442695, %v2201_v30  ;;  %v2143_v63 = vrot.slane %v6563_v51, %v5965_v61  ;;  %v2204_v50 = vsub.f32 %v6477_v13, %v2139_v42 }
 0x68b   :  { %2372 = vperm.xlu0 %5181, %v6566_v1   ;;  %v6573_v41 = vpop.eup %5319  ;;  %5345 = vpow2.f32 %v2224_v4  ;;  %v2244_v54 = vmul.f32 1.442695, %v2202_v31  ;;  %v2205_v59 = vsub.f32 %v6471_v26, %v2139_v42  ;;  %v2246_v19 = vmul.f32 1.442695, %v2203_v3 }
 0x68c   :  { %v6576_v27 = vpop.eup %5321  ;;  %5347 = vpow2.f32 %v2228_v23  ;;  %v2206_v16 = vsub.f32 %v6504_v5, %v2143_v63  ;;  %v2248_v51 = vmul.f32 1.442695, %v2204_v50  ;;  %v2175_v13 = vrot.slane %v6534_v21, %v5965_v61 }
 0x68d   :  { %v6583_v12 = vpop.eup %5323  ;;  %5349 = vpow2.f32 %v2230_v56  ;;  %v2207_v4 = vsub.f32 %v6496_v25, %v2143_v63  ;;  %v2250_v26 = vmul.f32 1.442695, %v2205_v59 }
 0x68e   :  { %2375 = vperm.xlu1 %5182, %v6573_v41   ;;  %v6586_v32 = vpop.eup %5325  ;;  %5351 = vpow2.f32 %v2232_v28  ;;  %v2252_v24 = vmul.f32 1.442695, %v2206_v16  ;;  %v2222_v5 = vsub.f32 %v6521_v62, %v2175_v13  ;;  %v2223_v55 = vsub.f32 %v6514_v11, %v2175_v13 }
 0x68f   :  { %2378 = vperm.xlu0 %5181, %v6576_v27   ;;  %v6593_v33 = vpop.eup %5327  ;;  %5353 = vpow2.f32 %v2234_v29  ;;  %v2254_v21 = vmul.f32 1.442695, %v2207_v4 }
 0x690   :  { %v6596_v46 = vpop.eup %5329  ;;  %5355 = vpow2.f32 %v2236_v18  ;;  %v2284_v25 = vmul.f32 1.442695, %v2222_v5  ;;  %v2286_v44 = vmul.f32 1.442695, %v2223_v55 }
 0x691   :  { %v6603_v52 = vpop.eup %5331  ;;  %5357 = vpow2.f32 %v2238_v60 }
 0x692   :  { %2381 = vperm.xlu1 %5182, %v6583_v12   ;;  %v6606_v14 = vpop.eup %5333  ;;  %5359 = vpow2.f32 %v2240_v38 }
 0x693   :  { %2384 = vperm.xlu0 %5181, %v6586_v32   ;;  %v6613_v8 = vpop.eup %5335  ;;  %5361 = vpow2.f32 %v2242_v39 }
 0x694   :  { %v6616_v58 = vpop.eup %5337  ;;  %5363 = vpow2.f32 %v2244_v54 }
 0x695   :  { %v6623_v43 = vpop.eup %5339  ;;  %5365 = vpow2.f32 %v2246_v19 }
 0x696   :  { %2387 = vperm.xlu1 %5182, %v6593_v33   ;;  %v6626_v7 = vpop.eup %5341  ;;  %5367 = vpow2.f32 %v2248_v51 }
 0x697   :  { %2390 = vperm.xlu0 %5181, %v6596_v46   ;;  %v6633_v20 = vpop.eup %5343  ;;  %5369 = vpow2.f32 %v2250_v26 }
 0x698   :  { %v6636_v2 = vpop.eup %5345  ;;  %5371 = vpow2.f32 %v2252_v24 }
 0x699   :  { %v6643_v0 = vpop.eup %5347  ;;  %5373 = vpow2.f32 %v2254_v21 }
 0x69a   :  { %2393 = vperm.xlu1 %5182, %v6603_v52   ;;  %v6646_v57 = vpop.eup %5349  ;;  %5375 = vpow2.f32 %v2284_v25 }
 0x69b   :  { %2396 = vperm.xlu0 %5181, %v6606_v14   ;;  %v6653_v10 = vpop.eup %5351  ;;  %5377 = vpow2.f32 %v2286_v44 }
 0x69c   :  { %7848 = vst [vmem:[#allocation53_spill] sm:$0xff] %v6653_v10  ;;  %v6656_v49 = vpop.eup %5353 }
 0x69d   :  { %v6661_v23 = vpop.eup %5355 }
 0x69e   :  { %2399 = vperm.xlu1 %5182, %v6613_v8   ;;  %7849 = vst [vmem:[#allocation54_spill] sm:$0xff] %v6661_v23  ;;  %v6664_v56 = vpop.eup %5357 }
 0x69f   :  { %2402 = vperm.xlu0 %5181, %v6616_v58   ;;  %7850 = vst [vmem:[#allocation55_spill] sm:$0xff] %v6664_v56  ;;  %v6668_v9 = vpop.eup %5359 }
 0x6a0   :  { %7851 = vst [vmem:[#allocation56_spill] sm:$0xff] %v6668_v9  ;;  %v6670_v28 = vpop.eup %5361 }
 0x6a1   :  { %7852 = vst [vmem:[#allocation57_spill] sm:$0xff] %v6670_v28  ;;  %v6674_v11 = vpop.eup %5363 }
 0x6a2   :  { %2405 = vperm.xlu1 %5182, %v6623_v43   ;;  %7853 = vst [vmem:[#allocation58_spill] sm:$0xff] %v6674_v11  ;;  %v6676_v62 = vpop.eup %5365 }
 0x6a3   :  { %2408 = vperm.xlu0 %5181, %v6626_v7   ;;  %7854 = vst [vmem:[#allocation59_spill] sm:$0xff] %v6676_v62  ;;  %v6680_v15 = vpop.eup %5367 }
 0x6a4   :  { %7855 = vst [vmem:[#allocation60_spill] sm:$0xff] %v6680_v15  ;;  %v6682_v29 = vpop.eup %5369 }
 0x6a5   :  { %7856 = vst [vmem:[#allocation61_spill] sm:$0xff] %v6682_v29  ;;  %v6686_v48 = vpop.eup %5371 }
 0x6a6   :  { %2324 = vperm.xlu1 %5182, %v6633_v20   ;;  %7857 = vst [vmem:[#allocation62_spill] sm:$0xff] %v6686_v48  ;;  %v6688_v17 = vpop.eup %5373 }
 0x6a7   :  { %2321 = vperm.xlu0 %5181, %v6636_v2   ;;  %7858 = vst [vmem:[#allocation63_spill] sm:$0xff] %v6688_v17  ;;  %v6692_v18 = vpop.eup %5375 }
 0x6a8   :  { %7859 = vst [vmem:[#allocation64_spill] sm:$0xff] %v6692_v18  ;;  %v6694_v30 = vpop.eup %5377 }
 0x6a9   :  { %7860 = vst [vmem:[#allocation65_spill] sm:$0xff] %v6694_v30 }
 0x6aa   :  { %2327 = vperm.xlu1 %5182, %v6643_v0  }
 0x6ab   :  { %2330 = vperm.xlu0 %5181, %v6646_v57  }
 0x6ae   :  { %2333 = vperm.xlu1 %5182, %v6653_v10  }
 0x6af   :  { %2336 = vperm.xlu0 %5181, %v6656_v49  }
 0x6b2   :  { %2339 = vperm.xlu1 %5182, %v6661_v23  }
 0x6b3   :  { %2342 = vperm.xlu0 %5181, %v6664_v56  }
 0x6b6   :  { %2345 = vperm.xlu1 %5182, %v6668_v9  }
 0x6b7   :  { %2348 = vperm.xlu0 %5181, %v6670_v28  }
 0x6ba   :  { %2351 = vperm.xlu1 %5182, %v6674_v11  }
 0x6bb   :  { %2354 = vperm.xlu0 %5181, %v6676_v62  }
 0x6be   :  { %2357 = vperm.xlu1 %5182, %v6680_v15  }
 0x6bf   :  { %2360 = vperm.xlu0 %5181, %v6682_v29  }
 0x6c2   :  { %2363 = vperm.xlu1 %5182, %v6686_v48  }
 0x6c3   :  { %2366 = vperm.xlu0 %5181, %v6688_v17  }
 0x6c6   :  { %2411 = vperm.xlu1 %5182, %v6692_v18  }
 0x6c7   :  { %2414 = vperm.xlu0 %5181, %v6694_v30  }
 0x705   :  { %v6698_v60 = vpop.permute.xlu1 %2369 }
 0x706   :  { %v6700_v42 = vpop.permute.xlu0 %2372  ;;  %v2491_v9 = vrot.slane %v6698_v60, %v5875_v45 }
 0x709   :  { %v2376_v31 = vpop.permute.xlu1 %2375 }
 0x70a   :  { %v2379_v38 = vpop.permute.xlu0 %2378  ;;  %v2500_v48 = vrot.slane %v2376_v31, %v5875_v45 }
 0x70b   :  { %v2504_v17 = vrot.slane %v2379_v38, %v6416_v6 }
 0x70d   :  { %v2382_v3 = vpop.permute.xlu1 %2381 }
 0x70e   :  { %v2385_v39 = vpop.permute.xlu0 %2384  ;;  %v2509_v61 = vrot.slane %v2382_v3, %v5875_v45 }
 0x70f   :  { %v2513_v15 = vrot.slane %v2385_v39, %v6416_v6 }
 0x711   :  { %v6702_v63 = vpop.permute.xlu1 %2387 }
 0x712   :  { %v6704_v50 = vpop.permute.xlu0 %2390 }
 0x715   :  { %v6706_v54 = vpop.permute.xlu1 %2393 }
 0x716   :  { %v6708_v59 = vpop.permute.xlu0 %2396 }
 0x719   :  { %v6710_v19 = vpop.permute.xlu1 %2399 }
 0x71a   :  { %v6712_v16 = vpop.permute.xlu0 %2402 }
 0x71d   :  { %v6714_v51 = vpop.permute.xlu1 %2405 }
 0x71e   :  { %v6716_v13 = vpop.permute.xlu0 %2408 }
 0x721   :  { %v2325_v4 = vpop.permute.xlu1 %2324 }
 0x722   :  { %v2322_v26 = vpop.permute.xlu0 %2321  ;;  %v2423_v31 = vrot.slane %v2325_v4, %v6416_v6 }
 0x723   :  { %v2419_v38 = vrot.slane %v2322_v26, %v5875_v45 }
 0x725   :  { %v2328_v24 = vpop.permute.xlu1 %2327 }
 0x726   :  { %v2331_v5 = vpop.permute.xlu0 %2330  ;;  %v2428_v29 = vrot.slane %v2328_v24, %v5875_v45  ;;  %v2495_v24 = vrot.slane %v6700_v42, %v6416_v6  ;;  %v2522_v42 = vrot.slane %v6704_v50, %v6416_v6 }
 0x727   :  { %v2432_v11 = vrot.slane %v2331_v5, %v6416_v6  ;;  %v2505_v5 = vsel %vm1950_vm9, %v2504_v17, %v2500_v48 }
 0x729   :  { %v2334_v21 = vpop.permute.xlu1 %2333  ;;  %v2433_v10 = vsel %vm1950_vm9, %v2432_v11, %v2428_v29  ;;  %v2424_v11 = vsel %vm1950_vm9, %v2423_v31, %v2419_v38  ;;  %v2536_v29 = vrot.slane %v6710_v19, %v5875_v45 }
 0x72a   :  { %v2337_v55 = vpop.permute.xlu0 %2336  ;;  %v2437_v28 = vrot.slane %v2334_v21, %v5875_v45 }
 0x72b   :  { %v2441_v23 = vrot.slane %v2337_v55, %v6416_v6  ;;  %v2514_v55 = vsel %vm1950_vm9, %v2513_v15, %v2509_v61  ;;  %v2527_v61 = vrot.slane %v6706_v54, %v5875_v45  ;;  %v2531_v15 = vrot.slane %v6708_v59, %v6416_v6 }
 0x72c   :  { %v2549_v59 = vrot.slane %v6716_v13, %v6416_v6 }
 0x72d   :  { %v2340_v25 = vpop.permute.xlu1 %2339  ;;  %v2442_v48 = vsel %vm1950_vm9, %v2441_v23, %v2437_v28  ;;  %v2560_v23 = vsel %vm517_vm1, %v2433_v10, %v2424_v11 }
 0x72e   :  { %v2343_v44 = vpop.permute.xlu0 %2342  ;;  %v2446_v3 = vrot.slane %v2340_v25, %v5875_v45  ;;  %v2561_v50 = vsel %vm519_vm2, %v2442_v48, %v2560_v23 }
 0x72f   :  { %v2450_v39 = vrot.slane %v2343_v44, %v6416_v6  ;;  %v2518_v44 = vrot.slane %v6702_v63, %v5875_v45  ;;  %v2545_v63 = vrot.slane %v6714_v51, %v5875_v45 }
 0x731   :  { %v2346_v18 = vpop.permute.xlu1 %2345 }
 0x732   :  { %v2349_v30 = vpop.permute.xlu0 %2348  ;;  %v2455_v60 = vrot.slane %v2346_v18, %v5875_v45 }
 0x733   :  { %v2459_v21 = vrot.slane %v2349_v30, %v6416_v6  ;;  %v2540_v30 = vrot.slane %v6712_v16, %v6416_v6  ;;  %v2496_v16 = vsel %vm1950_vm9, %v2495_v24, %v2491_v9 }
 0x735   :  { %v2352_v62 = vpop.permute.xlu1 %2351  ;;  %v2460_v28 = vsel %vm1950_vm9, %v2459_v21, %v2455_v60  ;;  %v2567_v21 = vsel %vm517_vm1, %v2505_v5, %v2496_v16 }
 0x736   :  { %v2355_v56 = vpop.permute.xlu0 %2354  ;;  %v2464_v4 = vrot.slane %v2352_v62, %v5875_v45  ;;  %v2451_v62 = vsel %vm1950_vm9, %v2450_v39, %v2446_v3  ;;  %v2523_v39 = vsel %vm1950_vm9, %v2522_v42, %v2518_v44  ;;  %v2550_v44 = vsel %vm1950_vm9, %v2549_v59, %v2545_v63 }
 0x737   :  { %v2468_v26 = vrot.slane %v2355_v56, %v6416_v6  ;;  %v2562_v19 = vsel %vm521_vm3, %v2451_v62, %v2561_v50 }
 0x738   :  { %v2563_v51 = vsel %vm523_vm4, %v2460_v28, %v2562_v19 }
 0x739   :  { %v2358_v25 = vpop.permute.xlu1 %2357  ;;  %v2469_v54 = vsel %vm1950_vm9, %v2468_v26, %v2464_v4  ;;  %v2532_v4 = vsel %vm1950_vm9, %v2531_v15, %v2527_v61  ;;  %v2568_v26 = vsel %vm519_vm2, %v2514_v55, %v2567_v21 }
 0x73a   :  { %v2473_v17 = vrot.slane %v2358_v25, %v5875_v45  ;;  %v2361_v18 = vpop.permute.xlu0 %2360  ;;  %v2564_v13 = vsel %vm525_vm5, %v2469_v54, %v2563_v51  ;;  %v2541_v25 = vsel %vm1950_vm9, %v2540_v30, %v2536_v29  ;;  %v2569_v24 = vsel %vm521_vm3, %v2523_v39, %v2568_v26 }
 0x73b   :  { %v2477_v56 = vrot.slane %v2361_v18, %v6416_v6  ;;  %v2570_v61 = vsel %vm523_vm4, %v2532_v4, %v2569_v24 }
 0x73c   :  { %v2571_v62 = vsel %vm525_vm5, %v2541_v25, %v2570_v61  ;;  %v7861_v25 = vld [vmem:[#allocation53_spill] sm:$0xff] }
 0x73d   :  { %v2364_v31 = vpop.permute.xlu1 %2363  ;;  %v2478_v10 = vsel %vm1950_vm9, %v2477_v56, %v2473_v17  ;;  %v2572_v15 = vsel %vm527_vm6, %v2550_v44, %v2571_v62 }
 0x73e   :  { %v2482_v38 = vrot.slane %v2364_v31, %v5875_v45  ;;  %v2367_v3 = vpop.permute.xlu0 %2366  ;;  %v2565_v9 = vsel %vm527_vm6, %v2478_v10, %v2564_v13 }
 0x73f   :  { %v2486_v60 = vrot.slane %v2367_v3, %v6416_v6 }
 0x741   :  { %v2412_v48 = vpop.permute.xlu1 %2411  ;;  %v2487_v17 = vsel %vm1950_vm9, %v2486_v60, %v2482_v38 }
 0x742   :  { %v2554_v42 = vrot.slane %v2412_v48, %v5875_v45  ;;  %v2415_v5 = vpop.permute.xlu0 %2414  ;;  %v2566_v18 = vsel %vm529_vm7, %v2487_v17, %v2565_v9  ;;  %v7863_v9 = vld [vmem:[#allocation54_spill] sm:$0xff] }
 0x743   :  { %v2558_v55 = vrot.slane %v2415_v5, %v6416_v6  ;;  %v2576_v11 = vsel %vm2103_vm10, %v2566_v18, 0.0  ;;  %v7866_v18 = vld [vmem:[#allocation59_spill] sm:$0xff] }
 0x744   :  { %2577 = vadd.xlane.f32.xlu1 %v2576_v11 }
 0x745   :  { %v2559_v56 = vsel %vm1950_vm9, %v2558_v55, %v2554_v42  ;;  %v7865_v42 = vld [vmem:[#allocation56_spill] sm:$0xff]  ;;  %v7867_v55 = vld [vmem:[#allocation58_spill] sm:$0xff] }
 0x746   :  { %v2573_v29 = vsel %vm529_vm7, %v2559_v56, %v2572_v15  ;;  %v7868_v56 = vld [vmem:[#allocation61_spill] sm:$0xff] }
 0x747   :  { %v2579_v23 = vsel %vm2103_vm10, %v2573_v29, 0.0  ;;  %v7869_v29 = vld [vmem:[#allocation60_spill] sm:$0xff] }
 0x748   :  { %2580 = vadd.xlane.f32.xlu0 %v2579_v23 }
 0x7cd   :  { %v2578_v38 = vpop.xlane.xlu1 %2577 }
 0x7d1   :  { %v2581_v28 = vpop.xlane.xlu0 %2580 }
 0x7d2   :  { %5379 = vrcp.f32 %v2581_v28  ;;  %v7870_v28 = vld [vmem:[#allocation16_spill] sm:$0xff] }
 0x7d3   :  { %5381 = vrcp.f32 %v2578_v38 }
 0x7df   :  { %v6792_v30 = vpop.eup %5379 }
 0x7e0   :  { %v2621_v63 = vrot.slane %v6792_v30, %v5817_v22  ;;  %v2625_v31 = vrot.slane %v6792_v30, %v5828_v35  ;;  %v2629_v10 = vrot.slane %v6792_v30, %v5942_v34  ;;  %v2633_v3 = vrot.slane %v6792_v30, %v5948_v37  ;;  %v5382_v60 = vpop.eup %5381 }
 0x7e1   :  { %v2637_v16 = vrot.slane %v6792_v30, %v5957_v53  ;;  %v2613_v62 = vrot.slane %v5382_v60, %v5951_v47 }
 0x7e2   :  { %v2683_v50 = vmul.f32 %v6566_v1, %v2621_v63  ;;  %v2682_v54 = vmul.f32 %v6561_v40, %v2621_v63  ;;  %v2685_v59 = vmul.f32 %v6576_v27, %v2625_v31  ;;  %v2684_v19 = vmul.f32 %v6573_v41, %v2625_v31  ;;  %v7872_v31 = vld [vmem:[#allocation62_spill] sm:$0xff] }
 0x7e3   :  { %v2687_v1 = vmul.f32 %v6586_v32, %v2629_v10  ;;  %v2686_v40 = vmul.f32 %v6583_v12, %v2629_v10  ;;  %v2689_v27 = vmul.f32 %v6596_v46, %v2633_v3  ;;  %v2688_v41 = vmul.f32 %v6593_v33, %v2633_v3  ;;  %v7873_v10 = vld [vmem:[#allocation65_spill] sm:$0xff]  ;;  %v7875_v3 = vld [vmem:[#allocation18_spill] sm:$0xff] }
 0x7e4   :  { %2785 = vperm.xlu0 %5181, %v2683_v50   ;;  %2780 = vperm.xlu1 %5182, %v2682_v54   ;;  %v2691_v39 = vmul.f32 %v6606_v14, %v2637_v16  ;;  %v2690_v32 = vmul.f32 %v6603_v52, %v2637_v16  ;;  %v2641_v12 = vrot.slane %v6792_v30, %v5945_v36  ;;  %v7871_v50 = vld [vmem:[#allocation63_spill] sm:$0xff]  ;;  %v3080_v16 = vld [vmem:[#allocation10 + $0x30] sm:$0xff] }
 0x7e5   :  { %v2645_v33 = vrot.slane %v6792_v30, %v5951_v47  ;;  %v2589_v52 = vrot.slane %v5382_v60, %v5817_v22  ;;  %v2679_v15 = vmul.f32 %v7868_v56, %v2613_v62  ;;  %v2678_v23 = vmul.f32 %v7869_v29, %v2613_v62 }
 0x7e6   :  { %v2693_v51 = vmul.f32 %v6616_v58, %v2641_v12  ;;  %v2692_v46 = vmul.f32 %v6613_v8, %v2641_v12  ;;  %v2593_v8 = vrot.slane %v5382_v60, %v5828_v35  ;;  %v2617_v63 = vrot.slane %v5382_v60, %v7870_v28  ;;  %v3076_v12 = vld [vmem:[#allocation10 + $0x10] sm:$0xff] }
 0x7e7   :  { %v2695_v21 = vmul.f32 %v6626_v7, %v2645_v33  ;;  %v2694_v14 = vmul.f32 %v6623_v43, %v2645_v33  ;;  %v2666_v4 = vmul.f32 %v6636_v2, %v2589_v52  ;;  %v2667_v58 = vmul.f32 %v6633_v20, %v2589_v52  ;;  %v7862_v20 = vld [vmem:[#allocation55_spill] sm:$0xff] }
 0x7e8   :  { %2795 = vperm.xlu0 %5181, %v2685_v59   ;;  %2790 = vperm.xlu1 %5182, %v2684_v19   ;;  %v2669_v13 = vmul.f32 %v6646_v57, %v2593_v8  ;;  %v2668_v26 = vmul.f32 %v6643_v0, %v2593_v8  ;;  %v2597_v7 = vrot.slane %v5382_v60, %v5942_v34  ;;  %v7864_v0 = vld [vmem:[#allocation57_spill] sm:$0xff]  ;;  %v6854_v33 = vld [vmem:[#allocation8 + $0x58] sm:$0xff] }
 0x7e9   :  { %v2601_v2 = vrot.slane %v5382_v60, %v5948_v37  ;;  %v2605_v57 = vrot.slane %v5382_v60, %v5957_v53  ;;  %v2681_v54 = vmul.f32 %v7871_v50, %v2617_v63  ;;  %v2680_v59 = vmul.f32 %v7872_v31, %v2617_v63 }
 0x7ea   :  { %v2671_v43 = vmul.f32 %v6656_v49, %v2597_v7  ;;  %v2670_v48 = vmul.f32 %v7861_v25, %v2597_v7  ;;  %v2609_v49 = vrot.slane %v5382_v60, %v5945_v36  ;;  %v2649_v19 = vrot.slane %v6792_v30, %v7870_v28  ;;  %v3079_v30 = vld [vmem:[#allocation10 + $0x28] sm:$0xff]  ;;  %v5540_v25 = vld [vmem:[#allocation5 + $0x98] sm:$0xff] }
 0x7eb   :  { %v2673_v17 = vmul.f32 %v7862_v20, %v2601_v2  ;;  %v2672_v24 = vmul.f32 %v7863_v9, %v2601_v2  ;;  %v2675_v44 = vmul.f32 %v7864_v0, %v2605_v57  ;;  %v2674_v5 = vmul.f32 %v7865_v42, %v2605_v57  ;;  %v5541_v2 = vld [vmem:[#allocation5 + $0x90] sm:$0xff] }
 0x7ec   :  { %2805 = vperm.xlu0 %5181, %v2687_v1   ;;  %2800 = vperm.xlu1 %5182, %v2686_v40   ;;  %v2677_v61 = vmul.f32 %v7866_v18, %v2609_v49  ;;  %v2676_v11 = vmul.f32 %v7867_v55, %v2609_v49  ;;  %v2697_v38 = vmul.f32 %v7873_v10, %v2649_v19  ;;  %v7874_v1 = vld [vmem:[#allocation64_spill] sm:$0xff] }
 0x7ed   :  { %v2696_v40 = vmul.f32 %v7874_v1, %v2649_v19 }
 0x7f0   :  { %2815 = vperm.xlu0 %5181, %v2689_v27   ;;  %2810 = vperm.xlu1 %5182, %v2688_v41   ;;  %v7876_v27 = vld [vmem:[#allocation17_spill] sm:$0xff]  ;;  %v3081_v41 = vld [vmem:[#allocation10 + $0x38] sm:$0xff] }
 0x7f1   :  { %5138 = vmatprep.subr.mxu0 %v3081_v41 }
 0x7f2   :  { %5139 = vmatpush3.msra.mxu0 %v3081_v41 }
 0x7f3   :  { %5140 = vmatprep.subr.mxu0 %v3080_v16 }
 0x7f4   :  { %2825 = vperm.xlu0 %5181, %v2691_v39   ;;  %2820 = vperm.xlu1 %5182, %v2690_v32   ;;  %v3078_v39 = vld [vmem:[#allocation10 + $0x20] sm:$0xff]  ;;  %v3077_v32 = vld [vmem:[#allocation10 + $0x18] sm:$0xff] }
 0x7f5   :  { %5141 = vmatpush3.msra.mxu0 %v3080_v16 }
 0x7f6   :  { %5142 = vmatprep.subr.mxu0 %v3079_v30 }
 0x7f7   :  { %5143 = vmatpush3.msra.mxu0 %v3079_v30 }
 0x7f8   :  { %2835 = vperm.xlu0 %5181, %v2693_v51   ;;  %2830 = vperm.xlu1 %5182, %v2692_v46   ;;  %v3075_v51 = vld [vmem:[#allocation10 + $0x8] sm:$0xff]  ;;  %v3074_v46 = vld [vmem:[#allocation10] sm:$0xff] }
 0x7f9   :  { %5144 = vmatprep.subr.mxu0 %v3078_v39 }
 0x7fa   :  { %5145 = vmatpush3.msra.mxu0 %v3078_v39  ;;  %v5546_v39 = vld [vmem:[#allocation5 + $0xc8] sm:$0xff] }
 0x7fb   :  { %5146 = vmatprep.subr.mxu0 %v3077_v32 }
 0x7fc   :  { %2845 = vperm.xlu0 %5181, %v2695_v21   ;;  %2840 = vperm.xlu1 %5182, %v2694_v14   ;;  %v5538_v14 = vld [vmem:[#allocation5 + $0x88] sm:$0xff] }
 0x7fd   :  { %5147 = vmatpush3.msra.mxu0 %v3077_v32 }
 0x7fe   :  { %5148 = vmatprep.subr.mxu0 %v3076_v12 }
 0x7ff   :  { %5149 = vmatpush3.msra.mxu0 %v3076_v12  ;;  %v5547_v12 = vld [vmem:[#allocation5 + $0xc0] sm:$0xff] }
 0x800   :  { %2700 = vperm.xlu0 %5181, %v2666_v4   ;;  %2705 = vperm.xlu1 %5182, %v2667_v58   ;;  %v5539_v4 = vld [vmem:[#allocation5 + $0x80] sm:$0xff] }
 0x801   :  { %5150 = vmatprep.subr.mxu0 %v3075_v51 }
 0x802   :  { %5151 = vmatpush3.msra.mxu0 %v3075_v51 }
 0x803   :  { %5152 = vmatprep.subr.mxu0 %v3074_v46 }
 0x804   :  { %2715 = vperm.xlu0 %5181, %v2669_v13   ;;  %2710 = vperm.xlu1 %5182, %v2668_v26  }
 0x805   :  { %5153 = vmatpush3.msra.mxu0 %v3074_v46 }
 0x806   :  { %5157 = vmatprep.subr.mxu0 %v6854_v33 }
 0x808   :  { %2725 = vperm.xlu0 %5181, %v2671_v43   ;;  %2720 = vperm.xlu1 %5182, %v2670_v48  }
 0x80c   :  { %2735 = vperm.xlu0 %5181, %v2673_v17   ;;  %2730 = vperm.xlu1 %5182, %v2672_v24  }
 0x810   :  { %2745 = vperm.xlu0 %5181, %v2675_v44   ;;  %2740 = vperm.xlu1 %5182, %v2674_v5   ;;  %v5542_v44 = vld [vmem:[#allocation5 + $0xa8] sm:$0xff]  ;;  %v5543_v5 = vld [vmem:[#allocation5 + $0xa0] sm:$0xff] }
 0x814   :  { %2755 = vperm.xlu0 %5181, %v2677_v61   ;;  %2750 = vperm.xlu1 %5182, %v2676_v11  }
 0x818   :  { %2765 = vperm.xlu0 %5181, %v2679_v15   ;;  %2760 = vperm.xlu1 %5182, %v2678_v23   ;;  %v5544_v15 = vld [vmem:[#allocation5 + $0xb8] sm:$0xff]  ;;  %v5545_v23 = vld [vmem:[#allocation5 + $0xb0] sm:$0xff] }
 0x81c   :  { %2775 = vperm.xlu0 %5181, %v2681_v54   ;;  %2770 = vperm.xlu1 %5182, %v2680_v59  }
 0x820   :  { %2855 = vperm.xlu0 %5181, %v2697_v38   ;;  %2850 = vperm.xlu1 %5182, %v2696_v40  }
 0x824   :  { %3068 = vrot.lane.b32.xlu0 %v7875_v3, %s5710_s2  ;;  %3066 = vrot.lane.b32.xlu1 %v7876_v27, %s5710_s2 }
 0x85f   :  { %v2786_v60 = vpop.permute.xlu0 %2785  ;;  %v2781_v21 = vpop.permute.xlu1 %2780 }
 0x860   :  { %v2875_v52 = vmul.f32 %v5538_v14, %v2786_v60  ;;  %v2874_v58 = vmul.f32 %v5539_v4, %v2781_v21  ;;  %v4511_v50 = vrot.slane %v2786_v60, %v6416_v6  ;;  %v4507_v31 = vrot.slane %v2781_v21, %v5875_v45 }
 0x862   :  { %v2963_v8 = vsel %vm153_vm0, %v2875_v52, 0.0  ;;  %v2962_v13 = vsel %vm153_vm0, %v2874_v58, 0.0  ;;  %v4512_v52 = vsel %vm1950_vm9, %v4511_v50, %v4507_v31 }
 0x863   :  { %v2796_v26 = vpop.permute.xlu0 %2795  ;;  %v2791_v7 = vpop.permute.xlu1 %2790  ;;  %v2964_v43 = vadd.f32 %v2963_v8, %v2962_v13 }
 0x864   :  { %v2877_v48 = vmul.f32 %v5540_v25, %v2796_v26  ;;  %v2876_v20 = vmul.f32 %v5541_v2, %v2791_v7  ;;  %v4520_v38 = vrot.slane %v2796_v26, %v6416_v6  ;;  %v4516_v1 = vrot.slane %v2791_v7, %v5875_v45 }
 0x865   :  { %v2965_v0 = vrot.slane %v2964_v43, 4 }
 0x866   :  { %v2972_v17 = vsel %vm153_vm0, %v2877_v48, 0.0  ;;  %v2971_v9 = vsel %vm153_vm0, %v2876_v20, 0.0  ;;  %v4521_v4 = vsel %vm1950_vm9, %v4520_v38, %v4516_v1  ;;  %v5549_v48 = vld [vmem:[#allocation5 + $0xd0] sm:$0xff] }
 0x867   :  { %v2806_v24 = vpop.permute.xlu0 %2805  ;;  %v2801_v57 = vpop.permute.xlu1 %2800  ;;  %v2973_v18 = vadd.f32 %v2972_v17, %v2971_v9  ;;  %v2966_v56 = vadd.f32 %v2965_v0, %v2964_v43  ;;  %v5548_v43 = vld [vmem:[#allocation5 + $0xd8] sm:$0xff] }
 0x868   :  { %v2879_v42 = vmul.f32 %v5542_v44, %v2806_v24  ;;  %v2878_v49 = vmul.f32 %v5543_v5, %v2801_v57  ;;  %v4529_v40 = vrot.slane %v2806_v24, %v6416_v6  ;;  %v4525_v30 = vrot.slane %v2801_v57, %v5875_v45 }
 0x869   :  { %v2974_v54 = vrot.slane %v2973_v18, 4  ;;  %v2967_v16 = vrot.slane %v2966_v56, 2  ;;  %v4583_v57 = vsel %vm517_vm1, %v4521_v4, %v4512_v52 }
 0x86a   :  { %v2981_v61 = vsel %vm153_vm0, %v2879_v42, 0.0  ;;  %v2980_v55 = vsel %vm153_vm0, %v2878_v49, 0.0  ;;  %v4530_v7 = vsel %vm1950_vm9, %v4529_v40, %v4525_v30 }
 0x86b   :  { %v2816_v11 = vpop.permute.xlu0 %2815  ;;  %v2811_v62 = vpop.permute.xlu1 %2810  ;;  %v2982_v59 = vadd.f32 %v2981_v61, %v2980_v55  ;;  %v2975_v46 = vadd.f32 %v2974_v54, %v2973_v18  ;;  %v2968_v26 = vadd.f32 %v2967_v16, %v2966_v56  ;;  %v4584_v44 = vsel %vm519_vm2, %v4530_v7, %v4583_v57  ;;  %v5550_v55 = vld [vmem:[#allocation5 + $0xe8] sm:$0xff]  ;;  %v5551_v56 = vld [vmem:[#allocation5 + $0xe0] sm:$0xff] }
 0x86c   :  { %v2881_v29 = vmul.f32 %v5544_v15, %v2816_v11  ;;  %v2880_v63 = vmul.f32 %v5545_v23, %v2811_v62  ;;  %v4538_v17 = vrot.slane %v2816_v11, %v6416_v6  ;;  %v4534_v9 = vrot.slane %v2811_v62, %v5875_v45 }
 0x86d   :  { %v2983_v60 = vrot.slane %v2982_v59, 4  ;;  %v2976_v20 = vrot.slane %v2975_v46, 2  ;;  %v2969_v15 = vrot.slane %v2968_v26, 1 }
 0x86e   :  { %v2990_v19 = vsel %vm153_vm0, %v2881_v29, 0.0  ;;  %v2989_v10 = vsel %vm153_vm0, %v2880_v63, 0.0  ;;  %v4539_v23 = vsel %vm1950_vm9, %v4538_v17, %v4534_v9 }
 0x86f   :  { %v2991_v3 = vadd.f32 %v2990_v19, %v2989_v10  ;;  %v6870_v27 = vpop.permute.xlu0 %2825  ;;  %v6872_v41 = vpop.permute.xlu1 %2820  ;;  %v2984_v0 = vadd.f32 %v2983_v60, %v2982_v59  ;;  %v6894_v29 = vadd.f32 %v2976_v20, %v2975_v46  ;;  %v5555_v20 = vld [vmem:[#allocation5 + $0x10] sm:$0xff] }
 0x870   :  { %v2883_v32 = vmul.f32 %v5546_v39, %v6870_v27  ;;  %v2882_v51 = vmul.f32 %v5547_v12, %v6872_v41  ;;  %v4547_v54 = vrot.slane %v6870_v27, %v6416_v6  ;;  %v4543_v10 = vrot.slane %v6872_v41, %v5875_v45  ;;  %v5552_v39 = vld [vmem:[#allocation5] sm:$0xff] }
 0x871   :  { %v2992_v58 = vrot.slane %v2991_v3, 4  ;;  %v2985_v50 = vrot.slane %v2984_v0, 2  ;;  %v4585_v41 = vsel %vm521_vm3, %v4539_v23, %v4584_v44  ;;  %v2978_v60 = vrot.slane %v6894_v29, 1 }
 0x872   :  { %v2999_v21 = vsel %vm153_vm0, %v2883_v32, 0.0  ;;  %v2998_v14 = vsel %vm153_vm0, %v2882_v51, 0.0  ;;  %v5553_v32 = vld [vmem:[#allocation5 + $0x8] sm:$0xff]  ;;  %v6911_v51 = vadd.f32 %v2969_v15, %v2968_v26 }
 0x873   :  { %v2836_v8 = vpop.permute.xlu0 %2835  ;;  %v2831_v13 = vpop.permute.xlu1 %2830  ;;  %v3000_v24 = vadd.f32 %v2999_v21, %v2998_v14  ;;  %v2993_v42 = vadd.f32 %v2992_v58, %v2991_v3  ;;  %v6915_v21 = vadd.f32 %v2985_v50, %v2984_v0  ;;  %v4548_v58 = vsel %vm1950_vm9, %v4547_v54, %v4543_v10  ;;  %v5557_v54 = vld [vmem:[#allocation5 + $0x20] sm:$0xff] }
 0x874   :  { %v2885_v25 = vmul.f32 %v5548_v43, %v2836_v8  ;;  %v2884_v2 = vmul.f32 %v5549_v48, %v2831_v13  ;;  %v4556_v38 = vrot.slane %v2836_v8, %v6416_v6  ;;  %v4552_v16 = vrot.slane %v2831_v13, %v5875_v45  ;;  %v5554_v48 = vld [vmem:[#allocation5 + $0x18] sm:$0xff] }
 0x875   :  { %v3001_v63 = vrot.slane %v3000_v24, 4  ;;  %v2994_v19 = vrot.slane %v2993_v42, 2  ;;  %v2987_v44 = vrot.slane %v6915_v21, 1 }
 0x876   :  { %v3008_v18 = vsel %vm153_vm0, %v2885_v25, 0.0  ;;  %v3007_v61 = vsel %vm153_vm0, %v2884_v2, 0.0  ;;  %v4557_v43 = vsel %vm1950_vm9, %v4556_v38, %v4552_v16 }
 0x877   :  { %v6886_v5 = vpop.permute.xlu0 %2845  ;;  %v6888_v49 = vpop.permute.xlu1 %2840  ;;  %v3009_v1 = vadd.f32 %v3008_v18, %v3007_v61  ;;  %v3002_v46 = vadd.f32 %v3001_v63, %v3000_v24  ;;  %v6919_v4 = vadd.f32 %v2994_v19, %v2993_v42  ;;  %v4586_v42 = vsel %vm523_vm4, %v4548_v58, %v4585_v41 }
 0x878   :  { %v2887_v11 = vmul.f32 %v5550_v55, %v6886_v5  ;;  %v2886_v62 = vmul.f32 %v5551_v56, %v6888_v49  ;;  %v4565_v24 = vrot.slane %v6886_v5, %v6416_v6  ;;  %v4561_v57 = vrot.slane %v6888_v49, %v5875_v45  ;;  %v5556_v49 = vld [vmem:[#allocation5 + $0x28] sm:$0xff] }
 0x879   :  { %v3010_v8 = vrot.slane %v3009_v1, 4  ;;  %v3003_v9 = vrot.slane %v3002_v46, 2  ;;  %v2996_v55 = vrot.slane %v6919_v4, 1  ;;  %v4587_v5 = vsel %vm525_vm5, %v4557_v43, %v4586_v42 }
 0x87a   :  { %v3017_v31 = vsel %vm153_vm0, %v2887_v11, 0.0  ;;  %v3016_v59 = vsel %vm153_vm0, %v2886_v62, 0.0  ;;  %v4566_v19 = vsel %vm1950_vm9, %v4565_v24, %v4561_v57 }
 0x87b   :  { %v6904_v40 = vpop.permute.xlu0 %2700  ;;  %v6906_v3 = vpop.permute.xlu1 %2705  ;;  %v3018_v30 = vadd.f32 %v3017_v31, %v3016_v59  ;;  %v3011_v11 = vadd.f32 %v3010_v8, %v3009_v1  ;;  %v6933_v59 = vadd.f32 %v3003_v9, %v3002_v46  ;;  %v5558_v8 = vld [vmem:[#allocation5 + $0x38] sm:$0xff]  ;;  %v6945_v43 = vsel %vm527_vm6, %v4566_v19, %v4587_v5 }
 0x87c   :  { %v2858_v27 = vmul.f32 %v5552_v39, %v6904_v40  ;;  %v2859_v12 = vmul.f32 %v5553_v32, %v6906_v3  ;;  %v4439_v58 = vrot.slane %v6906_v3, %v6416_v6 }
 0x87d   :  { %v3019_v25 = vrot.slane %v3018_v30, 4  ;;  %v3012_v32 = vrot.slane %v3011_v11, 2 }
 0x87e   :  { %v2890_v14 = vsel %vm153_vm0, %v2858_v27, 0.0  ;;  %v2891_v52 = vsel %vm153_vm0, %v2859_v12, 0.0 }
 0x87f   :  { %v2892_v13 = vadd.f32 %v2891_v52, %v2890_v14  ;;  %v2716_v7 = vpop.permute.xlu0 %2715  ;;  %v2711_v26 = vpop.permute.xlu1 %2710  ;;  %v3020_v63 = vadd.f32 %v3019_v25, %v3018_v30  ;;  %v4435_v30 = vrot.slane %v6904_v40, %v5875_v45  ;;  %v6954_v9 = vadd.f32 %v3012_v32, %v3011_v11 }
 0x880   :  { %v2861_v2 = vmul.f32 %v5554_v48, %v2716_v7  ;;  %v2860_v17 = vmul.f32 %v5555_v20, %v2711_v26  ;;  %v4448_v10 = vrot.slane %v2716_v7, %v6416_v6  ;;  %v4444_v1 = vrot.slane %v2711_v26, %v5875_v45  ;;  %v5559_v7 = vld [vmem:[#allocation5 + $0x30] sm:$0xff] }
 0x881   :  { %v2893_v0 = vrot.slane %v2892_v13, 4  ;;  %v3021_v52 = vrot.slane %v3020_v63, 2 }
 0x882   :  { %v2900_v18 = vsel %vm153_vm0, %v2861_v2, 0.0  ;;  %v2899_v61 = vsel %vm153_vm0, %v2860_v17, 0.0  ;;  %v4449_v20 = vsel %vm1950_vm9, %v4448_v10, %v4444_v1 }
 0x883   :  { %v2894_v56 = vadd.f32 %v2893_v0, %v2892_v13  ;;  %v2901_v62 = vadd.f32 %v2900_v18, %v2899_v61  ;;  %v2726_v15 = vpop.permute.xlu0 %2725  ;;  %v2721_v23 = vpop.permute.xlu1 %2720  ;;  %v6956_v61 = vadd.f32 %v3021_v52, %v3020_v63 }
 0x884   :  { %v2863_v50 = vmul.f32 %v5556_v49, %v2726_v15  ;;  %v2862_v31 = vmul.f32 %v5557_v54, %v2721_v23  ;;  %v4457_v25 = vrot.slane %v2726_v15, %v6416_v6  ;;  %v4453_v40 = vrot.slane %v2721_v23, %v5875_v45  ;;  %v5560_v15 = vld [vmem:[#allocation5 + $0x48] sm:$0xff]  ;;  %v5561_v23 = vld [vmem:[#allocation5 + $0x40] sm:$0xff] }
 0x885   :  { %v2902_v38 = vrot.slane %v2901_v62, 4  ;;  %v2895_v16 = vrot.slane %v2894_v56, 2 }
 0x886   :  { %v2909_v39 = vsel %vm153_vm0, %v2863_v50, 0.0  ;;  %v2908_v27 = vsel %vm153_vm0, %v2862_v31, 0.0  ;;  %v4458_v50 = vsel %vm1950_vm9, %v4457_v25, %v4453_v40 }
 0x887   :  { %v2903_v12 = vadd.f32 %v2902_v38, %v2901_v62  ;;  %v2910_v41 = vadd.f32 %v2909_v39, %v2908_v27  ;;  %v2736_v46 = vpop.permute.xlu0 %2735  ;;  %v2731_v14 = vpop.permute.xlu1 %2730  ;;  %v6949_v2 = vadd.f32 %v2895_v16, %v2894_v56  ;;  %v4440_v62 = vsel %vm1950_vm9, %v4439_v58, %v4435_v30  ;;  %v5563_v58 = vld [vmem:[#allocation5 + $0x50] sm:$0xff] }
 0x888   :  { %v2865_v13 = vmul.f32 %v5558_v8, %v2736_v46  ;;  %v2864_v26 = vmul.f32 %v5559_v7, %v2731_v14  ;;  %v4576_v49 = vsel %vm517_vm1, %v4449_v20, %v4440_v62  ;;  %v4466_v11 = vrot.slane %v2736_v46, %v6416_v6  ;;  %v5562_v46 = vld [vmem:[#allocation5 + $0x58] sm:$0xff]  ;;  %v5564_v62 = vld [vmem:[#allocation5 + $0x68] sm:$0xff] }
 0x889   :  { %v2911_v48 = vrot.slane %v2910_v41, 4  ;;  %v2904_v24 = vrot.slane %v2903_v12, 2  ;;  %v2897_v31 = vrot.slane %v6949_v2, 1  ;;  %v4462_v19 = vrot.slane %v2731_v14, %v5875_v45 }
 0x88a   :  { %v2918_v17 = vsel %vm153_vm0, %v2865_v13, 0.0  ;;  %v2917_v3 = vsel %vm153_vm0, %v2864_v26, 0.0  ;;  %v4577_v14 = vsel %vm519_vm2, %v4458_v50, %v4576_v49 }
 0x88b   :  { %v2912_v57 = vadd.f32 %v2911_v48, %v2910_v41  ;;  %v2919_v0 = vadd.f32 %v2918_v17, %v2917_v3  ;;  %v2746_v42 = vpop.permute.xlu0 %2745  ;;  %v2741_v18 = vpop.permute.xlu1 %2740  ;;  %v6966_v38 = vadd.f32 %v2904_v24, %v2903_v12  ;;  %v4467_v26 = vsel %vm1950_vm9, %v4466_v11, %v4462_v19 }
 0x88c   :  { %v2867_v56 = vmul.f32 %v5560_v15, %v2746_v42  ;;  %v2866_v5 = vmul.f32 %v5561_v23, %v2741_v18  ;;  %v4475_v30 = vrot.slane %v2746_v42, %v6416_v6  ;;  %v4471_v41 = vrot.slane %v2741_v18, %v5875_v45  ;;  %v5565_v23 = vld [vmem:[#allocation5 + $0x60] sm:$0xff] }
 0x88d   :  { %v2920_v54 = vrot.slane %v2919_v0, 4  ;;  %v2913_v16 = vrot.slane %v2912_v57, 2  ;;  %v2906_v20 = vrot.slane %v6966_v38, 1  ;;  %v4578_v50 = vsel %vm521_vm3, %v4467_v26, %v4577_v14 }
 0x88e   :  { %v2927_v63 = vsel %vm153_vm0, %v2867_v56, 0.0  ;;  %v2926_v10 = vsel %vm153_vm0, %v2866_v5, 0.0  ;;  %v4476_v18 = vsel %vm1950_vm9, %v4475_v30, %v4471_v41 }
 0x88f   :  { %v2921_v1 = vadd.f32 %v2920_v54, %v2919_v0  ;;  %v2928_v39 = vadd.f32 %v2927_v63, %v2926_v10  ;;  %v2756_v27 = vpop.permute.xlu0 %2755  ;;  %v2751_v32 = vpop.permute.xlu1 %2750  ;;  %v6977_v17 = vadd.f32 %v2913_v16, %v2912_v57 }
 0x890   :  { %v2869_v52 = vmul.f32 %v5562_v46, %v2756_v27  ;;  %v2868_v8 = vmul.f32 %v5563_v58, %v2751_v32  ;;  %v4484_v12 = vrot.slane %v2756_v27, %v6416_v6  ;;  %v4480_v40 = vrot.slane %v2751_v32, %v5875_v45  ;;  %v5566_v46 = vld [vmem:[#allocation5 + $0x78] sm:$0xff] }
 0x891   :  { %v2922_v13 = vrot.slane %v2921_v1, 2  ;;  %v2929_v7 = vrot.slane %v2928_v39, 4  ;;  %v2915_v16 = vrot.slane %v6977_v17, 1 }
 0x892   :  { %v2936_v25 = vsel %vm153_vm0, %v2869_v52, 0.0  ;;  %v2935_v48 = vsel %vm153_vm0, %v2868_v8, 0.0  ;;  %v4485_v54 = vsel %vm1950_vm9, %v4484_v12, %v4480_v40  ;;  %v5567_v8 = vld [vmem:[#allocation5 + $0x70] sm:$0xff] }
 0x893   :  { %v2930_v3 = vadd.f32 %v2929_v7, %v2928_v39  ;;  %v2937_v24 = vadd.f32 %v2936_v25, %v2935_v48  ;;  %v2766_v0 = vpop.permute.xlu0 %2765  ;;  %v2761_v42 = vpop.permute.xlu1 %2760  ;;  %v2923_v49 = vadd.f32 %v2922_v13, %v2921_v1  ;;  %v4579_v39 = vsel %vm523_vm4, %v4476_v18, %v4578_v50 }
 0x894   :  { %v2871_v15 = vmul.f32 %v5564_v62, %v2766_v0  ;;  %v4493_v56 = vrot.slane %v2766_v0, %v6416_v6  ;;  %v2870_v5 = vmul.f32 %v5565_v23, %v2761_v42  ;;  %v4489_v10 = vrot.slane %v2761_v42, %v5875_v45 }
 0x895   :  { %v2938_v11 = vrot.slane %v2937_v24, 4  ;;  %v2931_v57 = vrot.slane %v2930_v3, 2  ;;  %v2924_v13 = vrot.slane %v2923_v49, 1  ;;  %v4580_v12 = vsel %vm525_vm5, %v4485_v54, %v4579_v39 }
 0x896   :  { %v2945_v19 = vsel %vm153_vm0, %v2871_v15, 0.0  ;;  %v2944_v63 = vsel %vm153_vm0, %v2870_v5, 0.0  ;;  %v4494_v41 = vsel %vm1950_vm9, %v4493_v56, %v4489_v10  ;;  %v5568_v5 = vld [vmem:[#allocation5 + $0xf8] sm:$0xff] }
 0x897   :  { %v2939_v27 = vadd.f32 %v2938_v11, %v2937_v24  ;;  %v2946_v32 = vadd.f32 %v2945_v19, %v2944_v63  ;;  %v2776_v30 = vpop.permute.xlu0 %2775  ;;  %v2771_v1 = vpop.permute.xlu1 %2770  ;;  %v2932_v25 = vadd.f32 %v2931_v57, %v2930_v3  ;;  %v4581_v18 = vsel %vm527_vm6, %v4494_v41, %v4580_v12  ;;  %v5569_v3 = vld [vmem:[#allocation5 + $0xf0] sm:$0xff] }
 0x898   :  { %v2873_v52 = vmul.f32 %v5566_v46, %v2776_v30  ;;  %v4502_v58 = vrot.slane %v2776_v30, %v6416_v6  ;;  %v2872_v14 = vmul.f32 %v5567_v8, %v2771_v1  ;;  %v4498_v24 = vrot.slane %v2771_v1, %v5875_v45 }
 0x899   :  { %v2940_v7 = vrot.slane %v2939_v27, 2  ;;  %v2947_v26 = vrot.slane %v2946_v32, 4  ;;  %v2907_v57 = vadd.f32 %v2906_v20, %v6966_v38  ;;  %v2933_v39 = vrot.slane %v2932_v25, 1 }
 0x89a   :  { %v2954_v48 = vsel %vm153_vm0, %v2873_v52, 0.0  ;;  %v2953_v40 = vsel %vm153_vm0, %v2872_v14, 0.0  ;;  %v4503_v23 = vsel %vm1950_vm9, %v4502_v58, %v4498_v24  ;;  %v2898_v38 = vadd.f32 %v2897_v31, %v6949_v2 }
 0x89b   :  { %v2941_v0 = vadd.f32 %v2940_v7, %v2939_v27  ;;  %v2948_v42 = vadd.f32 %v2947_v26, %v2946_v32  ;;  %v2955_v62 = vadd.f32 %v2954_v48, %v2953_v40  ;;  %v2856_v15 = vpop.permute.xlu0 %2855  ;;  %v2851_v56 = vpop.permute.xlu1 %2850  ;;  %v4582_v10 = vsel %vm529_vm7, %v4503_v23, %v4581_v18 }
 0x89c   :  { %v2889_v50 = vmul.f32 %v5568_v5, %v2856_v15  ;;  %v4574_v11 = vrot.slane %v2856_v15, %v6416_v6  ;;  %v2888_v54 = vmul.f32 %v5569_v3, %v2851_v56  ;;  %4592 = vst.msk [vmem:[#allocation11] sm:$0xff] %vm2103_vm10, %v4582_v10  ;;  %v4570_v30 = vrot.slane %v2851_v56, %v5875_v45 }
 0x89d   :  { %v2949_v19 = vrot.slane %v2948_v42, 2  ;;  %v2956_v63 = vrot.slane %v2955_v62, 4  ;;  %v2942_v1 = vrot.slane %v2941_v0, 1  ;;  %v2916_v20 = vadd.f32 %v2915_v16, %v6977_v17 }
 0x89e   :  { %v3026_v27 = vsel %vm153_vm0, %v2889_v50, 0.0  ;;  %v3025_v32 = vsel %vm153_vm0, %v2888_v54, 0.0  ;;  %v2925_v58 = vadd.f32 %v2924_v13, %v2923_v49  ;;  %v4575_v8 = vsel %vm1950_vm9, %v4574_v11, %v4570_v30  ;;  %v5572_v30 = vld [vmem:[#allocation8 + $0x40] sm:$0xff] }
 0x89f   :  { %v2950_v41 = vadd.f32 %v2949_v19, %v2948_v42  ;;  %v2957_v46 = vadd.f32 %v2956_v63, %v2955_v62  ;;  %v3027_v52 = vadd.f32 %v3026_v27, %v3025_v32  ;;  %v4589_v26 = vsel %vm529_vm7, %v4575_v8, %v6945_v43  ;;  %v7036_v3 = vpop.permute.xlu1 %3066  ;;  %v3069_v63 = vpop.permute.xlu0 %3068  ;;  %v5570_v27 = vld [vmem:[#allocation8 + $0x50] sm:$0xff]  ;;  %v5571_v32 = vld [vmem:[#allocation8 + $0x48] sm:$0xff] }
 0x8a0   :  { %v2979_v48 = vadd.f32 %v2978_v60, %v6894_v29  ;;  %v3005_v40 = vrot.slane %v6933_v59, 1  ;;  %v3014_v24 = vrot.slane %v6954_v9, 1  ;;  %v2934_v2 = vadd.f32 %v2933_v39, %v2932_v25  ;;  %4593 = vst.msk [vmem:[#allocation11 + $0x8] sm:$0xff] %vm2103_vm10, %v4589_v26 }
 0x8a1   :  { %v2951_v14 = vrot.slane %v2950_v41, 1  ;;  %v2958_v7 = vrot.slane %v2957_v46, 2  ;;  %v3028_v12 = vrot.slane %v3027_v52, 4  ;;  %v3050_v31 = vsel %vm517_vm1, %v2907_v57, %v2898_v38 }
 0x8a2   :  { %v2943_v17 = vadd.f32 %v2942_v1, %v2941_v0  ;;  %v2988_v43 = vadd.f32 %v2987_v44, %v6915_v21  ;;  %v3023_v13 = vrot.slane %v6956_v61, 1  ;;  %v3051_v29 = vsel %vm519_vm2, %v2916_v20, %v3050_v31  ;;  %v4954_v1 = vld [vmem:[%s7742_s5] ss:$0 sm:$0xff]  ;;  %s5711_s5 = smov 64  }
 0x8a3   :  { %v2959_v49 = vadd.f32 %v2958_v7, %v2957_v46  ;;  %v3029_v16 = vadd.f32 %v3028_v12, %v3027_v52  ;;  %v2952_v42 = vadd.f32 %v2951_v14, %v2950_v41  ;;  %v2997_v60 = vadd.f32 %v2996_v55, %v6919_v4 }
 0x8a4   :  { %v3052_v62 = vsel %vm521_vm3, %v2925_v58, %v3051_v29  ;;  %v3057_v0 = vsel %vm517_vm1, %v2979_v48, %v6911_v51  ;;  %v3006_v15 = vadd.f32 %v3005_v40, %v6933_v59  ;;  %v3015_v44 = vadd.f32 %v3014_v24, %v6954_v9 }
 0x8a5   :  { %v3030_v25 = vrot.slane %v3029_v16, 2  ;;  %v2960_v18 = vrot.slane %v2959_v49, 1  ;;  %v3053_v21 = vsel %vm523_vm4, %v2934_v2, %v3052_v62  ;;  %v3024_v50 = vadd.f32 %v3023_v13, %v6956_v61 }
 0x8a6   :  { %v3054_v5 = vsel %vm525_vm5, %v2943_v17, %v3053_v21  ;;  %v3058_v4 = vsel %vm519_vm2, %v2988_v43, %v3057_v0 }
 0x8a7   :  { %v3031_v56 = vadd.f32 %v3030_v25, %v3029_v16  ;;  %v2961_v23 = vadd.f32 %v2960_v18, %v2959_v49  ;;  %v3055_v55 = vsel %vm527_vm6, %v2952_v42, %v3054_v5  ;;  %v3059_v51 = vsel %vm521_vm3, %v2997_v60, %v3058_v4 }
 0x8a8   :  { %v3060_v9 = vsel %vm523_vm4, %v3006_v15, %v3059_v51  ;;  %v7878_v51 = vld [vmem:[#allocation36_spill] sm:$0xff] }
 0x8a9   :  { %v3032_v11 = vrot.slane %v3031_v56, 1  ;;  %v3056_v59 = vsel %vm529_vm7, %v2961_v23, %v3055_v55  ;;  %v3061_v61 = vsel %vm525_vm5, %v3015_v44, %v3060_v9 }
 0x8aa   :  { %v3072_v54 = vsel %vm153_vm0, %v3056_v59, %v7036_v3  ;;  %v3062_v19 = vsel %vm527_vm6, %v3024_v50, %v3061_v61  ;;  %v7877_v50 = vld [vmem:[#allocation37_spill] sm:$0xff] }
 0x8ab   :  { %v3033_v57 = vadd.f32 %v3032_v11, %v3031_v56  ;;  %5154 = vmatprep.mubr.msk.f32.mxu0 %vm3089_vm11, %v3072_v54 }
 0x8ad   :  { %v3063_v10 = vsel %vm529_vm7, %v3033_v57, %v3062_v19 }
 0x8ae   :  { %v3073_v39 = vsel %vm153_vm0, %v3063_v10, %v3069_v63 }
 0x8af   :  { %5155 = vmatmul.mubr.msk.f32.vlgmr.msra.gmra.mxu0 %vm3089_vm11, %v3073_v39 }
 0x8b0   :  { %5158 = vmatpush3.msra.mxu0 %v6854_v33 }
 0x8b1   :  { %5159 = vmatprep.subr.mxu0 %v5570_v27 }
 0x8b2   :  { %5160 = vmatpush3.msra.mxu0 %v5570_v27 }
 0x8b3   :  { %5161 = vmatprep.subr.mxu0 %v5571_v32 }
 0x8b4   :  { %5162 = vmatpush3.msra.mxu0 %v5571_v32 }
 0x8b5   :  { %5163 = vmatprep.subr.mxu0 %v5572_v30 }
 0x8b6   :  { %5164 = vmatpush3.msra.mxu0 %v5572_v30 }
 0x96f   :  { %v5156_v41 = vpop.f32.mrf.mxu0 }
 0x970   :  { %v3168_v46 = vadd.f32 %v5156_v41, %v4954_v1 }
 0x971   :  { %v3162_v52 = vpop.f32.mrf.mxu0 }
 0x972   :  { %v3163_v38 = vadd.f32 %v4954_v1, %v3162_v52  ;;  %3187 = vrot.lane.b32.xlu0 %v3168_v46, %s5710_s2  ;;  %v4958_v33 = vmul.f32 -1.442695, %v3168_v46  ;;  %v7880_v1 = vld [vmem:[#allocation20_spill] sm:$0xff] }
 0x974   :  { %3185 = vrot.lane.b32.xlu1 %v3163_v38, %s5710_s2  ;;  %v4957_v20 = vmul.f32 -1.442695, %v3163_v38  ;;  %5383 = vpow2.f32 %v4958_v33 }
 0x976   :  { %5385 = vpow2.f32 %v4957_v20 }
 0x981   :  { %v5384_v58 = vpop.eup %5383 }
 0x982   :  { %v3178_v14 = vadd.f32 1.0, %v5384_v58 }
 0x983   :  { %v5386_v8 = vpop.eup %5385 }
 0x984   :  { %v3177_v7 = vadd.f32 1.0, %v5386_v8  ;;  %5387 = vrcp.f32 %v3178_v14  ;;  %v7882_v8 = vld [vmem:[#allocation38_spill] sm:$0xff] }
 0x986   :  { %5389 = vrcp.f32 %v3177_v7 }
 0x991   :  { %v5388_v12 = vpop.eup %5387 }
 0x992   :  { %v3206_v42 = vsub.f32 1.0, %v5388_v12  ;;  %v3218_v60 = vmul.f32 %v5388_v12, %v3069_v63 }
 0x993   :  { %v5390_v40 = vpop.eup %5389 }
 0x994   :  { %v3205_v18 = vsub.f32 1.0, %v5390_v40  ;;  %v3217_v15 = vmul.f32 %v5390_v40, %v7036_v3  ;;  %v7879_v3 = vld [vmem:[#allocation35_spill] sm:$0xff] }
 0x9e4   :  { %v3188_v26 = vpop.permute.xlu0 %3187 }
 0x9e5   :  { %v3192_v48 = vmul.f32 %v5388_v12, %v3188_v26  ;;  %v7883_v12 = vld [vmem:[#allocation43_spill] sm:$0xff] }
 0x9e6   :  { %v3186_v24 = vpop.permute.xlu1 %3185 }
 0x9e7   :  { %v3191_v2 = vmul.f32 %v5390_v40, %v3186_v24  ;;  %3197 = vrot.lane.b32.xlu0 %v3192_v48, %s5711_s5  ;;  %v7884_v48 = vld [vmem:[#allocation39_spill] sm:$0xff] }
 0x9e9   :  { %3195 = vrot.lane.b32.xlu1 %v3191_v2, %s5711_s5 }
 0xa59   :  { %v3198_v31 = vpop.permute.xlu0 %3197 }
 0xa5a   :  { %v3202_v17 = vadd.f32 %v3198_v31, %v3168_v46  ;;  %v7885_v31 = vld [vmem:[#allocation40_spill] sm:$0xff] }
 0xa5b   :  { %v3196_v49 = vpop.permute.xlu1 %3195 }
 0xa5c   :  { %5391 = vtanh.f32 %v3202_v17  ;;  %v3201_v16 = vadd.f32 %v3196_v49, %v3163_v38  ;;  %v7881_v38 = vld [vmem:[#allocation19_spill] sm:$0xff] }
 0xa5e   :  { %5393 = vtanh.f32 %v3201_v16  ;;  %v7886_v16 = vld [vmem:[#allocation41_spill] sm:$0xff] }
 0xa69   :  { %v5392_v43 = vpop.eup %5391 }
 0xa6a   :  { %3211 = vrot.lane.b32.xlu0 %v5392_v43, %s5712_s22 }
 0xa6b   :  { %v5394_v13 = vpop.eup %5393 }
 0xa6c   :  { %3209 = vrot.lane.b32.xlu1 %v5394_v13, %s5712_s22 }
 0xadc   :  { %v3212_v29 = vpop.permute.xlu0 %3211 }
 0xadd   :  { %v3216_v25 = vmul.f32 %v3212_v29, %v3206_v42  ;;  %v7887_v42 = vld [vmem:[#allocation45_spill] sm:$0xff] }
 0xade   :  { %v3210_v62 = vpop.permute.xlu1 %3209 }
 0xadf   :  { %v3220_v0 = vadd.f32 %v3218_v60, %v3216_v25  ;;  %v3215_v21 = vmul.f32 %v3210_v62, %v3205_v18  ;;  %v7888_v18 = vld [vmem:[#allocation46_spill] sm:$0xff] }
 0xae1   :  { %v3219_v44 = vadd.f32 %v3217_v15, %v3215_v21  ;;  %3225 = vrot.lane.b32.xlu0 %v3220_v0, %s5712_s22 }
 0xae3   :  { %3223 = vrot.lane.b32.xlu1 %v3219_v44, %s5712_s22  ;;  %v7889_v44 = vld [vmem:[#allocation21_spill] sm:$0xff] }
 0xb53   :  { %v3226_v23 = vpop.permute.xlu0 %3225 }
 0xb55   :  { %v3224_v56 = vpop.permute.xlu1 %3223 }
 0xb56   :  { %5165 = vmatprep.mubr.msk.f32.mxu0 %vm153_vm0, %v3224_v56 }
 0xb57   :  { %5166 = vmatmul.mubr.msk.f32.vlgmr.msra.gmra.mxu0 %vm153_vm0, %v3226_v23  ;;  %v7890_v23 = vld [vmem:[#allocation22_spill] sm:$0xff] }
 0xc17   :  { %v5167_v5 = vpop.f32.mrf.mxu0 }
 0xc18   :  { %v3364_v4 = vrot.slane %v5167_v5, %v7877_v50  ;;  %v3357_v63 = vcombine.high %v5167_v5, %v5167_v5 }
 0xc19   :  { %v3297_v54 = vpop.f32.mrf.mxu0 }
 0xc1a   :  { %v3380_v55 = vrot.slane %v3364_v4, %v7877_v50  ;;  %v3315_v57 = vrot.slane %v3297_v54, %v7877_v50  ;;  %v3372_v61 = vcombine.high %v3364_v4, %v3364_v4  ;;  %v3371_v27 = vrot.slane %v3357_v63, %v7877_v50 }
 0xc1b   :  { %v3308_v13 = vcombine.high %v3297_v54, %v3297_v54 }
 0xc1c   :  { %v3441_v11 = vrot.slane %v3380_v55, %v5817_v22  ;;  %v3331_v19 = vrot.slane %v3315_v57, %v7877_v50  ;;  %v3394_v10 = vrot.slane %v3372_v61, %v7877_v50  ;;  %v3402_v32 = vcombine.high %v3380_v55, %v3380_v55  ;;  %v7892_v61 = vld [vmem:[#allocation24_spill] sm:$0xff] }
 0xc1d   :  { %v7068_v52 = vrot.slane %v3371_v27, %v7877_v50  ;;  %v3323_v7 = vcombine.high %v3315_v57, %v3315_v57  ;;  %v3322_v15 = vrot.slane %v3308_v13, %v7877_v50  ;;  %v3373_v55 = vcombine.high %v3371_v27, %v3371_v27  ;;  %v7893_v27 = vld [vmem:[#allocation42_spill] sm:$0xff] }
 0xc1e   :  { %v3502_v59 = vadd.f32 %v3441_v11, %v7878_v51  ;;  %v3503_v9 = vadd.f32 %v7879_v3, %v3441_v11  ;;  %v3409_v39 = vrot.slane %v3331_v19, %v5817_v22  ;;  %v3445_v30 = vrot.slane %v3394_v10, %v5817_v22  ;;  %v7891_v3 = vld [vmem:[#allocation23_spill] sm:$0xff] }
 0xc1f   :  { %v3449_v58 = vrot.slane %v3402_v32, %v5817_v22  ;;  %v3457_v2 = vrot.slane %v7068_v52, %v5817_v22  ;;  %v7080_v49 = vrot.slane %v3323_v7, %v7877_v50  ;;  %v3353_v60 = vcombine.high %v3331_v19, %v3331_v19 }
 0xc20   :  { %5395 = vtanh.f32 %v3502_v59  ;;  %v3486_v41 = vadd.f32 %v3409_v39, %v7880_v1  ;;  %v3487_v33 = vadd.f32 %v7881_v38, %v3409_v39  ;;  %v3505_v14 = vadd.f32 %v7882_v8, %v3445_v30 }
 0xc21   :  { %5397 = vtanh.f32 %v3503_v9  ;;  %v3504_v40 = vadd.f32 %v3445_v30, %v7884_v48  ;;  %v3507_v17 = vadd.f32 %v7885_v31, %v3449_v58  ;;  %v3506_v43 = vadd.f32 %v3449_v58, %v7886_v16 }
 0xc22   :  { %5399 = vtanh.f32 %v3486_v41  ;;  %v3511_v29 = vadd.f32 %v7887_v42, %v3457_v2  ;;  %v3413_v25 = vrot.slane %v7080_v49, %v5817_v22  ;;  %v3510_v62 = vadd.f32 %v3457_v2, %v7888_v18 }
 0xc23   :  { %5401 = vtanh.f32 %v3487_v33  ;;  %v3404_v0 = vcombine.high %v3394_v10, %v3394_v10  ;;  %v3417_v21 = vrot.slane %v3353_v60, %v5817_v22  ;;  %v7093_v59 = vrot.slane %v3322_v15, %v7877_v50  ;;  %v7898_v60 = vld [vmem:[#allocation48_spill] sm:$0xff] }
 0xc24   :  { %5403 = vtanh.f32 %v3505_v14  ;;  %v3489_v56 = vadd.f32 %v7889_v44, %v3413_v25  ;;  %v3488_v5 = vadd.f32 %v3413_v25, %v7890_v23  ;;  %v7100_v39 = vrot.slane %v3373_v55, %v7877_v50  ;;  %v7895_v14 = vld [vmem:[#allocation27_spill] sm:$0xff]  ;;  %v7900_v23 = vld [vmem:[#allocation50_spill] sm:$0xff] }
 0xc25   :  { %5405 = vtanh.f32 %v3504_v40  ;;  %v3453_v11 = vrot.slane %v3404_v0, %v5817_v22  ;;  %v3491_v9 = vadd.f32 %v7891_v3, %v3417_v21  ;;  %v3490_v19 = vadd.f32 %v3417_v21, %v7892_v61  ;;  %v7896_v40 = vld [vmem:[#allocation28_spill] sm:$0xff]  ;;  %v7899_v0 = vld [vmem:[#allocation49_spill] sm:$0xff] }
 0xc26   :  { %5407 = vtanh.f32 %v3507_v17  ;;  %v3425_v30 = vrot.slane %v7093_v59, %v5817_v22  ;;  %v3403_v58 = vcombine.high %v7068_v52, %v7068_v52  ;;  %v3461_v8 = vrot.slane %v7100_v39, %v5817_v22  ;;  %v7897_v52 = vld [vmem:[#allocation47_spill] sm:$0xff] }
 0xc27   :  { %5409 = vtanh.f32 %v3506_v43  ;;  %v3509_v32 = vadd.f32 %v7893_v27, %v3453_v11  ;;  %v3324_v43 = vcombine.high %v3322_v15, %v3322_v15  ;;  %v3355_v13 = vcombine.high %v7080_v49, %v7080_v49  ;;  %v7903_v27 = vld [vmem:[#allocation29_spill] sm:$0xff] }
 0xc28   :  { %5411 = vtanh.f32 %v3511_v29  ;;  %v3495_v7 = vadd.f32 %v7895_v14, %v3425_v30  ;;  %v3465_v17 = vrot.slane %v3403_v58, %v5817_v22  ;;  %v3513_v16 = vadd.f32 %v7897_v52, %v3461_v8 }
 0xc29   :  { %5413 = vtanh.f32 %v3510_v62  ;;  %v3512_v25 = vadd.f32 %v3461_v8, %v7898_v60  ;;  %v3352_v15 = vrot.slane %v3324_v43, %v7877_v50  ;;  %v3421_v44 = vrot.slane %v3355_v13, %v5817_v22  ;;  %v7901_v50 = vld [vmem:[#allocation25_spill] sm:$0xff]  ;;  %v7905_v8 = vld [vmem:[#allocation31_spill] sm:$0xff]  ;;  %v7908_v43 = vld [vmem:[#allocation34_spill] sm:$0xff] }
 0xc2a   :  { %5415 = vtanh.f32 %v3489_v56  ;;  %v3515_v21 = vadd.f32 %v7899_v0, %v3465_v17  ;;  %v7909_v60 = vld [vmem:[#allocation51_spill] sm:$0xff]  ;;  %v7910_v0 = vld [vmem:[#allocation52_spill] sm:$0xff] }
 0xc2b   :  { %5417 = vtanh.f32 %v3488_v5  ;;  %v3514_v5 = vadd.f32 %v3465_v17, %v7900_v23  ;;  %v3493_v3 = vadd.f32 %v7901_v50, %v3421_v44 }
 0xc2c   :  { %5419 = vtanh.f32 %v3491_v9 }
 0xc2d   :  { %v5396_v46 = vpop.eup %5395  ;;  %5421 = vtanh.f32 %v3490_v19 }
 0xc2e   :  { %v5398_v20 = vpop.eup %5397  ;;  %v3566_v26 = vmul.f32 %v5396_v46, %v7883_v12  ;;  %v7894_v46 = vld [vmem:[#allocation44_spill] sm:$0xff]  ;;  %5423 = vtanh.f32 %v3509_v32 }
 0xc2f   :  { %v3567_v24 = vmul.f32 %v5398_v20, %v7883_v12  ;;  %v5400_v4 = vpop.eup %5399  ;;  %v3508_v38 = vadd.f32 %v3453_v11, %v7894_v46  ;;  %v3354_v11 = vcombine.high %v7093_v59, %v7093_v59 }
 0xc30   :  { %3614 = vadd.xlane.f32.xlu0 %v3566_v26  ;;  %v5402_v51 = vpop.eup %5401  ;;  %v3550_v54 = vmul.f32 %v5400_v4, %v7883_v12 }
 0xc31   :  { %3616 = vadd.xlane.f32.xlu1 %v3567_v24  ;;  %v5404_v57 = vpop.eup %5403  ;;  %v3551_v63 = vmul.f32 %v5402_v51, %v7883_v12  ;;  %5425 = vtanh.f32 %v3508_v38  ;;  %v3494_v24 = vadd.f32 %v3425_v30, %v7896_v40  ;;  %v3429_v51 = vrot.slane %v3352_v15, %v5817_v22 }
 0xc32   :  { %v5406_v10 = vpop.eup %5405  ;;  %v3569_v1 = vmul.f32 %v5404_v57, %v7883_v12  ;;  %5427 = vtanh.f32 %v3495_v7  ;;  %v7902_v57 = vld [vmem:[#allocation26_spill] sm:$0xff]  ;;  %v3433_v59 = vrot.slane %v3354_v11, %v5817_v22 }
 0xc33   :  { %v5408_v41 = vpop.eup %5407  ;;  %v3568_v33 = vmul.f32 %v5406_v10, %v7883_v12  ;;  %5429 = vtanh.f32 %v3494_v24  ;;  %v3492_v61 = vadd.f32 %v3421_v44, %v7902_v57  ;;  %v3356_v10 = vcombine.high %v3352_v15, %v3352_v15 }
 0xc34   :  { %3584 = vadd.xlane.f32.xlu0 %v3551_v63  ;;  %v5410_v20 = vpop.eup %5409  ;;  %v3571_v26 = vmul.f32 %v5408_v41, %v7883_v12  ;;  %5431 = vtanh.f32 %v3513_v16  ;;  %v3497_v32 = vadd.f32 %v7903_v27, %v3429_v51  ;;  %v7904_v41 = vld [vmem:[#allocation30_spill] sm:$0xff]  ;;  %v3499_v14 = vadd.f32 %v7905_v8, %v3433_v59 }
 0xc35   :  { %3582 = vadd.xlane.f32.xlu1 %v3550_v54  ;;  %v5412_v48 = vpop.eup %5411  ;;  %v3570_v2 = vmul.f32 %v5410_v20, %v7883_v12  ;;  %5433 = vtanh.f32 %v3512_v25  ;;  %v3496_v46 = vadd.f32 %v3429_v51, %v7904_v41  ;;  %v3405_v20 = vcombine.high %v7100_v39, %v7100_v39  ;;  %v7907_v39 = vld [vmem:[#allocation33_spill] sm:$0xff] }
 0xc36   :  { %v5414_v31 = vpop.eup %5413  ;;  %v3575_v42 = vmul.f32 %v5412_v48, %v7883_v12  ;;  %5435 = vtanh.f32 %v3515_v21  ;;  %v3437_v58 = vrot.slane %v3356_v10, %v5817_v22  ;;  %v7906_v48 = vld [vmem:[#allocation32_spill] sm:$0xff] }
 0xc37   :  { %v5416_v29 = vpop.eup %5415  ;;  %v3574_v18 = vmul.f32 %v5414_v31, %v7883_v12  ;;  %5437 = vtanh.f32 %v3514_v5  ;;  %v3498_v40 = vadd.f32 %v3433_v59, %v7906_v48  ;;  %v3469_v31 = vrot.slane %v3405_v20, %v5817_v22 }
 0xc38   :  { %3618 = vadd.xlane.f32.xlu0 %v3568_v33  ;;  %v5418_v62 = vpop.eup %5417  ;;  %v3553_v49 = vmul.f32 %v5416_v29, %v7883_v12  ;;  %5439 = vtanh.f32 %v3493_v3  ;;  %v3501_v17 = vadd.f32 %v7907_v39, %v3437_v58  ;;  %v3500_v13 = vadd.f32 %v3437_v58, %v7908_v43 }
 0xc39   :  { %3620 = vadd.xlane.f32.xlu1 %v3569_v1  ;;  %v5420_v56 = vpop.eup %5419  ;;  %v3552_v4 = vmul.f32 %v5418_v62, %v7883_v12  ;;  %5441 = vtanh.f32 %v3492_v61  ;;  %v3517_v25 = vadd.f32 %v7909_v60, %v3469_v31  ;;  %v3516_v21 = vadd.f32 %v3469_v31, %v7910_v0 }
 0xc3a   :  { %v5422_v55 = vpop.eup %5421  ;;  %v3555_v9 = vmul.f32 %v5420_v56, %v7883_v12  ;;  %5443 = vtanh.f32 %v3497_v32 }
 0xc3b   :  { %v5424_v54 = vpop.eup %5423  ;;  %v3554_v19 = vmul.f32 %v5422_v55, %v7883_v12  ;;  %5445 = vtanh.f32 %v3496_v46 }
 0xc3c   :  { %3622 = vadd.xlane.f32.xlu0 %v3570_v2  ;;  %v3573_v30 = vmul.f32 %v5424_v54, %v7883_v12  ;;  %5447 = vtanh.f32 %v3499_v14 }
 0xc3d   :  { %3624 = vadd.xlane.f32.xlu1 %v3571_v26  ;;  %5449 = vtanh.f32 %v3498_v40 }
 0xc3e   :  { %v5426_v63 = vpop.eup %5425  ;;  %5451 = vtanh.f32 %v3501_v17 }
 0xc3f   :  { %v5428_v1 = vpop.eup %5427  ;;  %v3572_v38 = vmul.f32 %v5426_v63, %v7883_v12  ;;  %5453 = vtanh.f32 %v3500_v13 }
 0xc40   :  { %3630 = vadd.xlane.f32.xlu0 %v3574_v18  ;;  %v5430_v33 = vpop.eup %5429  ;;  %v3559_v7 = vmul.f32 %v5428_v1, %v7883_v12  ;;  %5455 = vtanh.f32 %v3517_v25 }
 0xc41   :  { %3632 = vadd.xlane.f32.xlu1 %v3575_v42  ;;  %v5432_v26 = vpop.eup %5431  ;;  %v3558_v24 = vmul.f32 %v5430_v33, %v7883_v12  ;;  %5457 = vtanh.f32 %v3516_v21 }
 0xc42   :  { %v5434_v2 = vpop.eup %5433  ;;  %v3577_v52 = vmul.f32 %v5432_v26, %v7883_v12 }
 0xc43   :  { %v5436_v16 = vpop.eup %5435  ;;  %v3576_v42 = vmul.f32 %v5434_v2, %v7883_v12 }
 0xc44   :  { %3586 = vadd.xlane.f32.xlu0 %v3552_v4  ;;  %v5438_v29 = vpop.eup %5437  ;;  %v3579_v18 = vmul.f32 %v5436_v16, %v7883_v12 }
 0xc45   :  { %3588 = vadd.xlane.f32.xlu1 %v3553_v49  ;;  %v5440_v62 = vpop.eup %5439  ;;  %v3578_v15 = vmul.f32 %v5438_v29, %v7883_v12 }
 0xc46   :  { %v5442_v44 = vpop.eup %5441  ;;  %v3557_v49 = vmul.f32 %v5440_v62, %v7883_v12 }
 0xc47   :  { %v5444_v56 = vpop.eup %5443  ;;  %v3556_v23 = vmul.f32 %v5442_v44, %v7883_v12 }
 0xc48   :  { %3590 = vadd.xlane.f32.xlu0 %v3554_v19  ;;  %v5446_v5 = vpop.eup %5445  ;;  %v3561_v4 = vmul.f32 %v5444_v56, %v7883_v12 }
 0xc49   :  { %3592 = vadd.xlane.f32.xlu1 %v3555_v9  ;;  %v5448_v55 = vpop.eup %5447  ;;  %v3560_v11 = vmul.f32 %v5446_v5, %v7883_v12 }
 0xc4a   :  { %v5450_v51 = vpop.eup %5449  ;;  %v3563_v50 = vmul.f32 %v5448_v55, %v7883_v12 }
 0xc4b   :  { %v5452_v3 = vpop.eup %5451  ;;  %v3562_v9 = vmul.f32 %v5450_v51, %v7883_v12 }
 0xc4c   :  { %3626 = vadd.xlane.f32.xlu0 %v3572_v38  ;;  %v5454_v54 = vpop.eup %5453  ;;  %v3565_v57 = vmul.f32 %v5452_v3, %v7883_v12 }
 0xc4d   :  { %3628 = vadd.xlane.f32.xlu1 %v3573_v30  ;;  %v5456_v61 = vpop.eup %5455  ;;  %v3564_v19 = vmul.f32 %v5454_v54, %v7883_v12 }
 0xc4e   :  { %v5458_v63 = vpop.eup %5457  ;;  %v3581_v10 = vmul.f32 %v5456_v61, %v7883_v12 }
 0xc4f   :  { %v3580_v59 = vmul.f32 %v5458_v63, %v7883_v12 }
 0xc50   :  { %3598 = vadd.xlane.f32.xlu0 %v3558_v24 }
 0xc51   :  { %3600 = vadd.xlane.f32.xlu1 %v3559_v7 }
 0xc54   :  { %3634 = vadd.xlane.f32.xlu0 %v3576_v42 }
 0xc55   :  { %3636 = vadd.xlane.f32.xlu1 %v3577_v52 }
 0xc58   :  { %3638 = vadd.xlane.f32.xlu0 %v3578_v15 }
 0xc59   :  { %3640 = vadd.xlane.f32.xlu1 %v3579_v18 }
 0xc5c   :  { %3594 = vadd.xlane.f32.xlu0 %v3556_v23 }
 0xc5d   :  { %3596 = vadd.xlane.f32.xlu1 %v3557_v49 }
 0xc60   :  { %3602 = vadd.xlane.f32.xlu0 %v3560_v11 }
 0xc61   :  { %3604 = vadd.xlane.f32.xlu1 %v3561_v4 }
 0xc64   :  { %3606 = vadd.xlane.f32.xlu0 %v3562_v9 }
 0xc65   :  { %3608 = vadd.xlane.f32.xlu1 %v3563_v50 }
 0xc68   :  { %3610 = vadd.xlane.f32.xlu0 %v3564_v19 }
 0xc69   :  { %3612 = vadd.xlane.f32.xlu1 %v3565_v57 }
 0xc6c   :  { %3642 = vadd.xlane.f32.xlu0 %v3580_v59 }
 0xc6d   :  { %3644 = vadd.xlane.f32.xlu1 %v3581_v10 }
 0xcb9   :  { %v7169_v32 = vpop.xlane.xlu0 %3614 }
 0xcba   :  { %v7167_v27 = vpop.xlane.xlu1 %3616  ;;  %v3753_v49 = vrot.slane %v7169_v32, %v5875_v45 }
 0xcbb   :  { %v3757_v44 = vrot.slane %v7167_v27, %v6416_v6 }
 0xcbd   :  { %v7173_v1 = vpop.xlane.xlu0 %3584  ;;  %v3758_v10 = vsel %vm1950_vm9, %v3757_v44, %v3753_v49 }
 0xcbe   :  { %v7171_v30 = vpop.xlane.xlu1 %3582  ;;  %v3685_v16 = vrot.slane %v7173_v1, %v6416_v6 }
 0xcbf   :  { %v3681_v43 = vrot.slane %v7171_v30, %v5875_v45 }
 0xcc1   :  { %v7177_v46 = vpop.xlane.xlu0 %3618  ;;  %v3686_v56 = vsel %vm1950_vm9, %v3685_v16, %v3681_v43 }
 0xcc2   :  { %v7175_v41 = vpop.xlane.xlu1 %3620  ;;  %v3762_v42 = vrot.slane %v7177_v46, %v5875_v45 }
 0xcc3   :  { %v3766_v29 = vrot.slane %v7175_v41, %v6416_v6 }
 0xcc5   :  { %v7181_v33 = vpop.xlane.xlu0 %3622  ;;  %v3767_v5 = vsel %vm1950_vm9, %v3766_v29, %v3762_v42 }
 0xcc6   :  { %v7179_v38 = vpop.xlane.xlu1 %3624  ;;  %v3771_v4 = vrot.slane %v7181_v33, %v5875_v45  ;;  %v3829_v42 = vsel %vm517_vm1, %v3767_v5, %v3758_v10 }
 0xcc7   :  { %v3775_v55 = vrot.slane %v7179_v38, %v6416_v6 }
 0xcc9   :  { %v7185_v12 = vpop.xlane.xlu0 %3630  ;;  %v3776_v29 = vsel %vm1950_vm9, %v3775_v55, %v3771_v4 }
 0xcca   :  { %v7183_v20 = vpop.xlane.xlu1 %3632 }
 0xccd   :  { %v7189_v8 = vpop.xlane.xlu0 %3586 }
 0xcce   :  { %v7187_v58 = vpop.xlane.xlu1 %3588  ;;  %v3690_v25 = vrot.slane %v7189_v8, %v5875_v45 }
 0xccf   :  { %v3694_v60 = vrot.slane %v7187_v58, %v6416_v6 }
 0xcd1   :  { %v7193_v7 = vpop.xlane.xlu0 %3590  ;;  %v3695_v11 = vsel %vm1950_vm9, %v3694_v60, %v3690_v25 }
 0xcd2   :  { %v7191_v14 = vpop.xlane.xlu1 %3592  ;;  %v3699_v62 = vrot.slane %v7193_v7, %v5875_v45  ;;  %v3822_v59 = vsel %vm517_vm1, %v3695_v11, %v3686_v56 }
 0xcd3   :  { %v3703_v18 = vrot.slane %v7191_v14, %v6416_v6 }
 0xcd5   :  { %v7197_v48 = vpop.xlane.xlu0 %3626  ;;  %v3704_v51 = vsel %vm1950_vm9, %v3703_v18, %v3699_v62  ;;  %v3789_v18 = vrot.slane %v7185_v12, %v5875_v45  ;;  %v3793_v62 = vrot.slane %v7183_v20, %v6416_v6 }
 0xcd6   :  { %v7195_v26 = vpop.xlane.xlu1 %3628  ;;  %v3780_v3 = vrot.slane %v7197_v48, %v5875_v45  ;;  %v3823_v60 = vsel %vm519_vm2, %v3704_v51, %v3822_v59 }
 0xcd7   :  { %v3784_v50 = vrot.slane %v7195_v26, %v6416_v6 }
 0xcd9   :  { %v7201_v24 = vpop.xlane.xlu0 %3598 }
 0xcda   :  { %v7199_v40 = vpop.xlane.xlu1 %3600  ;;  %v3717_v54 = vrot.slane %v7201_v24, %v5875_v45 }
 0xcdb   :  { %v3721_v9 = vrot.slane %v7199_v40, %v6416_v6 }
 0xcdd   :  { %v7205_v31 = vpop.xlane.xlu0 %3634  ;;  %v3722_v44 = vsel %vm1950_vm9, %v3721_v9, %v3717_v54  ;;  %v3830_v9 = vsel %vm519_vm2, %v3776_v29, %v3829_v42 }
 0xcde   :  { %v7203_v2 = vpop.xlane.xlu1 %3636  ;;  %v3798_v56 = vrot.slane %v7205_v31, %v5875_v45 }
 0xcdf   :  { %v3802_v49 = vrot.slane %v7203_v2, %v6416_v6 }
 0xce1   :  { %v7209_v17 = vpop.xlane.xlu0 %3638  ;;  %v3803_v10 = vsel %vm1950_vm9, %v3802_v49, %v3798_v56 }
 0xce2   :  { %v7207_v39 = vpop.xlane.xlu1 %3640  ;;  %v3807_v11 = vrot.slane %v7209_v17, %v5875_v45 }
 0xce3   :  { %v3811_v55 = vrot.slane %v7207_v39, %v6416_v6 }
 0xce5   :  { %v7217_v13 = vpop.xlane.xlu0 %3594  ;;  %v3812_v42 = vsel %vm1950_vm9, %v3811_v55, %v3807_v11 }
 0xce6   :  { %v7211_v52 = vpop.xlane.xlu1 %3596  ;;  %v3708_v21 = vrot.slane %v7217_v13, %v5875_v45 }
 0xce7   :  { %v3712_v0 = vrot.slane %v7211_v52, %v6416_v6 }
 0xce9   :  { %v7242_v23 = vpop.xlane.xlu0 %3602  ;;  %v3713_v57 = vsel %vm1950_vm9, %v3712_v0, %v3708_v21  ;;  %v3785_v0 = vsel %vm1950_vm9, %v3784_v50, %v3780_v3 }
 0xcea   :  { %v7235_v15 = vpop.xlane.xlu1 %3604  ;;  %v3726_v19 = vrot.slane %v7242_v23, %v5875_v45  ;;  %v3824_v21 = vsel %vm521_vm3, %v3713_v57, %v3823_v60 }
 0xceb   :  { %v3730_v61 = vrot.slane %v7235_v15, %v6416_v6  ;;  %v3825_v57 = vsel %vm523_vm4, %v3722_v44, %v3824_v21 }
 0xced   :  { %v7270_v43 = vpop.xlane.xlu0 %3606  ;;  %v3731_v5 = vsel %vm1950_vm9, %v3730_v61, %v3726_v19  ;;  %v3831_v61 = vsel %vm521_vm3, %v3785_v0, %v3830_v9 }
 0xcee   :  { %v7264_v63 = vpop.xlane.xlu1 %3608  ;;  %v3735_v25 = vrot.slane %v7270_v43, %v5875_v45  ;;  %v3826_v19 = vsel %vm525_vm5, %v3731_v5, %v3825_v57 }
 0xcef   :  { %v3739_v16 = vrot.slane %v7264_v63, %v6416_v6 }
 0xcf1   :  { %v3740_v51 = vsel %vm1950_vm9, %v3739_v16, %v3735_v25  ;;  %v7298_v3 = vpop.xlane.xlu0 %3610  ;;  %v3794_v25 = vsel %vm1950_vm9, %v3793_v62, %v3789_v18 }
 0xcf2   :  { %v7289_v4 = vpop.xlane.xlu1 %3612  ;;  %v3744_v54 = vrot.slane %v7298_v3, %v5875_v45  ;;  %v3827_v60 = vsel %vm527_vm6, %v3740_v51, %v3826_v19  ;;  %v3832_v56 = vsel %vm523_vm4, %v3794_v25, %v3831_v61 }
 0xcf3   :  { %v3748_v50 = vrot.slane %v7289_v4, %v6416_v6  ;;  %v3833_v5 = vsel %vm525_vm5, %v3803_v10, %v3832_v56 }
 0xcf4   :  { %v3834_v62 = vsel %vm527_vm6, %v3812_v42, %v3833_v5 }
 0xcf5   :  { %v3749_v16 = vsel %vm1950_vm9, %v3748_v50, %v3744_v54  ;;  %v7315_v21 = vpop.xlane.xlu0 %3642 }
 0xcf6   :  { %v7307_v59 = vpop.xlane.xlu1 %3644  ;;  %v3828_v0 = vsel %vm529_vm7, %v3749_v16, %v3827_v60  ;;  %v3816_v44 = vrot.slane %v7315_v21, %v5875_v45 }
 0xcf7   :  { %v3820_v29 = vrot.slane %v7307_v59, %v6416_v6  ;;  %v3838_v49 = vsel %vm2103_vm10, %v3828_v0, -inf }
 0xcf8   :  { %3839 = vmax.xlane.f32.xlu0 %v3838_v49 }
 0xcf9   :  { %v3821_v18 = vsel %vm1950_vm9, %v3820_v29, %v3816_v44 }
 0xcfa   :  { %v3835_v55 = vsel %vm529_vm7, %v3821_v18, %v3834_v62 }
 0xcfb   :  { %v3841_v11 = vsel %vm2103_vm10, %v3835_v55, -inf }
 0xcfc   :  { %3842 = vmax.xlane.f32.xlu1 %v3841_v11 }
 0xd81   :  { %v7356_v11 = vpop.xlane.xlu0 %3839 }
 0xd85   :  { %v7327_v51 = vpop.xlane.xlu1 %3842 }
 0xd86   :  { %v3881_v50 = vrot.slane %v7327_v51, %v5817_v22  ;;  %v3885_v9 = vrot.slane %v7327_v51, %v5828_v35  ;;  %v3889_v61 = vrot.slane %v7327_v51, %v5942_v34  ;;  %v3893_v25 = vrot.slane %v7327_v51, %v5948_v37 }
 0xd87   :  { %v3897_v0 = vrot.slane %v7327_v51, %v5957_v53 }
 0xd88   :  { %v3942_v54 = vsub.f32 %v7169_v32, %v3881_v50  ;;  %v3943_v57 = vsub.f32 %v7167_v27, %v3881_v50  ;;  %v3944_v19 = vsub.f32 %v7177_v46, %v3885_v9  ;;  %v3945_v16 = vsub.f32 %v7175_v41, %v3885_v9 }
 0xd89   :  { %v3946_v42 = vsub.f32 %v7181_v33, %v3889_v61  ;;  %v3947_v32 = vsub.f32 %v7179_v38, %v3889_v61  ;;  %v3948_v46 = vsub.f32 %v7197_v48, %v3893_v25  ;;  %v3949_v41 = vsub.f32 %v7195_v26, %v3893_v25 }
 0xd8a   :  { %v3990_v10 = vmul.f32 1.442695, %v3942_v54  ;;  %v3992_v60 = vmul.f32 1.442695, %v3943_v57  ;;  %v3994_v29 = vmul.f32 1.442695, %v3944_v19  ;;  %v3901_v33 = vrot.slane %v7327_v51, %v5945_v36 }
 0xd8b   :  { %v3996_v27 = vmul.f32 1.442695, %v3945_v16  ;;  %v3998_v44 = vmul.f32 1.442695, %v3946_v42  ;;  %v4000_v49 = vmul.f32 1.442695, %v3947_v32  ;;  %v3950_v56 = vsub.f32 %v7185_v12, %v3897_v0 }
 0xd8c   :  { %5459 = vpow2.f32 %v3990_v10  ;;  %v4002_v38 = vmul.f32 1.442695, %v3948_v46  ;;  %v3951_v5 = vsub.f32 %v7183_v20, %v3897_v0  ;;  %v4004_v18 = vmul.f32 1.442695, %v3949_v41 }
 0xd8d   :  { %5461 = vpow2.f32 %v3992_v60  ;;  %v3905_v48 = vrot.slane %v7327_v51, %v5951_v47  ;;  %v3952_v62 = vsub.f32 %v7205_v31, %v3901_v33  ;;  %v4006_v26 = vmul.f32 1.442695, %v3950_v56 }
 0xd8e   :  { %5463 = vpow2.f32 %v3994_v29  ;;  %v3953_v50 = vsub.f32 %v7203_v2, %v3901_v33  ;;  %v4008_v12 = vmul.f32 1.442695, %v3951_v5  ;;  %v3849_v20 = vrot.slane %v7356_v11, %v5817_v22 }
 0xd8f   :  { %5465 = vpow2.f32 %v3996_v27  ;;  %v3954_v31 = vsub.f32 %v7209_v17, %v3905_v48  ;;  %v4010_v54 = vmul.f32 1.442695, %v3952_v62  ;;  %v3955_v61 = vsub.f32 %v7207_v39, %v3905_v48 }
 0xd90   :  { %5467 = vpow2.f32 %v3998_v44  ;;  %v4012_v2 = vmul.f32 1.442695, %v3953_v50  ;;  %v3853_v10 = vrot.slane %v7356_v11, %v5828_v35  ;;  %v3927_v16 = vsub.f32 %v7173_v1, %v3849_v20 }
 0xd91   :  { %5469 = vpow2.f32 %v4000_v49  ;;  %v4014_v17 = vmul.f32 1.442695, %v3954_v31  ;;  %v3926_v25 = vsub.f32 %v7171_v30, %v3849_v20  ;;  %v4016_v39 = vmul.f32 1.442695, %v3955_v61 }
 0xd92   :  { %5471 = vpow2.f32 %v4002_v38  ;;  %v3857_v29 = vrot.slane %v7356_v11, %v5942_v34  ;;  %v3928_v32 = vsub.f32 %v7189_v8, %v3853_v10  ;;  %v3960_v1 = vmul.f32 1.442695, %v3927_v16 }
 0xd93   :  { %5473 = vpow2.f32 %v4004_v18  ;;  %v3929_v0 = vsub.f32 %v7187_v58, %v3853_v10  ;;  %v3958_v30 = vmul.f32 1.442695, %v3926_v25  ;;  %v3861_v44 = vrot.slane %v7356_v11, %v5948_v37 }
 0xd94   :  { %5475 = vpow2.f32 %v4006_v26  ;;  %v3930_v41 = vsub.f32 %v7193_v7, %v3857_v29  ;;  %v3962_v8 = vmul.f32 1.442695, %v3928_v32  ;;  %v3931_v33 = vsub.f32 %v7191_v14, %v3857_v29 }
 0xd95   :  { %5477 = vpow2.f32 %v4008_v12  ;;  %v3964_v58 = vmul.f32 1.442695, %v3929_v0  ;;  %v3865_v38 = vrot.slane %v7356_v11, %v5957_v53  ;;  %v3932_v5 = vsub.f32 %v7217_v13, %v3861_v44 }
 0xd96   :  { %5479 = vpow2.f32 %v4010_v54  ;;  %v3966_v7 = vmul.f32 1.442695, %v3930_v41  ;;  %v3933_v48 = vsub.f32 %v7211_v52, %v3861_v44  ;;  %v3968_v14 = vmul.f32 1.442695, %v3931_v33 }
 0xd97   :  { %5481 = vpow2.f32 %v4012_v2  ;;  %v3869_v26 = vrot.slane %v7356_v11, %v5945_v36  ;;  %v3934_v50 = vsub.f32 %v7201_v24, %v3865_v38  ;;  %v3970_v13 = vmul.f32 1.442695, %v3932_v5 }
 0xd98   :  { %5483 = vpow2.f32 %v4014_v17  ;;  %v3935_v20 = vsub.f32 %v7199_v40, %v3865_v38  ;;  %v3972_v52 = vmul.f32 1.442695, %v3933_v48  ;;  %v3873_v54 = vrot.slane %v7356_v11, %v5951_v47 }
 0xd99   :  { %v7354_v55 = vpop.eup %5459  ;;  %5485 = vpow2.f32 %v4016_v39  ;;  %v3936_v61 = vsub.f32 %v7242_v23, %v3869_v26  ;;  %v3974_v24 = vmul.f32 1.442695, %v3934_v50  ;;  %v3937_v10 = vsub.f32 %v7235_v15, %v3869_v26 }
 0xd9a   :  { %v7359_v9 = vpop.eup %5461  ;;  %4103 = vperm.xlu1 %5182, %v7354_v55   ;;  %5487 = vpow2.f32 %v3960_v1  ;;  %v3976_v40 = vmul.f32 1.442695, %v3935_v20  ;;  %v3877_v17 = vrot.slane %v7356_v11, %v7870_v28  ;;  %v3938_v25 = vsub.f32 %v7270_v43, %v3873_v54 }
 0xd9b   :  { %4106 = vperm.xlu0 %5181, %v7359_v9   ;;  %v7366_v57 = vpop.eup %5463  ;;  %5489 = vpow2.f32 %v3958_v30  ;;  %v3978_v23 = vmul.f32 1.442695, %v3936_v61  ;;  %v3939_v29 = vsub.f32 %v7264_v63, %v3873_v54  ;;  %v3980_v15 = vmul.f32 1.442695, %v3937_v10 }
 0xd9c   :  { %v7369_v19 = vpop.eup %5465  ;;  %5491 = vpow2.f32 %v3962_v8  ;;  %v3940_v1 = vsub.f32 %v7298_v3, %v3877_v17  ;;  %v3982_v11 = vmul.f32 1.442695, %v3938_v25  ;;  %v3909_v43 = vrot.slane %v7327_v51, %v7870_v28 }
 0xd9d   :  { %v7376_v60 = vpop.eup %5467  ;;  %5493 = vpow2.f32 %v3964_v58  ;;  %v3941_v30 = vsub.f32 %v7289_v4, %v3877_v17  ;;  %v3984_v63 = vmul.f32 1.442695, %v3939_v29 }
 0xd9e   :  { %4109 = vperm.xlu1 %5182, %v7366_v57   ;;  %v7379_v42 = vpop.eup %5469  ;;  %5495 = vpow2.f32 %v3966_v7  ;;  %v3986_v41 = vmul.f32 1.442695, %v3940_v1  ;;  %v3956_v3 = vsub.f32 %v7315_v21, %v3909_v43  ;;  %v3957_v33 = vsub.f32 %v7307_v59, %v3909_v43 }
 0xd9f   :  { %4112 = vperm.xlu0 %5181, %v7369_v19   ;;  %v7386_v27 = vpop.eup %5471  ;;  %5497 = vpow2.f32 %v3968_v14  ;;  %v3988_v51 = vmul.f32 1.442695, %v3941_v30 }
 0xda0   :  { %v7389_v46 = vpop.eup %5473  ;;  %5499 = vpow2.f32 %v3970_v13  ;;  %v4018_v4 = vmul.f32 1.442695, %v3956_v3  ;;  %v4020_v5 = vmul.f32 1.442695, %v3957_v33 }
 0xda1   :  { %v7396_v49 = vpop.eup %5475  ;;  %5501 = vpow2.f32 %v3972_v52 }
 0xda2   :  { %4115 = vperm.xlu1 %5182, %v7376_v60   ;;  %v7399_v56 = vpop.eup %5477  ;;  %5503 = vpow2.f32 %v3974_v24 }
 0xda3   :  { %4118 = vperm.xlu0 %5181, %v7379_v42   ;;  %v7406_v18 = vpop.eup %5479  ;;  %5505 = vpow2.f32 %v3976_v40 }
 0xda4   :  { %v7409_v62 = vpop.eup %5481  ;;  %5507 = vpow2.f32 %v3978_v23 }
 0xda5   :  { %v7416_v12 = vpop.eup %5483  ;;  %5509 = vpow2.f32 %v3980_v15 }
 0xda6   :  { %4121 = vperm.xlu1 %5182, %v7386_v27   ;;  %v7419_v31 = vpop.eup %5485  ;;  %5511 = vpow2.f32 %v3982_v11 }
 0xda7   :  { %4124 = vperm.xlu0 %5181, %v7389_v46   ;;  %v7426_v2 = vpop.eup %5487  ;;  %5513 = vpow2.f32 %v3984_v63 }
 0xda8   :  { %v7429_v16 = vpop.eup %5489  ;;  %5515 = vpow2.f32 %v3986_v41 }
 0xda9   :  { %v7436_v39 = vpop.eup %5491  ;;  %5517 = vpow2.f32 %v3988_v51 }
 0xdaa   :  { %4127 = vperm.xlu1 %5182, %v7396_v49   ;;  %v7439_v32 = vpop.eup %5493  ;;  %5519 = vpow2.f32 %v4018_v4 }
 0xdab   :  { %4130 = vperm.xlu0 %5181, %v7399_v56   ;;  %v7446_v0 = vpop.eup %5495  ;;  %5521 = vpow2.f32 %v4020_v5 }
 0xdac   :  { %7911 = vst [vmem:[#allocation53_spill] sm:$0xff] %v7446_v0  ;;  %v7449_v44 = vpop.eup %5497 }
 0xdad   :  { %v7454_v8 = vpop.eup %5499 }
 0xdae   :  { %4133 = vperm.xlu1 %5182, %v7406_v18   ;;  %7912 = vst [vmem:[#allocation55_spill] sm:$0xff] %v7454_v8  ;;  %v7457_v58 = vpop.eup %5501 }
 0xdaf   :  { %4136 = vperm.xlu0 %5181, %v7409_v62   ;;  %7913 = vst [vmem:[#allocation54_spill] sm:$0xff] %v7457_v58  ;;  %v7461_v38 = vpop.eup %5503 }
 0xdb0   :  { %7914 = vst [vmem:[#allocation57_spill] sm:$0xff] %v7461_v38  ;;  %v7463_v7 = vpop.eup %5505 }
 0xdb1   :  { %7915 = vst [vmem:[#allocation56_spill] sm:$0xff] %v7463_v7  ;;  %v7467_v59 = vpop.eup %5507 }
 0xdb2   :  { %4139 = vperm.xlu1 %5182, %v7416_v12   ;;  %7916 = vst [vmem:[#allocation59_spill] sm:$0xff] %v7467_v59  ;;  %v7469_v21 = vpop.eup %5509 }
 0xdb3   :  { %4142 = vperm.xlu0 %5181, %v7419_v31   ;;  %7917 = vst [vmem:[#allocation58_spill] sm:$0xff] %v7469_v21  ;;  %v7473_v48 = vpop.eup %5511 }
 0xdb4   :  { %7918 = vst [vmem:[#allocation61_spill] sm:$0xff] %v7473_v48  ;;  %v7475_v14 = vpop.eup %5513 }
 0xdb5   :  { %7919 = vst [vmem:[#allocation60_spill] sm:$0xff] %v7475_v14  ;;  %v7479_v26 = vpop.eup %5515 }
 0xdb6   :  { %4058 = vperm.xlu1 %5182, %v7426_v2   ;;  %7920 = vst [vmem:[#allocation63_spill] sm:$0xff] %v7479_v26  ;;  %v7481_v50 = vpop.eup %5517 }
 0xdb7   :  { %4055 = vperm.xlu0 %5181, %v7429_v16   ;;  %7921 = vst [vmem:[#allocation62_spill] sm:$0xff] %v7481_v50  ;;  %v7485_v13 = vpop.eup %5519 }
 0xdb8   :  { %7922 = vst [vmem:[#allocation65_spill] sm:$0xff] %v7485_v13  ;;  %v7487_v20 = vpop.eup %5521 }
 0xdb9   :  { %7923 = vst [vmem:[#allocation64_spill] sm:$0xff] %v7487_v20 }
 0xdba   :  { %4061 = vperm.xlu1 %5182, %v7436_v39  }
 0xdbb   :  { %4064 = vperm.xlu0 %5181, %v7439_v32  }
 0xdbe   :  { %4067 = vperm.xlu1 %5182, %v7446_v0  }
 0xdbf   :  { %4070 = vperm.xlu0 %5181, %v7449_v44  }
 0xdc2   :  { %4073 = vperm.xlu1 %5182, %v7454_v8  }
 0xdc3   :  { %4076 = vperm.xlu0 %5181, %v7457_v58  }
 0xdc6   :  { %4079 = vperm.xlu1 %5182, %v7461_v38  }
 0xdc7   :  { %4082 = vperm.xlu0 %5181, %v7463_v7  }
 0xdca   :  { %4085 = vperm.xlu1 %5182, %v7467_v59  }
 0xdcb   :  { %4088 = vperm.xlu0 %5181, %v7469_v21  }
 0xdce   :  { %4091 = vperm.xlu1 %5182, %v7473_v48  }
 0xdcf   :  { %4094 = vperm.xlu0 %5181, %v7475_v14  }
 0xdd2   :  { %4097 = vperm.xlu1 %5182, %v7479_v26  }
 0xdd3   :  { %4100 = vperm.xlu0 %5181, %v7481_v50  }
 0xdd6   :  { %4145 = vperm.xlu1 %5182, %v7485_v13  }
 0xdd7   :  { %4148 = vperm.xlu0 %5181, %v7487_v20  }
 0xe15   :  { %v7491_v52 = vpop.permute.xlu1 %4103 }
 0xe16   :  { %v7493_v54 = vpop.permute.xlu0 %4106  ;;  %v4225_v38 = vrot.slane %v7491_v52, %v5875_v45 }
 0xe19   :  { %v4110_v61 = vpop.permute.xlu1 %4109 }
 0xe1a   :  { %v4113_v24 = vpop.permute.xlu0 %4112  ;;  %v4234_v26 = vrot.slane %v4110_v61, %v5875_v45 }
 0xe1b   :  { %v4238_v50 = vrot.slane %v4113_v24, %v6416_v6 }
 0xe1d   :  { %v4116_v10 = vpop.permute.xlu1 %4115 }
 0xe1e   :  { %v4119_v40 = vpop.permute.xlu0 %4118  ;;  %v4243_v28 = vrot.slane %v4116_v10, %v5875_v45 }
 0xe1f   :  { %v4247_v48 = vrot.slane %v4119_v40, %v6416_v6 }
 0xe21   :  { %v7495_v17 = vpop.permute.xlu1 %4121 }
 0xe22   :  { %v7497_v25 = vpop.permute.xlu0 %4124 }
 0xe25   :  { %v7499_v23 = vpop.permute.xlu1 %4127 }
 0xe26   :  { %v7501_v29 = vpop.permute.xlu0 %4130 }
 0xe29   :  { %v7503_v15 = vpop.permute.xlu1 %4133 }
 0xe2a   :  { %v7505_v1 = vpop.permute.xlu0 %4136 }
 0xe2d   :  { %v7507_v11 = vpop.permute.xlu1 %4139 }
 0xe2e   :  { %v7509_v43 = vpop.permute.xlu0 %4142 }
 0xe31   :  { %v4059_v30 = vpop.permute.xlu1 %4058 }
 0xe32   :  { %v4056_v63 = vpop.permute.xlu0 %4055  ;;  %v4157_v61 = vrot.slane %v4059_v30, %v6416_v6 }
 0xe33   :  { %v4153_v24 = vrot.slane %v4056_v63, %v5875_v45 }
 0xe35   :  { %v4062_v41 = vpop.permute.xlu1 %4061 }
 0xe36   :  { %v4065_v3 = vpop.permute.xlu0 %4064  ;;  %v4162_v14 = vrot.slane %v4062_v41, %v5875_v45  ;;  %v4229_v41 = vrot.slane %v7493_v54, %v6416_v6  ;;  %v4256_v54 = vrot.slane %v7497_v25, %v6416_v6 }
 0xe37   :  { %v4166_v59 = vrot.slane %v4065_v3, %v6416_v6  ;;  %v4239_v3 = vsel %vm1950_vm9, %v4238_v50, %v4234_v26 }
 0xe39   :  { %v4068_v51 = vpop.permute.xlu1 %4067  ;;  %v4167_v0 = vsel %vm1950_vm9, %v4166_v59, %v4162_v14  ;;  %v4158_v59 = vsel %vm1950_vm9, %v4157_v61, %v4153_v24  ;;  %v4270_v14 = vrot.slane %v7503_v15, %v5875_v45 }
 0xe3a   :  { %v4071_v33 = vpop.permute.xlu0 %4070  ;;  %v4171_v7 = vrot.slane %v4068_v51, %v5875_v45 }
 0xe3b   :  { %v4175_v8 = vrot.slane %v4071_v33, %v6416_v6  ;;  %v4248_v33 = vsel %vm1950_vm9, %v4247_v48, %v4243_v28  ;;  %v4261_v28 = vrot.slane %v7499_v23, %v5875_v45  ;;  %v4265_v48 = vrot.slane %v7501_v29, %v6416_v6 }
 0xe3c   :  { %v4283_v29 = vrot.slane %v7509_v43, %v6416_v6 }
 0xe3d   :  { %v4074_v4 = vpop.permute.xlu1 %4073  ;;  %v4176_v26 = vsel %vm1950_vm9, %v4175_v8, %v4171_v7  ;;  %v4294_v8 = vsel %vm517_vm1, %v4167_v0, %v4158_v59 }
 0xe3e   :  { %v4077_v5 = vpop.permute.xlu0 %4076  ;;  %v4180_v10 = vrot.slane %v4074_v4, %v5875_v45  ;;  %v4295_v25 = vsel %vm519_vm2, %v4176_v26, %v4294_v8 }
 0xe3f   :  { %v4184_v40 = vrot.slane %v4077_v5, %v6416_v6  ;;  %v4252_v5 = vrot.slane %v7495_v17, %v5875_v45  ;;  %v4279_v17 = vrot.slane %v7507_v11, %v5875_v45 }
 0xe41   :  { %v4080_v13 = vpop.permute.xlu1 %4079 }
 0xe42   :  { %v4083_v20 = vpop.permute.xlu0 %4082  ;;  %v4189_v52 = vrot.slane %v4080_v13, %v5875_v45 }
 0xe43   :  { %v4193_v51 = vrot.slane %v4083_v20, %v6416_v6  ;;  %v4274_v20 = vrot.slane %v7505_v1, %v6416_v6  ;;  %v4230_v1 = vsel %vm1950_vm9, %v4229_v41, %v4225_v38 }
 0xe45   :  { %v4086_v21 = vpop.permute.xlu1 %4085  ;;  %v4194_v7 = vsel %vm1950_vm9, %v4193_v51, %v4189_v52  ;;  %v4301_v51 = vsel %vm517_vm1, %v4239_v3, %v4230_v1 }
 0xe46   :  { %v4089_v58 = vpop.permute.xlu0 %4088  ;;  %v4198_v30 = vrot.slane %v4086_v21, %v5875_v45  ;;  %v4185_v21 = vsel %vm1950_vm9, %v4184_v40, %v4180_v10  ;;  %v4257_v40 = vsel %vm1950_vm9, %v4256_v54, %v4252_v5  ;;  %v4284_v5 = vsel %vm1950_vm9, %v4283_v29, %v4279_v17 }
 0xe47   :  { %v4202_v63 = vrot.slane %v4089_v58, %v6416_v6  ;;  %v4296_v15 = vsel %vm521_vm3, %v4185_v21, %v4295_v25 }
 0xe48   :  { %v4297_v11 = vsel %vm523_vm4, %v4194_v7, %v4296_v15 }
 0xe49   :  { %v4092_v4 = vpop.permute.xlu1 %4091  ;;  %v4203_v23 = vsel %vm1950_vm9, %v4202_v63, %v4198_v30  ;;  %v4266_v30 = vsel %vm1950_vm9, %v4265_v48, %v4261_v28  ;;  %v4302_v63 = vsel %vm519_vm2, %v4248_v33, %v4301_v51 }
 0xe4a   :  { %v4207_v50 = vrot.slane %v4092_v4, %v5875_v45  ;;  %v4095_v13 = vpop.permute.xlu0 %4094  ;;  %v4298_v43 = vsel %vm525_vm5, %v4203_v23, %v4297_v11  ;;  %v4275_v4 = vsel %vm1950_vm9, %v4274_v20, %v4270_v14  ;;  %v4303_v41 = vsel %vm521_vm3, %v4257_v40, %v4302_v63 }
 0xe4b   :  { %v4211_v58 = vrot.slane %v4095_v13, %v6416_v6  ;;  %v4304_v28 = vsel %vm523_vm4, %v4266_v30, %v4303_v41 }
 0xe4c   :  { %v4305_v21 = vsel %vm525_vm5, %v4275_v4, %v4304_v28  ;;  %v7931_v28 = vld [vmem:[#allocation60_spill] sm:$0xff] }
 0xe4d   :  { %v4098_v61 = vpop.permute.xlu1 %4097  ;;  %v4212_v0 = vsel %vm1950_vm9, %v4211_v58, %v4207_v50  ;;  %v4306_v48 = vsel %vm527_vm6, %v4284_v5, %v4305_v21  ;;  %v7929_v5 = vld [vmem:[#allocation58_spill] sm:$0xff]  ;;  %v7933_v21 = vld [vmem:[#allocation16_spill] sm:$0xff] }
 0xe4e   :  { %v4216_v24 = vrot.slane %v4098_v61, %v5875_v45  ;;  %v4101_v10 = vpop.permute.xlu0 %4100  ;;  %v4299_v38 = vsel %vm527_vm6, %v4212_v0, %v4298_v43 }
 0xe4f   :  { %v4220_v52 = vrot.slane %v4101_v10, %v6416_v6 }
 0xe51   :  { %v4146_v26 = vpop.permute.xlu1 %4145  ;;  %v4221_v50 = vsel %vm1950_vm9, %v4220_v52, %v4216_v24 }
 0xe52   :  { %v4288_v54 = vrot.slane %v4146_v26, %v5875_v45  ;;  %v4149_v3 = vpop.permute.xlu0 %4148  ;;  %v4300_v13 = vsel %vm529_vm7, %v4221_v50, %v4299_v38  ;;  %v7926_v26 = vld [vmem:[#allocation55_spill] sm:$0xff]  ;;  %v7928_v38 = vld [vmem:[#allocation57_spill] sm:$0xff] }
 0xe53   :  { %v4292_v33 = vrot.slane %v4149_v3, %v6416_v6  ;;  %v4310_v59 = vsel %vm2103_vm10, %v4300_v13, 0.0 }
 0xe54   :  { %4311 = vadd.xlane.f32.xlu1 %v4310_v59 }
 0xe55   :  { %v4293_v58 = vsel %vm1950_vm9, %v4292_v33, %v4288_v54  ;;  %v7930_v54 = vld [vmem:[#allocation59_spill] sm:$0xff]  ;;  %v7932_v33 = vld [vmem:[#allocation61_spill] sm:$0xff] }
 0xe56   :  { %v4307_v14 = vsel %vm529_vm7, %v4293_v58, %v4306_v48  ;;  %v7934_v48 = vld [vmem:[#allocation62_spill] sm:$0xff] }
 0xe57   :  { %v4313_v8 = vsel %vm2103_vm10, %v4307_v14, 0.0  ;;  %v7935_v14 = vld [vmem:[#allocation63_spill] sm:$0xff] }
 0xe58   :  { %4314 = vadd.xlane.f32.xlu0 %v4313_v8 }
 0xedd   :  { %v4312_v24 = vpop.xlane.xlu1 %4311 }
 0xee1   :  { %v4315_v7 = vpop.xlane.xlu0 %4314 }
 0xee2   :  { %5523 = vrcp.f32 %v4315_v7 }
 0xee3   :  { %5525 = vrcp.f32 %v4312_v24 }
 0xeef   :  { %v7585_v20 = vpop.eup %5523 }
 0xef0   :  { %v4355_v17 = vrot.slane %v7585_v20, %v5817_v22  ;;  %v4359_v61 = vrot.slane %v7585_v20, %v5828_v35  ;;  %v4363_v0 = vrot.slane %v7585_v20, %v5942_v34  ;;  %v4367_v10 = vrot.slane %v7585_v20, %v5948_v37  ;;  %v5526_v52 = vpop.eup %5525 }
 0xef1   :  { %v4371_v1 = vrot.slane %v7585_v20, %v5957_v53  ;;  %v4347_v13 = vrot.slane %v5526_v52, %v5951_v47  ;;  %v4351_v58 = vrot.slane %v5526_v52, %v7933_v21  ;;  %v4383_v7 = vrot.slane %v7585_v20, %v7933_v21 }
 0xef2   :  { %v4417_v25 = vmul.f32 %v7359_v9, %v4355_v17  ;;  %v4416_v23 = vmul.f32 %v7354_v55, %v4355_v17  ;;  %v4419_v29 = vmul.f32 %v7369_v19, %v4359_v61  ;;  %v4418_v15 = vmul.f32 %v7366_v57, %v4359_v61 }
 0xef3   :  { %v4421_v9 = vmul.f32 %v7379_v42, %v4363_v0  ;;  %v4420_v55 = vmul.f32 %v7376_v60, %v4363_v0  ;;  %v4423_v19 = vmul.f32 %v7389_v46, %v4367_v10  ;;  %v4422_v57 = vmul.f32 %v7386_v27, %v4367_v10 }
 0xef4   :  { %4678 = vperm.xlu0 %5181, %v4417_v25   ;;  %4675 = vperm.xlu1 %5182, %v4416_v23   ;;  %v4425_v40 = vmul.f32 %v7399_v56, %v4371_v1  ;;  %v4424_v42 = vmul.f32 %v7396_v49, %v4371_v1  ;;  %v4375_v60 = vrot.slane %v7585_v20, %v5945_v36  ;;  %v7937_v25 = vld [vmem:[#allocation65_spill] sm:$0xff] }
 0xef5   :  { %v4379_v27 = vrot.slane %v7585_v20, %v5951_v47  ;;  %v4323_v49 = vrot.slane %v5526_v52, %v5817_v22  ;;  %v4412_v59 = vmul.f32 %v7932_v33, %v4347_v13  ;;  %v4414_v8 = vmul.f32 %v7935_v14, %v4351_v58  ;;  %v7936_v47 = vld [vmem:[#allocation64_spill] sm:$0xff] }
 0xef6   :  { %v4427_v11 = vmul.f32 %v7409_v62, %v4375_v60  ;;  %v4426_v46 = vmul.f32 %v7406_v18, %v4375_v60  ;;  %v4327_v18 = vrot.slane %v5526_v52, %v5828_v35  ;;  %v4431_v17 = vmul.f32 %v7936_v47, %v4383_v7 }
 0xef7   :  { %v4429_v51 = vmul.f32 %v7419_v31, %v4379_v27  ;;  %v4428_v56 = vmul.f32 %v7416_v12, %v4379_v27  ;;  %v4400_v30 = vmul.f32 %v7429_v16, %v4323_v49  ;;  %v4401_v62 = vmul.f32 %v7426_v2, %v4323_v49  ;;  %v7924_v12 = vld [vmem:[#allocation53_spill] sm:$0xff]  ;;  %v7925_v2 = vld [vmem:[#allocation54_spill] sm:$0xff] }
 0xef8   :  { %4684 = vperm.xlu0 %5181, %v4419_v29   ;;  %4681 = vperm.xlu1 %5182, %v4418_v15   ;;  %v4403_v43 = vmul.f32 %v7439_v32, %v4327_v18  ;;  %v4402_v63 = vmul.f32 %v7436_v39, %v4327_v18  ;;  %v4331_v31 = vrot.slane %v5526_v52, %v5942_v34  ;;  %v7927_v39 = vld [vmem:[#allocation56_spill] sm:$0xff] }
 0xef9   :  { %v4335_v16 = vrot.slane %v5526_v52, %v5948_v37  ;;  %v4339_v32 = vrot.slane %v5526_v52, %v5957_v53  ;;  %v4413_v53 = vmul.f32 %v7931_v28, %v4347_v13  ;;  %v4430_v23 = vmul.f32 %v7937_v25, %v4383_v7 }
 0xefa   :  { %v4405_v22 = vmul.f32 %v7449_v44, %v4331_v31  ;;  %v4404_v4 = vmul.f32 %v7924_v12, %v4331_v31  ;;  %v4343_v44 = vrot.slane %v5526_v52, %v5945_v36  ;;  %v4415_v36 = vmul.f32 %v7934_v48, %v4351_v58 }
 0xefb   :  { %v4407_v35 = vmul.f32 %v7925_v2, %v4335_v16  ;;  %v4406_v50 = vmul.f32 %v7926_v26, %v4335_v16  ;;  %v4409_v34 = vmul.f32 %v7927_v39, %v4339_v32  ;;  %v4408_v41 = vmul.f32 %v7928_v38, %v4339_v32 }
 0xefc   :  { %4690 = vperm.xlu0 %5181, %v4421_v9   ;;  %4687 = vperm.xlu1 %5182, %v4420_v55   ;;  %v4411_v37 = vmul.f32 %v7929_v5, %v4343_v44  ;;  %v4410_v3 = vmul.f32 %v7930_v54, %v4343_v44 }
 0xf00   :  { %4696 = vperm.xlu0 %5181, %v4423_v19   ;;  %4693 = vperm.xlu1 %5182, %v4422_v57  }
 0xf04   :  { %4702 = vperm.xlu0 %5181, %v4425_v40   ;;  %4699 = vperm.xlu1 %5182, %v4424_v42  }
 0xf08   :  { %4708 = vperm.xlu0 %5181, %v4427_v11   ;;  %4705 = vperm.xlu1 %5182, %v4426_v46  }
 0xf0c   :  { %4714 = vperm.xlu0 %5181, %v4429_v51   ;;  %4711 = vperm.xlu1 %5182, %v4428_v56  }
 0xf10   :  { %4627 = vperm.xlu0 %5181, %v4400_v30   ;;  %4630 = vperm.xlu1 %5182, %v4401_v62  }
 0xf14   :  { %4636 = vperm.xlu0 %5181, %v4403_v43   ;;  %4633 = vperm.xlu1 %5182, %v4402_v63  }
 0xf18   :  { %4642 = vperm.xlu0 %5181, %v4405_v22   ;;  %4639 = vperm.xlu1 %5182, %v4404_v4  }
 0xf1c   :  { %4648 = vperm.xlu0 %5181, %v4407_v35   ;;  %4645 = vperm.xlu1 %5182, %v4406_v50  }
 0xf20   :  { %4654 = vperm.xlu0 %5181, %v4409_v34   ;;  %4651 = vperm.xlu1 %5182, %v4408_v41  }
 0xf24   :  { %4660 = vperm.xlu0 %5181, %v4411_v37   ;;  %4657 = vperm.xlu1 %5182, %v4410_v3  }
 0xf28   :  { %4666 = vperm.xlu0 %5181, %v4413_v53   ;;  %4663 = vperm.xlu1 %5182, %v4412_v59  }
 0xf2c   :  { %4672 = vperm.xlu0 %5181, %v4415_v36   ;;  %4669 = vperm.xlu1 %5182, %v4414_v8  }
 0xf30   :  { %4720 = vperm.xlu0 %5181, %v4431_v17   ;;  %4717 = vperm.xlu1 %5182, %v4430_v23  }
 0xf6f   :  { %v4679_v61 = vpop.permute.xlu0 %4678  ;;  %v4676_v29 = vpop.permute.xlu1 %4675 }
 0xf70   :  { %v4801_v18 = vrot.slane %v4679_v61, %v6416_v6  ;;  %v4797_v43 = vrot.slane %v4676_v29, %v5875_v45 }
 0xf72   :  { %v4802_v41 = vsel %vm1950_vm9, %v4801_v18, %v4797_v43 }
 0xf73   :  { %v4685_v15 = vpop.permute.xlu0 %4684  ;;  %v4682_v0 = vpop.permute.xlu1 %4681 }
 0xf74   :  { %v4810_v63 = vrot.slane %v4685_v15, %v6416_v6  ;;  %v4806_v31 = vrot.slane %v4682_v0, %v5875_v45 }
 0xf76   :  { %v4811_v37 = vsel %vm1950_vm9, %v4810_v63, %v4806_v31 }
 0xf77   :  { %v4691_v24 = vpop.permute.xlu0 %4690  ;;  %v4688_v9 = vpop.permute.xlu1 %4687 }
 0xf78   :  { %v4819_v4 = vrot.slane %v4691_v24, %v6416_v6  ;;  %v4815_v16 = vrot.slane %v4688_v9, %v5875_v45 }
 0xf7a   :  { %v4820_v28 = vsel %vm1950_vm9, %v4819_v4, %v4815_v16 }
 0xf7b   :  { %v7643_v55 = vpop.permute.xlu0 %4696  ;;  %v7645_v10 = vpop.permute.xlu1 %4693 }
 0xf7c   :  { %v4828_v53 = vrot.slane %v7643_v55, %v6416_v6  ;;  %v4824_v33 = vrot.slane %v7645_v10, %v5875_v45 }
 0xf7f   :  { %v7647_v19 = vpop.permute.xlu0 %4702  ;;  %v7649_v20 = vpop.permute.xlu1 %4699 }
 0xf80   :  { %v4837_v7 = vrot.slane %v7647_v19, %v6416_v6  ;;  %v4833_v47 = vrot.slane %v7649_v20, %v5875_v45  ;;  %v4829_v20 = vsel %vm1950_vm9, %v4828_v53, %v4824_v33 }
 0xf83   :  { %v7651_v57 = vpop.permute.xlu0 %4708  ;;  %v7653_v1 = vpop.permute.xlu1 %4705 }
 0xf84   :  { %v4846_v23 = vrot.slane %v7651_v57, %v6416_v6  ;;  %v4842_v61 = vrot.slane %v7653_v1, %v5875_v45 }
 0xf87   :  { %v7655_v40 = vpop.permute.xlu0 %4714  ;;  %v7657_v42 = vpop.permute.xlu1 %4711 }
 0xf88   :  { %v4855_v0 = vrot.slane %v7655_v40, %v6416_v6  ;;  %v4851_v24 = vrot.slane %v7657_v42, %v5875_v45  ;;  %v4838_v40 = vsel %vm1950_vm9, %v4837_v7, %v4833_v47 }
 0xf8b   :  { %v4628_v60 = vpop.permute.xlu0 %4627  ;;  %v4631_v11 = vpop.permute.xlu1 %4630 }
 0xf8c   :  { %v4725_v32 = vrot.slane %v4628_v60, %v5875_v45  ;;  %v4729_v39 = vrot.slane %v4631_v11, %v6416_v6  ;;  %v4873_v11 = vsel %vm517_vm1, %v4811_v37, %v4802_v41 }
 0xf8e   :  { %v4730_v48 = vsel %vm1950_vm9, %v4729_v39, %v4725_v32 }
 0xf8f   :  { %v4637_v46 = vpop.permute.xlu0 %4636  ;;  %v4634_v27 = vpop.permute.xlu1 %4633 }
 0xf90   :  { %v4738_v22 = vrot.slane %v4637_v46, %v6416_v6  ;;  %v4734_v12 = vrot.slane %v4634_v27, %v5875_v45  ;;  %v4874_v46 = vsel %vm519_vm2, %v4820_v28, %v4873_v11  ;;  %v4847_v27 = vsel %vm1950_vm9, %v4846_v23, %v4842_v61 }
 0xf92   :  { %v4739_v54 = vsel %vm1950_vm9, %v4738_v22, %v4734_v12 }
 0xf93   :  { %v4643_v52 = vpop.permute.xlu0 %4642  ;;  %v4640_v51 = vpop.permute.xlu1 %4639  ;;  %v4866_v17 = vsel %vm517_vm1, %v4739_v54, %v4730_v48 }
 0xf94   :  { %v4747_v2 = vrot.slane %v4643_v52, %v6416_v6  ;;  %v4743_v35 = vrot.slane %v4640_v51, %v5875_v45 }
 0xf96   :  { %v4748_v59 = vsel %vm1950_vm9, %v4747_v2, %v4743_v35 }
 0xf97   :  { %v4649_v56 = vpop.permute.xlu0 %4648  ;;  %v4646_v49 = vpop.permute.xlu1 %4645  ;;  %v4867_v29 = vsel %vm519_vm2, %v4748_v59, %v4866_v17 }
 0xf98   :  { %v4756_v34 = vrot.slane %v4649_v56, %v6416_v6  ;;  %v4752_v38 = vrot.slane %v4646_v49, %v5875_v45  ;;  %v4875_v56 = vsel %vm521_vm3, %v4829_v20, %v4874_v46  ;;  %v4856_v49 = vsel %vm1950_vm9, %v4855_v0, %v4851_v24 }
 0xf99   :  { %v4876_v43 = vsel %vm523_vm4, %v4838_v40, %v4875_v56 }
 0xf9a   :  { %v4757_v36 = vsel %vm1950_vm9, %v4756_v34, %v4752_v38  ;;  %v4877_v22 = vsel %vm525_vm5, %v4847_v27, %v4876_v43 }
 0xf9b   :  { %v4655_v30 = vpop.permute.xlu0 %4654  ;;  %v4652_v62 = vpop.permute.xlu1 %4651  ;;  %v4868_v9 = vsel %vm521_vm3, %v4757_v36, %v4867_v29  ;;  %v4878_v12 = vsel %vm527_vm6, %v4856_v49, %v4877_v22 }
 0xf9c   :  { %v4765_v44 = vrot.slane %v4655_v30, %v6416_v6  ;;  %v4761_v5 = vrot.slane %v4652_v62, %v5875_v45 }
 0xf9e   :  { %v4766_v25 = vsel %vm1950_vm9, %v4765_v44, %v4761_v5 }
 0xf9f   :  { %v4661_v26 = vpop.permute.xlu0 %4660  ;;  %v4658_v50 = vpop.permute.xlu1 %4657  ;;  %v4869_v57 = vsel %vm523_vm4, %v4766_v25, %v4868_v9 }
 0xfa0   :  { %v4774_v3 = vrot.slane %v4661_v26, %v6416_v6  ;;  %v4770_v13 = vrot.slane %v4658_v50, %v5875_v45 }
 0xfa2   :  { %v4775_v15 = vsel %vm1950_vm9, %v4774_v3, %v4770_v13 }
 0xfa3   :  { %v4667_v21 = vpop.permute.xlu0 %4666  ;;  %v4664_v58 = vpop.permute.xlu1 %4663  ;;  %v4870_v42 = vsel %vm525_vm5, %v4775_v15, %v4869_v57 }
 0xfa4   :  { %v4783_v14 = vrot.slane %v4667_v21, %v6416_v6  ;;  %v4779_v8 = vrot.slane %v4664_v58, %v5875_v45 }
 0xfa6   :  { %v4784_v55 = vsel %vm1950_vm9, %v4783_v14, %v4779_v8 }
 0xfa7   :  { %v4673_v10 = vpop.permute.xlu0 %4672  ;;  %v4670_v19 = vpop.permute.xlu1 %4669  ;;  %v4871_v52 = vsel %vm527_vm6, %v4784_v55, %v4870_v42 }
 0xfa8   :  { %v4792_v1 = vrot.slane %v4673_v10, %v6416_v6  ;;  %v4788_v60 = vrot.slane %v4670_v19, %v5875_v45 }
 0xfaa   :  { %v4793_v51 = vsel %vm1950_vm9, %v4792_v1, %v4788_v60 }
 0xfab   :  { %v4872_v30 = vsel %vm529_vm7, %v4793_v51, %v4871_v52  ;;  %v4721_v62 = vpop.permute.xlu0 %4720  ;;  %v4718_v18 = vpop.permute.xlu1 %4717 }
 0xfac   :  { %4883 = vst.msk [vmem:[#allocation11 + $0x10] sm:$0xff] %vm2103_vm10, %v4872_v30  ;;  %v4864_v63 = vrot.slane %v4721_v62, %v6416_v6  ;;  %v4860_v31 = vrot.slane %v4718_v18, %v5875_v45 }
 0xfae   :  { %v4865_v4 = vsel %vm1950_vm9, %v4864_v63, %v4860_v31 }
 0xfaf   :  { %v4879_v16 = vsel %vm529_vm7, %v4865_v4, %v4878_v12 }
 0xfb0   :  { %4884 = vst.msk [vmem:[#allocation11 + $0x18] sm:$0xff] %vm2103_vm10, %v4879_v16 }
 0xfb1   :  { %5684 = shalt.err (!%p5681_p1)
}
 0xfb2   :  { %4896 = dma.vmem_to_hbm [thread:$0]  %s4891_s24, 512, %s7743_s6, [#allocation4], %s5703_s26, %s5703_s26, %s5704_s27  }
 0xfb3   :  { %5699 = dma.done.wait [#allocation4], 512  }
 0xfb4   :  { %5700 = vsyncadd [#allocation4], 4294966784 }
 0xfb5   :  { %4900 = vsyncpa [#allocation3], 1 }
 0xfb6   :  { %4901 = vsyncpa [#allocation6], 1 }
 0xfb7   :  { %4902 = vsyncpa [#allocation9], 1 }
 0xfb8   :  { %4903 = vsyncpa [#allocation4], 1 }

</bundles_post_ra>
